<compile_context>
chip_gen: v6e
topology: v6e:2x2x1
jax: 0.10.0
libtpu: 0.0.40
codegen_flags: <defaults>
</compile_context>

<pallas_src>
import math
from functools import partial

import numpy as np
import jax
import jax.numpy as jnp
from jax import lax
from jax.experimental import pallas as pl
from jax.experimental.pallas import tpu as pltpu

LEVELS = 5
SIGMA = 1.5
MS_WEIGHTS = (0.0448, 0.2856, 0.3001, 0.2363, 0.1333)


# ----------------------------------------------------------------------------
# Static (trace-time) geometry and filter construction
# ----------------------------------------------------------------------------
def _round_up(x, m):
    return ((x + m - 1) // m) * m


def _gaussian_1d(ws, sigma):
    g = np.array(
        [math.exp(-(x - ws // 2) ** 2 / float(2 * sigma ** 2)) for x in range(ws)],
        dtype=np.float64,
    )
    return (g / g.sum()).astype(np.float32)


def _level_geom(h, w):
    """Per-scale geometry, matching the PyTorch reference exactly."""
    ws = min(h, w, 11)
    if ws < 3:
        raise ValueError(
            "spatial size too small for 5-level MS-SSIM (crop would be empty; "
            "the PyTorch reference would produce NaN)")
    sigma = SIGMA * ws / 11.0
    pad = ws // 2                 # conv2d padding
    crop = (ws - 1) // 2          # ssim_map[:, :, crop:-crop, crop:-crop]
    hc = (h + 2 * pad - ws + 1) - 2 * crop      # cropped output rows
    wc = (w + 2 * pad - ws + 1) - 2 * crop      # cropped output cols
    # Plane-slab layout: the plane occupies `hs` (8-aligned) rows; real data starts at
    # `row_off`, surrounding rows are zero and serve as the conv's row zero-padding.
    row_off = max(0, pad - crop)
    tail = max(0, (crop + ws - 1 - pad) + hc - h)
    hs = _round_up(row_off + h + tail, 8)
    return dict(h=h, w=w, ws=ws, sigma=sigma, pad=pad, crop=crop,
                hc=hc, wc=wc, row_off=row_off, hs=hs)


def _level_operands(geom, nxt):
    """Constant operands (column filter + pooling matrices) and static per-level cfg."""
    h, w, ws = geom["h"], geom["w"], geom["ws"]
    pad, crop, hs = geom["pad"], geom["crop"], geom["hs"]
    g = _gaussian_1d(ws, geom["sigma"])

    # Banded column filter on the unpadded lane axis, restricted to cropped columns:
    #   t[:, xc] = sum_dx g[dx] * x[:, xc + crop + dx - pad]   (zero padding implicit)
    mcol = np.zeros((w, geom["wc"]), np.float32)
    for dx in range(ws):
        for xc in range(geom["wc"]):
            r = xc + crop + dx - pad
            if 0 <= r < w:
                mcol[r, xc] = g[dx]

    cfg = dict(ws=ws, hs=hs, hc=geom["hc"], wc=geom["wc"],
               gauss=tuple(float(v) for v in g), has_pool=nxt is not None)

    ops = [jnp.asarray(mcol)]                       # f32 (review: no bf16 moments)

    if nxt is not None:
        # Exact F.avg_pool2d(kernel=2, stride=2) as two tiny per-plane f32 matmuls.
        wn = w // 2
        colpool = np.zeros((w, wn), np.float32)
        for j in range(wn):
            colpool[2 * j, j] = 0.5
            colpool[2 * j + 1, j] = 0.5
        # Row-pair matrix writes directly into the NEXT scale's slab layout; its
        # all-zero rows produce the next scale's zero padding rows for free.
        rowpool = np.zeros((nxt["hs"], hs), np.float32)
        for i in range(h // 2):
            rowpool[nxt["row_off"] + i, geom["row_off"] + 2 * i] = 0.5
            rowpool[nxt["row_off"] + i, geom["row_off"] + 2 * i + 1] = 0.5
        ops += [jnp.asarray(colpool), jnp.asarray(rowpool)]

    return ops, cfg


def _vmem_limit_bytes(g0):
    """Rough per-grid-step live-set estimate (slabs + pipelining), clamped to [32, 64] MiB."""
    w_pad = _round_up(max(g0["w"], g0["wc"], 1), 128)
    slab = g0["hs"] * w_pad * 4
    est = 30 * slab + 8 * slab + 4 * 1024 * 1024
    return int(min(64 * 1024 * 1024, max(32 * 1024 * 1024, est)))


# ----------------------------------------------------------------------------
# The Pallas kernel: one plane per grid step, all 5 scales fused
# ----------------------------------------------------------------------------
def _ms_ssim_kernel(x1_ref, x2_ref, *rest, cfgs, c1, c2):
    out_ref = rest[-1]
    cref = rest[:-1]
    f32 = jnp.float32

    a1 = x1_ref[...]              # (hs0, W0) plane slab, zero rows outside the data
    a2 = x2_ref[...]

    vals = []
    pos = 0
    for cfg in cfgs:
        hs, hc, wc, ws = cfg["hs"], cfg["hc"], cfg["wc"], cfg["ws"]
        gauss = cfg["gauss"]

        mcol = cref[pos][...]
        pos += 1
        if cfg["has_pool"]:
            colpool = cref[pos][...]
            rowpool = cref[pos + 1][...]
            pos += 2

        # ---- separable Gaussian conv, column pass: ONE tall f32 MXU matmul does the
        #      column filtering for all five products at once (f32 per the review's
        #      second-moment precision concern). ----
        big = jnp.concatenate([a1, a2, a1 * a1, a2 * a2, a1 * a2], axis=0)  # (5*hs, W)
        t = jnp.dot(big, mcol, preferred_element_type=f32)                  # (5*hs, wc)

        # ---- row pass: incremental sublane roll (XLU) + weighted adds (VPU).
        #      roll by (total-1) == roll by -1; wrapped-in rows only reach rows that
        #      are never read (per-section reads stay inside each hs-aligned section),
        #      so no explicit zero block is needed.  The chained dependency bounds the
        #      live set to {acc, cur}. ----
        total = 5 * hs
        acc = gauss[0] * t
        cur = t
        for dy in range(1, ws):
            cur = pltpu.roll(cur, shift=total - 1, axis=0)
            acc = acc + gauss[dy] * cur

        # ---- per-product sections (8-aligned starts), restricted to the hc x wc
        #      valid region, so no masks and no NaN from garbage rows. ----
        mu1 = acc[0 * hs:0 * hs + hc, :wc]
        mu2 = acc[1 * hs:1 * hs + hc, :wc]
        e11 = acc[2 * hs:2 * hs + hc, :wc]
        e22 = acc[3 * hs:3 * hs + hc, :wc]
        e12 = acc[4 * hs:4 * hs + hc, :wc]

        mu1_sq = mu1 * mu1
        mu2_sq = mu2 * mu2
        mu12 = mu1 * mu2
        v1 = 2.0 * (e12 - mu12) + c2
        v2 = (e11 - mu1_sq) + (e22 - mu2_sq) + c2
        ssim_map = ((2.0 * mu12 + c1) * v1) / ((mu1_sq + mu2_sq + c1) * v2)
        mcs_map = v1 / v2

        vals.append(jnp.sum(ssim_map))
        vals.append(jnp.sum(mcs_map))

        # ---- fused 2x2 average pooling for the next scale (after the stats, per the
        #      review), per image, exact 0.5 weights, planes never in the contraction. ----
        if cfg["has_pool"]:
            a1 = jnp.dot(rowpool, jnp.dot(a1, colpool, preferred_element_type=f32),
                         preferred_element_type=f32)
            a2 = jnp.dot(rowpool, jnp.dot(a2, colpool, preferred_element_type=f32),
                         preferred_element_type=f32)

    # ---- one coalesced (1, 2*LEVELS) write instead of 10 tiny masked stores ----
    ncols = 2 * len(cfgs)
    col = lax.broadcasted_iota(jnp.int32, (1, ncols), 1)
    out = jnp.zeros((1, ncols), f32)
    for i, v in enumerate(vals):
        out = out + (col == i).astype(f32) * v.reshape(1, 1)
    out_ref[...] = out


# ----------------------------------------------------------------------------
# Wrapper
# ----------------------------------------------------------------------------
def _ms_ssim_impl(img1, img2, max_val):
    if img1.ndim != 4 or img1.shape != img2.shape:
        raise ValueError("expected matching NCHW inputs")
    n, c, h, w = img1.shape
    planes = n * c
    c1 = float((0.01 * max_val) ** 2)
    c2 = float((0.03 * max_val) ** 2)

    geoms = []
    hh, ww = h, w
    for _ in range(LEVELS):
        geoms.append(_level_geom(hh, ww))
        hh //= 2
        ww //= 2

    # Level-0 plane-slab layout: (planes, hs0, W), zero rows outside the data.
    g0 = geoms[0]
    x1 = img1.astype(jnp.float32).reshape(planes, h, w)
    x2 = img2.astype(jnp.float32).reshape(planes, h, w)
    top = g0["row_off"]
    bot = g0["hs"] - top - h
    if top or bot:
        x1 = jnp.pad(x1, ((0, 0), (top, bot), (0, 0)))
        x2 = jnp.pad(x2, ((0, 0), (top, bot), (0, 0)))

    consts = []
    cfgs = []
    for i, geom in enumerate(geoms):
        nxt = geoms[i + 1] if i + 1 < LEVELS else None
        ops, cfg = _level_operands(geom, nxt)
        consts += ops
        cfgs.append(cfg)

    img_spec = pl.BlockSpec((None, g0["hs"], w), lambda p: (p, 0, 0))
    const_specs = [pl.BlockSpec(cst.shape, lambda p: (0, 0)) for cst in consts]
    out_spec = pl.BlockSpec((None, 1, 2 * LEVELS), lambda p: (p, 0, 0))

    kernel = partial(_ms_ssim_kernel, cfgs=tuple(cfgs), c1=c1, c2=c2)
    sums = pl.pallas_call(
        kernel,
        out_shape=jax.ShapeDtypeStruct((planes, 1, 2 * LEVELS), jnp.float32),
        grid_spec=pltpu.PrefetchScalarGridSpec(
            num_scalar_prefetch=0,
            grid=(planes,),
            in_specs=[img_spec, img_spec] + const_specs,
            out_specs=out_spec),
        compiler_params=pltpu.CompilerParams(
            dimension_semantics=("parallel",),
            vmem_limit_bytes=_vmem_limit_bytes(g0)),
    )(x1, x2, *consts)

    # Tiny cross-plane reduction + the final weighted product stay in plain JAX.
    totals = jnp.sum(sums.reshape(planes, 2 * LEVELS), axis=0)          # (2*LEVELS,)
    inv_counts = jnp.asarray(
        [1.0 / float(planes * g["hc"] * g["wc"]) for g in geoms], jnp.float32)
    msssim = totals[0::2] * inv_counts
    mcs = totals[1::2] * inv_counts
    weight = jnp.asarray(MS_WEIGHTS, dtype=jnp.float32)
    # TODO(synk): the final cross-scale weighted product (fractional scalar powers) has
    # no Pallas benefit and, like the PyTorch reference, is NOT clamped (negative mcs
    # would yield NaN exactly as torch.prod(mcs**w) would).
    return (jnp.prod(mcs[:LEVELS - 1] ** weight[:LEVELS - 1])
            * msssim[LEVELS - 1] ** weight[LEVELS - 1])


@partial(jax.jit, static_argnames=("max_val",))
def _ms_ssim_jit(img1, img2, max_val):
    return _ms_ssim_impl(img1, img2, max_val)


def ms_ssim(img1, img2, max_val=255.0):
    return _ms_ssim_jit(img1, img2, float(max_val))


class MSSSIM:
    """Pallas-TPU equivalent of the PyTorch MS_SSIM module's forward pass."""

    def __init__(self, size_average=True, max_val=255.0):
        # The reference forward always mean-reduces (ssim() is called with its default
        # size_average=True), so size_average is stored only for API parity.
        self.size_average = size_average
        self.channel = 3                 # hardcoded in the reference module
        self.max_val = float(max_val)    # honoured via C1 / C2

    def __call__(self, img1, img2):
        return ms_ssim(img1, img2, max_val=self.max_val)

    forward = __call__


if __name__ == "__main__":
    key = jax.random.PRNGKey(0)
    k1, k2 = jax.random.split(key)
    # C must be 3 (module hardcodes channel=3); spatial 48 keeps all 5 scales valid
    # (48 -> 24 -> 12 -> 6 -> 3 with non-empty crops, as the PyTorch math requires).
    N, C, H, W = 2, 3, 48, 48
    img1 = jax.random.uniform(k1, (N, C, H, W), dtype=jnp.float32) * 255.0
    img2 = jax.random.uniform(k2, (N, C, H, W), dtype=jnp.float32) * 255.0

    model = MSSSIM()
    value = model(img1, img2)
    jax.block_until_ready(value)
    assert bool(jnp.isfinite(value)), "MS-SSIM produced a non-finite value"
    print("KERNEL_OK")
</pallas_src>

<mosaic_0001>
module attributes {stable_mosaic.version = 11 : i64} {
  func.func @_ms_ssim_kernel(%arg0: i32, %arg1: memref<1x48x48xf32, #tpu.memory_space<vmem>>, %arg2: memref<1x48x48xf32, #tpu.memory_space<vmem>>, %arg3: memref<48x38xf32, #tpu.memory_space<vmem>>, %arg4: memref<48x24xf32, #tpu.memory_space<vmem>>, %arg5: memref<24x48xf32, #tpu.memory_space<vmem>>, %arg6: memref<24x14xf32, #tpu.memory_space<vmem>>, %arg7: memref<24x12xf32, #tpu.memory_space<vmem>>, %arg8: memref<16x24xf32, #tpu.memory_space<vmem>>, %arg9: memref<12x2xf32, #tpu.memory_space<vmem>>, %arg10: memref<12x6xf32, #tpu.memory_space<vmem>>, %arg11: memref<8x16xf32, #tpu.memory_space<vmem>>, %arg12: memref<6x3xf32, #tpu.memory_space<vmem>>, %arg13: memref<6x3xf32, #tpu.memory_space<vmem>>, %arg14: memref<8x8xf32, #tpu.memory_space<vmem>>, %arg15: memref<3x1xf32, #tpu.memory_space<vmem>>, %arg16: memref<1x1x10xf32, #tpu.memory_space<vmem>>) attributes {dimension_semantics = [#tpu.dimension_semantics<parallel>], iteration_bounds = array<i64: 6>, scalar_prefetch = 0 : i64, scratch_operands = 0 : i64, tpu.core_type = #tpu.core_type<tc>, window_params = [{transform_indices = @transform_0, window_bounds = array<i64: 1, 48, 48>}, {transform_indices = @transform_1, window_bounds = array<i64: 1, 48, 48>}, {pipeline_mode = #tpu.pipeline_mode<synchronous>, transform_indices = @transform_2, window_bounds = array<i64: 48, 38>}, {pipeline_mode = #tpu.pipeline_mode<synchronous>, transform_indices = @transform_3, window_bounds = array<i64: 48, 24>}, {pipeline_mode = #tpu.pipeline_mode<synchronous>, transform_indices = @transform_4, window_bounds = array<i64: 24, 48>}, {pipeline_mode = #tpu.pipeline_mode<synchronous>, transform_indices = @transform_5, window_bounds = array<i64: 24, 14>}, {pipeline_mode = #tpu.pipeline_mode<synchronous>, transform_indices = @transform_6, window_bounds = array<i64: 24, 12>}, {pipeline_mode = #tpu.pipeline_mode<synchronous>, transform_indices = @transform_7, window_bounds = array<i64: 16, 24>}, {pipeline_mode = #tpu.pipeline_mode<synchronous>, transform_indices = @transform_8, window_bounds = array<i64: 12, 2>}, {pipeline_mode = #tpu.pipeline_mode<synchronous>, transform_indices = @transform_9, window_bounds = array<i64: 12, 6>}, {pipeline_mode = #tpu.pipeline_mode<synchronous>, transform_indices = @transform_10, window_bounds = array<i64: 8, 16>}, {pipeline_mode = #tpu.pipeline_mode<synchronous>, transform_indices = @transform_11, window_bounds = array<i64: 6, 3>}, {pipeline_mode = #tpu.pipeline_mode<synchronous>, transform_indices = @transform_12, window_bounds = array<i64: 6, 3>}, {pipeline_mode = #tpu.pipeline_mode<synchronous>, transform_indices = @transform_13, window_bounds = array<i64: 8, 8>}, {pipeline_mode = #tpu.pipeline_mode<synchronous>, transform_indices = @transform_14, window_bounds = array<i64: 3, 1>}, {transform_indices = @transform_15, window_bounds = array<i64: 1, 1, 10>}]} {
    %c0 = arith.constant 0 : index
    %c0_0 = arith.constant 0 : index
    %c0_1 = arith.constant 0 : index
    %0 = vector.load %arg1[%c0, %c0_0, %c0_1] : memref<1x48x48xf32, #tpu.memory_space<vmem>>, vector<1x48x48xf32>
    %1 = vector.shape_cast %0 : vector<1x48x48xf32> to vector<48x48xf32>
    %c0_2 = arith.constant 0 : index
    %c0_3 = arith.constant 0 : index
    %c0_4 = arith.constant 0 : index
    %2 = vector.load %arg2[%c0_2, %c0_3, %c0_4] : memref<1x48x48xf32, #tpu.memory_space<vmem>>, vector<1x48x48xf32>
    %3 = vector.shape_cast %2 : vector<1x48x48xf32> to vector<48x48xf32>
    %c0_5 = arith.constant 0 : index
    %c0_6 = arith.constant 0 : index
    %4 = vector.load %arg3[%c0_5, %c0_6] : memref<48x38xf32, #tpu.memory_space<vmem>>, vector<48x38xf32>
    %c0_7 = arith.constant 0 : index
    %c0_8 = arith.constant 0 : index
    %5 = vector.load %arg4[%c0_7, %c0_8] : memref<48x24xf32, #tpu.memory_space<vmem>>, vector<48x24xf32>
    %c0_9 = arith.constant 0 : index
    %c0_10 = arith.constant 0 : index
    %6 = vector.load %arg5[%c0_9, %c0_10] : memref<24x48xf32, #tpu.memory_space<vmem>>, vector<24x48xf32>
    %7 = arith.mulf %1, %1 : vector<48x48xf32>
    %8 = arith.mulf %3, %3 : vector<48x48xf32>
    %9 = arith.mulf %1, %3 : vector<48x48xf32>
    %10 = tpu.concatenate %1, %3, %7, %8, %9 in 0 : vector<48x48xf32>, vector<48x48xf32>, vector<48x48xf32>, vector<48x48xf32>, vector<48x48xf32> -> vector<240x48xf32>
    %cst = arith.constant dense<0.000000e+00> : vector<240x38xf32>
    %11 = tpu.matmul %10, %4, %cst {dimension_numbers = #tpu.dot_dimension_numbers<[1], [0], [0], [1], [0, 0, 1, 1], [], []>} : vector<240x48xf32>, vector<48x38xf32>, vector<240x38xf32> -> vector<240x38xf32>
    %cst_11 = arith.constant 0.00102838012 : f32
    %12 = vector.broadcast %cst_11 : f32 to vector<240x38xf32>
    %13 = arith.mulf %12, %11 : vector<240x38xf32>
    %c239_i32 = arith.constant 239 : i32
    %14 = tpu.dynamic_rotate %11 by %c239_i32 dim 0 : vector<240x38xf32>, i32 -> vector<240x38xf32>
    %cst_12 = arith.constant 0.00759875821 : f32
    %15 = vector.broadcast %cst_12 : f32 to vector<240x38xf32>
    %16 = arith.mulf %15, %14 : vector<240x38xf32>
    %17 = arith.addf %13, %16 : vector<240x38xf32>
    %c239_i32_13 = arith.constant 239 : i32
    %18 = tpu.dynamic_rotate %14 by %c239_i32_13 dim 0 : vector<240x38xf32>, i32 -> vector<240x38xf32>
    %cst_14 = arith.constant 0.0360007733 : f32
    %19 = vector.broadcast %cst_14 : f32 to vector<240x38xf32>
    %20 = arith.mulf %19, %18 : vector<240x38xf32>
    %21 = arith.addf %17, %20 : vector<240x38xf32>
    %c239_i32_15 = arith.constant 239 : i32
    %22 = tpu.dynamic_rotate %18 by %c239_i32_15 dim 0 : vector<240x38xf32>, i32 -> vector<240x38xf32>
    %cst_16 = arith.constant 0.109360687 : f32
    %23 = vector.broadcast %cst_16 : f32 to vector<240x38xf32>
    %24 = arith.mulf %23, %22 : vector<240x38xf32>
    %25 = arith.addf %21, %24 : vector<240x38xf32>
    %c239_i32_17 = arith.constant 239 : i32
    %26 = tpu.dynamic_rotate %22 by %c239_i32_17 dim 0 : vector<240x38xf32>, i32 -> vector<240x38xf32>
    %cst_18 = arith.constant 0.213005543 : f32
    %27 = vector.broadcast %cst_18 : f32 to vector<240x38xf32>
    %28 = arith.mulf %27, %26 : vector<240x38xf32>
    %29 = arith.addf %25, %28 : vector<240x38xf32>
    %c239_i32_19 = arith.constant 239 : i32
    %30 = tpu.dynamic_rotate %26 by %c239_i32_19 dim 0 : vector<240x38xf32>, i32 -> vector<240x38xf32>
    %cst_20 = arith.constant 0.266011715 : f32
    %31 = vector.broadcast %cst_20 : f32 to vector<240x38xf32>
    %32 = arith.mulf %31, %30 : vector<240x38xf32>
    %33 = arith.addf %29, %32 : vector<240x38xf32>
    %c239_i32_21 = arith.constant 239 : i32
    %34 = tpu.dynamic_rotate %30 by %c239_i32_21 dim 0 : vector<240x38xf32>, i32 -> vector<240x38xf32>
    %cst_22 = arith.constant 0.213005543 : f32
    %35 = vector.broadcast %cst_22 : f32 to vector<240x38xf32>
    %36 = arith.mulf %35, %34 : vector<240x38xf32>
    %37 = arith.addf %33, %36 : vector<240x38xf32>
    %c239_i32_23 = arith.constant 239 : i32
    %38 = tpu.dynamic_rotate %34 by %c239_i32_23 dim 0 : vector<240x38xf32>, i32 -> vector<240x38xf32>
    %cst_24 = arith.constant 0.109360687 : f32
    %39 = vector.broadcast %cst_24 : f32 to vector<240x38xf32>
    %40 = arith.mulf %39, %38 : vector<240x38xf32>
    %41 = arith.addf %37, %40 : vector<240x38xf32>
    %c239_i32_25 = arith.constant 239 : i32
    %42 = tpu.dynamic_rotate %38 by %c239_i32_25 dim 0 : vector<240x38xf32>, i32 -> vector<240x38xf32>
    %cst_26 = arith.constant 0.0360007733 : f32
    %43 = vector.broadcast %cst_26 : f32 to vector<240x38xf32>
    %44 = arith.mulf %43, %42 : vector<240x38xf32>
    %45 = arith.addf %41, %44 : vector<240x38xf32>
    %c239_i32_27 = arith.constant 239 : i32
    %46 = tpu.dynamic_rotate %42 by %c239_i32_27 dim 0 : vector<240x38xf32>, i32 -> vector<240x38xf32>
    %cst_28 = arith.constant 0.00759875821 : f32
    %47 = vector.broadcast %cst_28 : f32 to vector<240x38xf32>
    %48 = arith.mulf %47, %46 : vector<240x38xf32>
    %49 = arith.addf %45, %48 : vector<240x38xf32>
    %c239_i32_29 = arith.constant 239 : i32
    %50 = tpu.dynamic_rotate %46 by %c239_i32_29 dim 0 : vector<240x38xf32>, i32 -> vector<240x38xf32>
    %cst_30 = arith.constant 0.00102838012 : f32
    %51 = vector.broadcast %cst_30 : f32 to vector<240x38xf32>
    %52 = arith.mulf %51, %50 : vector<240x38xf32>
    %53 = arith.addf %49, %52 : vector<240x38xf32>
    %54 = vector.extract_strided_slice %53 {offsets = [0, 0], sizes = [38, 38], strides = [1, 1]} : vector<240x38xf32> to vector<38x38xf32>
    %55 = vector.extract_strided_slice %53 {offsets = [48, 0], sizes = [38, 38], strides = [1, 1]} : vector<240x38xf32> to vector<38x38xf32>
    %56 = vector.extract_strided_slice %53 {offsets = [96, 0], sizes = [38, 38], strides = [1, 1]} : vector<240x38xf32> to vector<38x38xf32>
    %57 = vector.extract_strided_slice %53 {offsets = [144, 0], sizes = [38, 38], strides = [1, 1]} : vector<240x38xf32> to vector<38x38xf32>
    %58 = vector.extract_strided_slice %53 {offsets = [192, 0], sizes = [38, 38], strides = [1, 1]} : vector<240x38xf32> to vector<38x38xf32>
    %59 = arith.mulf %54, %54 : vector<38x38xf32>
    %60 = arith.mulf %55, %55 : vector<38x38xf32>
    %61 = arith.mulf %54, %55 : vector<38x38xf32>
    %62 = arith.subf %58, %61 : vector<38x38xf32>
    %cst_31 = arith.constant 2.000000e+00 : f32
    %63 = vector.broadcast %cst_31 : f32 to vector<38x38xf32>
    %64 = arith.mulf %63, %62 : vector<38x38xf32>
    %cst_32 = arith.constant 5.852250e+01 : f32
    %65 = vector.broadcast %cst_32 : f32 to vector<38x38xf32>
    %66 = arith.addf %64, %65 : vector<38x38xf32>
    %67 = arith.subf %56, %59 : vector<38x38xf32>
    %68 = arith.subf %57, %60 : vector<38x38xf32>
    %69 = arith.addf %67, %68 : vector<38x38xf32>
    %cst_33 = arith.constant 5.852250e+01 : f32
    %70 = vector.broadcast %cst_33 : f32 to vector<38x38xf32>
    %71 = arith.addf %69, %70 : vector<38x38xf32>
    %cst_34 = arith.constant 2.000000e+00 : f32
    %72 = vector.broadcast %cst_34 : f32 to vector<38x38xf32>
    %73 = arith.mulf %72, %61 : vector<38x38xf32>
    %cst_35 = arith.constant 6.502500e+00 : f32
    %74 = vector.broadcast %cst_35 : f32 to vector<38x38xf32>
    %75 = arith.addf %73, %74 : vector<38x38xf32>
    %76 = arith.mulf %75, %66 : vector<38x38xf32>
    %77 = arith.addf %59, %60 : vector<38x38xf32>
    %cst_36 = arith.constant 6.502500e+00 : f32
    %78 = vector.broadcast %cst_36 : f32 to vector<38x38xf32>
    %79 = arith.addf %77, %78 : vector<38x38xf32>
    %80 = arith.mulf %79, %71 : vector<38x38xf32>
    %81 = arith.divf %76, %80 : vector<38x38xf32>
    %82 = arith.divf %66, %71 : vector<38x38xf32>
    %83 = vector.shape_cast %81 : vector<38x38xf32> to vector<1x38x38xf32>
    %cst_37 = arith.constant dense<0.000000e+00> : vector<1xf32>
    %84 = vector.multi_reduction <add>, %83, %cst_37 [1, 2] : vector<1x38x38xf32> to vector<1xf32>
    %85 = vector.shape_cast %84 : vector<1xf32> to vector<1x1x1xf32>
    %86 = vector.extract %85[0, 0, 0] : f32 from vector<1x1x1xf32>
    %87 = vector.shape_cast %82 : vector<38x38xf32> to vector<1x38x38xf32>
    %cst_38 = arith.constant dense<0.000000e+00> : vector<1xf32>
    %88 = vector.multi_reduction <add>, %87, %cst_38 [1, 2] : vector<1x38x38xf32> to vector<1xf32>
    %89 = vector.shape_cast %88 : vector<1xf32> to vector<1x1x1xf32>
    %90 = vector.extract %89[0, 0, 0] : f32 from vector<1x1x1xf32>
    %cst_39 = arith.constant dense<0.000000e+00> : vector<48x24xf32>
    %91 = tpu.matmul %1, %5, %cst_39 {dimension_numbers = #tpu.dot_dimension_numbers<[1], [0], [0], [1], [0, 0, 1, 1], [], []>} : vector<48x48xf32>, vector<48x24xf32>, vector<48x24xf32> -> vector<48x24xf32>
    %cst_40 = arith.constant dense<0.000000e+00> : vector<24x24xf32>
    %92 = tpu.matmul %6, %91, %cst_40 {dimension_numbers = #tpu.dot_dimension_numbers<[1], [0], [0], [1], [0, 0, 1, 1], [], []>} : vector<24x48xf32>, vector<48x24xf32>, vector<24x24xf32> -> vector<24x24xf32>
    %cst_41 = arith.constant dense<0.000000e+00> : vector<48x24xf32>
    %93 = tpu.matmul %3, %5, %cst_41 {dimension_numbers = #tpu.dot_dimension_numbers<[1], [0], [0], [1], [0, 0, 1, 1], [], []>} : vector<48x48xf32>, vector<48x24xf32>, vector<48x24xf32> -> vector<48x24xf32>
    %cst_42 = arith.constant dense<0.000000e+00> : vector<24x24xf32>
    %94 = tpu.matmul %6, %93, %cst_42 {dimension_numbers = #tpu.dot_dimension_numbers<[1], [0], [0], [1], [0, 0, 1, 1], [], []>} : vector<24x48xf32>, vector<48x24xf32>, vector<24x24xf32> -> vector<24x24xf32>
    %c0_43 = arith.constant 0 : index
    %c0_44 = arith.constant 0 : index
    %95 = vector.load %arg6[%c0_43, %c0_44] : memref<24x14xf32, #tpu.memory_space<vmem>>, vector<24x14xf32>
    %c0_45 = arith.constant 0 : index
    %c0_46 = arith.constant 0 : index
    %96 = vector.load %arg7[%c0_45, %c0_46] : memref<24x12xf32, #tpu.memory_space<vmem>>, vector<24x12xf32>
    %c0_47 = arith.constant 0 : index
    %c0_48 = arith.constant 0 : index
    %97 = vector.load %arg8[%c0_47, %c0_48] : memref<16x24xf32, #tpu.memory_space<vmem>>, vector<16x24xf32>
    %98 = arith.mulf %92, %92 : vector<24x24xf32>
    %99 = arith.mulf %94, %94 : vector<24x24xf32>
    %100 = arith.mulf %92, %94 : vector<24x24xf32>
    %101 = tpu.concatenate %92, %94, %98, %99, %100 in 0 : vector<24x24xf32>, vector<24x24xf32>, vector<24x24xf32>, vector<24x24xf32>, vector<24x24xf32> -> vector<120x24xf32>
    %cst_49 = arith.constant dense<0.000000e+00> : vector<120x14xf32>
    %102 = tpu.matmul %101, %95, %cst_49 {dimension_numbers = #tpu.dot_dimension_numbers<[1], [0], [0], [1], [0, 0, 1, 1], [], []>} : vector<120x24xf32>, vector<24x14xf32>, vector<120x14xf32> -> vector<120x14xf32>
    %cst_50 = arith.constant 0.00102838012 : f32
    %103 = vector.broadcast %cst_50 : f32 to vector<120x14xf32>
    %104 = arith.mulf %103, %102 : vector<120x14xf32>
    %c119_i32 = arith.constant 119 : i32
    %105 = tpu.dynamic_rotate %102 by %c119_i32 dim 0 : vector<120x14xf32>, i32 -> vector<120x14xf32>
    %cst_51 = arith.constant 0.00759875821 : f32
    %106 = vector.broadcast %cst_51 : f32 to vector<120x14xf32>
    %107 = arith.mulf %106, %105 : vector<120x14xf32>
    %108 = arith.addf %104, %107 : vector<120x14xf32>
    %c119_i32_52 = arith.constant 119 : i32
    %109 = tpu.dynamic_rotate %105 by %c119_i32_52 dim 0 : vector<120x14xf32>, i32 -> vector<120x14xf32>
    %cst_53 = arith.constant 0.0360007733 : f32
    %110 = vector.broadcast %cst_53 : f32 to vector<120x14xf32>
    %111 = arith.mulf %110, %109 : vector<120x14xf32>
    %112 = arith.addf %108, %111 : vector<120x14xf32>
    %c119_i32_54 = arith.constant 119 : i32
    %113 = tpu.dynamic_rotate %109 by %c119_i32_54 dim 0 : vector<120x14xf32>, i32 -> vector<120x14xf32>
    %cst_55 = arith.constant 0.109360687 : f32
    %114 = vector.broadcast %cst_55 : f32 to vector<120x14xf32>
    %115 = arith.mulf %114, %113 : vector<120x14xf32>
    %116 = arith.addf %112, %115 : vector<120x14xf32>
    %c119_i32_56 = arith.constant 119 : i32
    %117 = tpu.dynamic_rotate %113 by %c119_i32_56 dim 0 : vector<120x14xf32>, i32 -> vector<120x14xf32>
    %cst_57 = arith.constant 0.213005543 : f32
    %118 = vector.broadcast %cst_57 : f32 to vector<120x14xf32>
    %119 = arith.mulf %118, %117 : vector<120x14xf32>
    %120 = arith.addf %116, %119 : vector<120x14xf32>
    %c119_i32_58 = arith.constant 119 : i32
    %121 = tpu.dynamic_rotate %117 by %c119_i32_58 dim 0 : vector<120x14xf32>, i32 -> vector<120x14xf32>
    %cst_59 = arith.constant 0.266011715 : f32
    %122 = vector.broadcast %cst_59 : f32 to vector<120x14xf32>
    %123 = arith.mulf %122, %121 : vector<120x14xf32>
    %124 = arith.addf %120, %123 : vector<120x14xf32>
    %c119_i32_60 = arith.constant 119 : i32
    %125 = tpu.dynamic_rotate %121 by %c119_i32_60 dim 0 : vector<120x14xf32>, i32 -> vector<120x14xf32>
    %cst_61 = arith.constant 0.213005543 : f32
    %126 = vector.broadcast %cst_61 : f32 to vector<120x14xf32>
    %127 = arith.mulf %126, %125 : vector<120x14xf32>
    %128 = arith.addf %124, %127 : vector<120x14xf32>
    %c119_i32_62 = arith.constant 119 : i32
    %129 = tpu.dynamic_rotate %125 by %c119_i32_62 dim 0 : vector<120x14xf32>, i32 -> vector<120x14xf32>
    %cst_63 = arith.constant 0.109360687 : f32
    %130 = vector.broadcast %cst_63 : f32 to vector<120x14xf32>
    %131 = arith.mulf %130, %129 : vector<120x14xf32>
    %132 = arith.addf %128, %131 : vector<120x14xf32>
    %c119_i32_64 = arith.constant 119 : i32
    %133 = tpu.dynamic_rotate %129 by %c119_i32_64 dim 0 : vector<120x14xf32>, i32 -> vector<120x14xf32>
    %cst_65 = arith.constant 0.0360007733 : f32
    %134 = vector.broadcast %cst_65 : f32 to vector<120x14xf32>
    %135 = arith.mulf %134, %133 : vector<120x14xf32>
    %136 = arith.addf %132, %135 : vector<120x14xf32>
    %c119_i32_66 = arith.constant 119 : i32
    %137 = tpu.dynamic_rotate %133 by %c119_i32_66 dim 0 : vector<120x14xf32>, i32 -> vector<120x14xf32>
    %cst_67 = arith.constant 0.00759875821 : f32
    %138 = vector.broadcast %cst_67 : f32 to vector<120x14xf32>
    %139 = arith.mulf %138, %137 : vector<120x14xf32>
    %140 = arith.addf %136, %139 : vector<120x14xf32>
    %c119_i32_68 = arith.constant 119 : i32
    %141 = tpu.dynamic_rotate %137 by %c119_i32_68 dim 0 : vector<120x14xf32>, i32 -> vector<120x14xf32>
    %cst_69 = arith.constant 0.00102838012 : f32
    %142 = vector.broadcast %cst_69 : f32 to vector<120x14xf32>
    %143 = arith.mulf %142, %141 : vector<120x14xf32>
    %144 = arith.addf %140, %143 : vector<120x14xf32>
    %145 = vector.extract_strided_slice %144 {offsets = [0, 0], sizes = [14, 14], strides = [1, 1]} : vector<120x14xf32> to vector<14x14xf32>
    %146 = vector.extract_strided_slice %144 {offsets = [24, 0], sizes = [14, 14], strides = [1, 1]} : vector<120x14xf32> to vector<14x14xf32>
    %147 = vector.extract_strided_slice %144 {offsets = [48, 0], sizes = [14, 14], strides = [1, 1]} : vector<120x14xf32> to vector<14x14xf32>
    %148 = vector.extract_strided_slice %144 {offsets = [72, 0], sizes = [14, 14], strides = [1, 1]} : vector<120x14xf32> to vector<14x14xf32>
    %149 = vector.extract_strided_slice %144 {offsets = [96, 0], sizes = [14, 14], strides = [1, 1]} : vector<120x14xf32> to vector<14x14xf32>
    %150 = arith.mulf %145, %145 : vector<14x14xf32>
    %151 = arith.mulf %146, %146 : vector<14x14xf32>
    %152 = arith.mulf %145, %146 : vector<14x14xf32>
    %153 = arith.subf %149, %152 : vector<14x14xf32>
    %cst_70 = arith.constant 2.000000e+00 : f32
    %154 = vector.broadcast %cst_70 : f32 to vector<14x14xf32>
    %155 = arith.mulf %154, %153 : vector<14x14xf32>
    %cst_71 = arith.constant 5.852250e+01 : f32
    %156 = vector.broadcast %cst_71 : f32 to vector<14x14xf32>
    %157 = arith.addf %155, %156 : vector<14x14xf32>
    %158 = arith.subf %147, %150 : vector<14x14xf32>
    %159 = arith.subf %148, %151 : vector<14x14xf32>
    %160 = arith.addf %158, %159 : vector<14x14xf32>
    %cst_72 = arith.constant 5.852250e+01 : f32
    %161 = vector.broadcast %cst_72 : f32 to vector<14x14xf32>
    %162 = arith.addf %160, %161 : vector<14x14xf32>
    %cst_73 = arith.constant 2.000000e+00 : f32
    %163 = vector.broadcast %cst_73 : f32 to vector<14x14xf32>
    %164 = arith.mulf %163, %152 : vector<14x14xf32>
    %cst_74 = arith.constant 6.502500e+00 : f32
    %165 = vector.broadcast %cst_74 : f32 to vector<14x14xf32>
    %166 = arith.addf %164, %165 : vector<14x14xf32>
    %167 = arith.mulf %166, %157 : vector<14x14xf32>
    %168 = arith.addf %150, %151 : vector<14x14xf32>
    %cst_75 = arith.constant 6.502500e+00 : f32
    %169 = vector.broadcast %cst_75 : f32 to vector<14x14xf32>
    %170 = arith.addf %168, %169 : vector<14x14xf32>
    %171 = arith.mulf %170, %162 : vector<14x14xf32>
    %172 = arith.divf %167, %171 : vector<14x14xf32>
    %173 = arith.divf %157, %162 : vector<14x14xf32>
    %174 = vector.shape_cast %172 : vector<14x14xf32> to vector<1x14x14xf32>
    %cst_76 = arith.constant dense<0.000000e+00> : vector<1xf32>
    %175 = vector.multi_reduction <add>, %174, %cst_76 [1, 2] : vector<1x14x14xf32> to vector<1xf32>
    %176 = vector.shape_cast %175 : vector<1xf32> to vector<1x1x1xf32>
    %177 = vector.extract %176[0, 0, 0] : f32 from vector<1x1x1xf32>
    %178 = vector.shape_cast %173 : vector<14x14xf32> to vector<1x14x14xf32>
    %cst_77 = arith.constant dense<0.000000e+00> : vector<1xf32>
    %179 = vector.multi_reduction <add>, %178, %cst_77 [1, 2] : vector<1x14x14xf32> to vector<1xf32>
    %180 = vector.shape_cast %179 : vector<1xf32> to vector<1x1x1xf32>
    %181 = vector.extract %180[0, 0, 0] : f32 from vector<1x1x1xf32>
    %cst_78 = arith.constant dense<0.000000e+00> : vector<24x12xf32>
    %182 = tpu.matmul %92, %96, %cst_78 {dimension_numbers = #tpu.dot_dimension_numbers<[1], [0], [0], [1], [0, 0, 1, 1], [], []>} : vector<24x24xf32>, vector<24x12xf32>, vector<24x12xf32> -> vector<24x12xf32>
    %cst_79 = arith.constant dense<0.000000e+00> : vector<16x12xf32>
    %183 = tpu.matmul %97, %182, %cst_79 {dimension_numbers = #tpu.dot_dimension_numbers<[1], [0], [0], [1], [0, 0, 1, 1], [], []>} : vector<16x24xf32>, vector<24x12xf32>, vector<16x12xf32> -> vector<16x12xf32>
    %cst_80 = arith.constant dense<0.000000e+00> : vector<24x12xf32>
    %184 = tpu.matmul %94, %96, %cst_80 {dimension_numbers = #tpu.dot_dimension_numbers<[1], [0], [0], [1], [0, 0, 1, 1], [], []>} : vector<24x24xf32>, vector<24x12xf32>, vector<24x12xf32> -> vector<24x12xf32>
    %cst_81 = arith.constant dense<0.000000e+00> : vector<16x12xf32>
    %185 = tpu.matmul %97, %184, %cst_81 {dimension_numbers = #tpu.dot_dimension_numbers<[1], [0], [0], [1], [0, 0, 1, 1], [], []>} : vector<16x24xf32>, vector<24x12xf32>, vector<16x12xf32> -> vector<16x12xf32>
    %c0_82 = arith.constant 0 : index
    %c0_83 = arith.constant 0 : index
    %186 = vector.load %arg9[%c0_82, %c0_83] : memref<12x2xf32, #tpu.memory_space<vmem>>, vector<12x2xf32>
    %c0_84 = arith.constant 0 : index
    %c0_85 = arith.constant 0 : index
    %187 = vector.load %arg10[%c0_84, %c0_85] : memref<12x6xf32, #tpu.memory_space<vmem>>, vector<12x6xf32>
    %c0_86 = arith.constant 0 : index
    %c0_87 = arith.constant 0 : index
    %188 = vector.load %arg11[%c0_86, %c0_87] : memref<8x16xf32, #tpu.memory_space<vmem>>, vector<8x16xf32>
    %189 = arith.mulf %183, %183 : vector<16x12xf32>
    %190 = arith.mulf %185, %185 : vector<16x12xf32>
    %191 = arith.mulf %183, %185 : vector<16x12xf32>
    %192 = tpu.concatenate %183, %185, %189, %190, %191 in 0 : vector<16x12xf32>, vector<16x12xf32>, vector<16x12xf32>, vector<16x12xf32>, vector<16x12xf32> -> vector<80x12xf32>
    %cst_88 = arith.constant dense<0.000000e+00> : vector<80x2xf32>
    %193 = tpu.matmul %192, %186, %cst_88 {dimension_numbers = #tpu.dot_dimension_numbers<[1], [0], [0], [1], [0, 0, 1, 1], [], []>} : vector<80x12xf32>, vector<12x2xf32>, vector<80x2xf32> -> vector<80x2xf32>
    %cst_89 = arith.constant 0.00102838012 : f32
    %194 = vector.broadcast %cst_89 : f32 to vector<80x2xf32>
    %195 = arith.mulf %194, %193 : vector<80x2xf32>
    %c79_i32 = arith.constant 79 : i32
    %196 = tpu.dynamic_rotate %193 by %c79_i32 dim 0 : vector<80x2xf32>, i32 -> vector<80x2xf32>
    %cst_90 = arith.constant 0.00759875821 : f32
    %197 = vector.broadcast %cst_90 : f32 to vector<80x2xf32>
    %198 = arith.mulf %197, %196 : vector<80x2xf32>
    %199 = arith.addf %195, %198 : vector<80x2xf32>
    %c79_i32_91 = arith.constant 79 : i32
    %200 = tpu.dynamic_rotate %196 by %c79_i32_91 dim 0 : vector<80x2xf32>, i32 -> vector<80x2xf32>
    %cst_92 = arith.constant 0.0360007733 : f32
    %201 = vector.broadcast %cst_92 : f32 to vector<80x2xf32>
    %202 = arith.mulf %201, %200 : vector<80x2xf32>
    %203 = arith.addf %199, %202 : vector<80x2xf32>
    %c79_i32_93 = arith.constant 79 : i32
    %204 = tpu.dynamic_rotate %200 by %c79_i32_93 dim 0 : vector<80x2xf32>, i32 -> vector<80x2xf32>
    %cst_94 = arith.constant 0.109360687 : f32
    %205 = vector.broadcast %cst_94 : f32 to vector<80x2xf32>
    %206 = arith.mulf %205, %204 : vector<80x2xf32>
    %207 = arith.addf %203, %206 : vector<80x2xf32>
    %c79_i32_95 = arith.constant 79 : i32
    %208 = tpu.dynamic_rotate %204 by %c79_i32_95 dim 0 : vector<80x2xf32>, i32 -> vector<80x2xf32>
    %cst_96 = arith.constant 0.213005543 : f32
    %209 = vector.broadcast %cst_96 : f32 to vector<80x2xf32>
    %210 = arith.mulf %209, %208 : vector<80x2xf32>
    %211 = arith.addf %207, %210 : vector<80x2xf32>
    %c79_i32_97 = arith.constant 79 : i32
    %212 = tpu.dynamic_rotate %208 by %c79_i32_97 dim 0 : vector<80x2xf32>, i32 -> vector<80x2xf32>
    %cst_98 = arith.constant 0.266011715 : f32
    %213 = vector.broadcast %cst_98 : f32 to vector<80x2xf32>
    %214 = arith.mulf %213, %212 : vector<80x2xf32>
    %215 = arith.addf %211, %214 : vector<80x2xf32>
    %c79_i32_99 = arith.constant 79 : i32
    %216 = tpu.dynamic_rotate %212 by %c79_i32_99 dim 0 : vector<80x2xf32>, i32 -> vector<80x2xf32>
    %cst_100 = arith.constant 0.213005543 : f32
    %217 = vector.broadcast %cst_100 : f32 to vector<80x2xf32>
    %218 = arith.mulf %217, %216 : vector<80x2xf32>
    %219 = arith.addf %215, %218 : vector<80x2xf32>
    %c79_i32_101 = arith.constant 79 : i32
    %220 = tpu.dynamic_rotate %216 by %c79_i32_101 dim 0 : vector<80x2xf32>, i32 -> vector<80x2xf32>
    %cst_102 = arith.constant 0.109360687 : f32
    %221 = vector.broadcast %cst_102 : f32 to vector<80x2xf32>
    %222 = arith.mulf %221, %220 : vector<80x2xf32>
    %223 = arith.addf %219, %222 : vector<80x2xf32>
    %c79_i32_103 = arith.constant 79 : i32
    %224 = tpu.dynamic_rotate %220 by %c79_i32_103 dim 0 : vector<80x2xf32>, i32 -> vector<80x2xf32>
    %cst_104 = arith.constant 0.0360007733 : f32
    %225 = vector.broadcast %cst_104 : f32 to vector<80x2xf32>
    %226 = arith.mulf %225, %224 : vector<80x2xf32>
    %227 = arith.addf %223, %226 : vector<80x2xf32>
    %c79_i32_105 = arith.constant 79 : i32
    %228 = tpu.dynamic_rotate %224 by %c79_i32_105 dim 0 : vector<80x2xf32>, i32 -> vector<80x2xf32>
    %cst_106 = arith.constant 0.00759875821 : f32
    %229 = vector.broadcast %cst_106 : f32 to vector<80x2xf32>
    %230 = arith.mulf %229, %228 : vector<80x2xf32>
    %231 = arith.addf %227, %230 : vector<80x2xf32>
    %c79_i32_107 = arith.constant 79 : i32
    %232 = tpu.dynamic_rotate %228 by %c79_i32_107 dim 0 : vector<80x2xf32>, i32 -> vector<80x2xf32>
    %cst_108 = arith.constant 0.00102838012 : f32
    %233 = vector.broadcast %cst_108 : f32 to vector<80x2xf32>
    %234 = arith.mulf %233, %232 : vector<80x2xf32>
    %235 = arith.addf %231, %234 : vector<80x2xf32>
    %236 = vector.extract_strided_slice %235 {offsets = [0, 0], sizes = [2, 2], strides = [1, 1]} : vector<80x2xf32> to vector<2x2xf32>
    %237 = vector.extract_strided_slice %235 {offsets = [16, 0], sizes = [2, 2], strides = [1, 1]} : vector<80x2xf32> to vector<2x2xf32>
    %238 = vector.extract_strided_slice %235 {offsets = [32, 0], sizes = [2, 2], strides = [1, 1]} : vector<80x2xf32> to vector<2x2xf32>
    %239 = vector.extract_strided_slice %235 {offsets = [48, 0], sizes = [2, 2], strides = [1, 1]} : vector<80x2xf32> to vector<2x2xf32>
    %240 = vector.extract_strided_slice %235 {offsets = [64, 0], sizes = [2, 2], strides = [1, 1]} : vector<80x2xf32> to vector<2x2xf32>
    %241 = arith.mulf %236, %236 : vector<2x2xf32>
    %242 = arith.mulf %237, %237 : vector<2x2xf32>
    %243 = arith.mulf %236, %237 : vector<2x2xf32>
    %244 = arith.subf %240, %243 : vector<2x2xf32>
    %cst_109 = arith.constant 2.000000e+00 : f32
    %245 = vector.broadcast %cst_109 : f32 to vector<2x2xf32>
    %246 = arith.mulf %245, %244 : vector<2x2xf32>
    %cst_110 = arith.constant 5.852250e+01 : f32
    %247 = vector.broadcast %cst_110 : f32 to vector<2x2xf32>
    %248 = arith.addf %246, %247 : vector<2x2xf32>
    %249 = arith.subf %238, %241 : vector<2x2xf32>
    %250 = arith.subf %239, %242 : vector<2x2xf32>
    %251 = arith.addf %249, %250 : vector<2x2xf32>
    %cst_111 = arith.constant 5.852250e+01 : f32
    %252 = vector.broadcast %cst_111 : f32 to vector<2x2xf32>
    %253 = arith.addf %251, %252 : vector<2x2xf32>
    %cst_112 = arith.constant 2.000000e+00 : f32
    %254 = vector.broadcast %cst_112 : f32 to vector<2x2xf32>
    %255 = arith.mulf %254, %243 : vector<2x2xf32>
    %cst_113 = arith.constant 6.502500e+00 : f32
    %256 = vector.broadcast %cst_113 : f32 to vector<2x2xf32>
    %257 = arith.addf %255, %256 : vector<2x2xf32>
    %258 = arith.mulf %257, %248 : vector<2x2xf32>
    %259 = arith.addf %241, %242 : vector<2x2xf32>
    %cst_114 = arith.constant 6.502500e+00 : f32
    %260 = vector.broadcast %cst_114 : f32 to vector<2x2xf32>
    %261 = arith.addf %259, %260 : vector<2x2xf32>
    %262 = arith.mulf %261, %253 : vector<2x2xf32>
    %263 = arith.divf %258, %262 : vector<2x2xf32>
    %264 = arith.divf %248, %253 : vector<2x2xf32>
    %265 = vector.shape_cast %263 : vector<2x2xf32> to vector<1x2x2xf32>
    %cst_115 = arith.constant dense<0.000000e+00> : vector<1xf32>
    %266 = vector.multi_reduction <add>, %265, %cst_115 [1, 2] : vector<1x2x2xf32> to vector<1xf32>
    %267 = vector.shape_cast %266 : vector<1xf32> to vector<1x1x1xf32>
    %268 = vector.extract %267[0, 0, 0] : f32 from vector<1x1x1xf32>
    %269 = vector.shape_cast %264 : vector<2x2xf32> to vector<1x2x2xf32>
    %cst_116 = arith.constant dense<0.000000e+00> : vector<1xf32>
    %270 = vector.multi_reduction <add>, %269, %cst_116 [1, 2] : vector<1x2x2xf32> to vector<1xf32>
    %271 = vector.shape_cast %270 : vector<1xf32> to vector<1x1x1xf32>
    %272 = vector.extract %271[0, 0, 0] : f32 from vector<1x1x1xf32>
    %cst_117 = arith.constant dense<0.000000e+00> : vector<16x6xf32>
    %273 = tpu.matmul %183, %187, %cst_117 {dimension_numbers = #tpu.dot_dimension_numbers<[1], [0], [0], [1], [0, 0, 1, 1], [], []>} : vector<16x12xf32>, vector<12x6xf32>, vector<16x6xf32> -> vector<16x6xf32>
    %cst_118 = arith.constant dense<0.000000e+00> : vector<8x6xf32>
    %274 = tpu.matmul %188, %273, %cst_118 {dimension_numbers = #tpu.dot_dimension_numbers<[1], [0], [0], [1], [0, 0, 1, 1], [], []>} : vector<8x16xf32>, vector<16x6xf32>, vector<8x6xf32> -> vector<8x6xf32>
    %cst_119 = arith.constant dense<0.000000e+00> : vector<16x6xf32>
    %275 = tpu.matmul %185, %187, %cst_119 {dimension_numbers = #tpu.dot_dimension_numbers<[1], [0], [0], [1], [0, 0, 1, 1], [], []>} : vector<16x12xf32>, vector<12x6xf32>, vector<16x6xf32> -> vector<16x6xf32>
    %cst_120 = arith.constant dense<0.000000e+00> : vector<8x6xf32>
    %276 = tpu.matmul %188, %275, %cst_120 {dimension_numbers = #tpu.dot_dimension_numbers<[1], [0], [0], [1], [0, 0, 1, 1], [], []>} : vector<8x16xf32>, vector<16x6xf32>, vector<8x6xf32> -> vector<8x6xf32>
    %c0_121 = arith.constant 0 : index
    %c0_122 = arith.constant 0 : index
    %277 = vector.load %arg12[%c0_121, %c0_122] : memref<6x3xf32, #tpu.memory_space<vmem>>, vector<6x3xf32>
    %c0_123 = arith.constant 0 : index
    %c0_124 = arith.constant 0 : index
    %278 = vector.load %arg13[%c0_123, %c0_124] : memref<6x3xf32, #tpu.memory_space<vmem>>, vector<6x3xf32>
    %c0_125 = arith.constant 0 : index
    %c0_126 = arith.constant 0 : index
    %279 = vector.load %arg14[%c0_125, %c0_126] : memref<8x8xf32, #tpu.memory_space<vmem>>, vector<8x8xf32>
    %280 = arith.mulf %274, %274 : vector<8x6xf32>
    %281 = arith.mulf %276, %276 : vector<8x6xf32>
    %282 = arith.mulf %274, %276 : vector<8x6xf32>
    %283 = tpu.concatenate %274, %276, %280, %281, %282 in 0 : vector<8x6xf32>, vector<8x6xf32>, vector<8x6xf32>, vector<8x6xf32>, vector<8x6xf32> -> vector<40x6xf32>
    %cst_127 = arith.constant dense<0.000000e+00> : vector<40x3xf32>
    %284 = tpu.matmul %283, %277, %cst_127 {dimension_numbers = #tpu.dot_dimension_numbers<[1], [0], [0], [1], [0, 0, 1, 1], [], []>} : vector<40x6xf32>, vector<6x3xf32>, vector<40x3xf32> -> vector<40x3xf32>
    %cst_128 = arith.constant 5.87343762E-4 : f32
    %285 = vector.broadcast %cst_128 : f32 to vector<40x3xf32>
    %286 = arith.mulf %285, %284 : vector<40x3xf32>
    %c39_i32 = arith.constant 39 : i32
    %287 = tpu.dynamic_rotate %284 by %c39_i32 dim 0 : vector<40x3xf32>, i32 -> vector<40x3xf32>
    %cst_129 = arith.constant 0.0245920438 : f32
    %288 = vector.broadcast %cst_129 : f32 to vector<40x3xf32>
    %289 = arith.mulf %288, %287 : vector<40x3xf32>
    %290 = arith.addf %286, %289 : vector<40x3xf32>
    %c39_i32_130 = arith.constant 39 : i32
    %291 = tpu.dynamic_rotate %287 by %c39_i32_130 dim 0 : vector<40x3xf32>, i32 -> vector<40x3xf32>
    %cst_131 = arith.constant 0.231172383 : f32
    %292 = vector.broadcast %cst_131 : f32 to vector<40x3xf32>
    %293 = arith.mulf %292, %291 : vector<40x3xf32>
    %294 = arith.addf %290, %293 : vector<40x3xf32>
    %c39_i32_132 = arith.constant 39 : i32
    %295 = tpu.dynamic_rotate %291 by %c39_i32_132 dim 0 : vector<40x3xf32>, i32 -> vector<40x3xf32>
    %cst_133 = arith.constant 0.487883806 : f32
    %296 = vector.broadcast %cst_133 : f32 to vector<40x3xf32>
    %297 = arith.mulf %296, %295 : vector<40x3xf32>
    %298 = arith.addf %294, %297 : vector<40x3xf32>
    %c39_i32_134 = arith.constant 39 : i32
    %299 = tpu.dynamic_rotate %295 by %c39_i32_134 dim 0 : vector<40x3xf32>, i32 -> vector<40x3xf32>
    %cst_135 = arith.constant 0.231172383 : f32
    %300 = vector.broadcast %cst_135 : f32 to vector<40x3xf32>
    %301 = arith.mulf %300, %299 : vector<40x3xf32>
    %302 = arith.addf %298, %301 : vector<40x3xf32>
    %c39_i32_136 = arith.constant 39 : i32
    %303 = tpu.dynamic_rotate %299 by %c39_i32_136 dim 0 : vector<40x3xf32>, i32 -> vector<40x3xf32>
    %cst_137 = arith.constant 0.0245920438 : f32
    %304 = vector.broadcast %cst_137 : f32 to vector<40x3xf32>
    %305 = arith.mulf %304, %303 : vector<40x3xf32>
    %306 = arith.addf %302, %305 : vector<40x3xf32>
    %307 = vector.extract_strided_slice %306 {offsets = [0, 0], sizes = [3, 3], strides = [1, 1]} : vector<40x3xf32> to vector<3x3xf32>
    %308 = vector.extract_strided_slice %306 {offsets = [8, 0], sizes = [3, 3], strides = [1, 1]} : vector<40x3xf32> to vector<3x3xf32>
    %309 = vector.extract_strided_slice %306 {offsets = [16, 0], sizes = [3, 3], strides = [1, 1]} : vector<40x3xf32> to vector<3x3xf32>
    %310 = vector.extract_strided_slice %306 {offsets = [24, 0], sizes = [3, 3], strides = [1, 1]} : vector<40x3xf32> to vector<3x3xf32>
    %311 = vector.extract_strided_slice %306 {offsets = [32, 0], sizes = [3, 3], strides = [1, 1]} : vector<40x3xf32> to vector<3x3xf32>
    %312 = arith.mulf %307, %307 : vector<3x3xf32>
    %313 = arith.mulf %308, %308 : vector<3x3xf32>
    %314 = arith.mulf %307, %308 : vector<3x3xf32>
    %315 = arith.subf %311, %314 : vector<3x3xf32>
    %cst_138 = arith.constant 2.000000e+00 : f32
    %316 = vector.broadcast %cst_138 : f32 to vector<3x3xf32>
    %317 = arith.mulf %316, %315 : vector<3x3xf32>
    %cst_139 = arith.constant 5.852250e+01 : f32
    %318 = vector.broadcast %cst_139 : f32 to vector<3x3xf32>
    %319 = arith.addf %317, %318 : vector<3x3xf32>
    %320 = arith.subf %309, %312 : vector<3x3xf32>
    %321 = arith.subf %310, %313 : vector<3x3xf32>
    %322 = arith.addf %320, %321 : vector<3x3xf32>
    %cst_140 = arith.constant 5.852250e+01 : f32
    %323 = vector.broadcast %cst_140 : f32 to vector<3x3xf32>
    %324 = arith.addf %322, %323 : vector<3x3xf32>
    %cst_141 = arith.constant 2.000000e+00 : f32
    %325 = vector.broadcast %cst_141 : f32 to vector<3x3xf32>
    %326 = arith.mulf %325, %314 : vector<3x3xf32>
    %cst_142 = arith.constant 6.502500e+00 : f32
    %327 = vector.broadcast %cst_142 : f32 to vector<3x3xf32>
    %328 = arith.addf %326, %327 : vector<3x3xf32>
    %329 = arith.mulf %328, %319 : vector<3x3xf32>
    %330 = arith.addf %312, %313 : vector<3x3xf32>
    %cst_143 = arith.constant 6.502500e+00 : f32
    %331 = vector.broadcast %cst_143 : f32 to vector<3x3xf32>
    %332 = arith.addf %330, %331 : vector<3x3xf32>
    %333 = arith.mulf %332, %324 : vector<3x3xf32>
    %334 = arith.divf %329, %333 : vector<3x3xf32>
    %335 = arith.divf %319, %324 : vector<3x3xf32>
    %336 = vector.shape_cast %334 : vector<3x3xf32> to vector<1x3x3xf32>
    %cst_144 = arith.constant dense<0.000000e+00> : vector<1xf32>
    %337 = vector.multi_reduction <add>, %336, %cst_144 [1, 2] : vector<1x3x3xf32> to vector<1xf32>
    %338 = vector.shape_cast %337 : vector<1xf32> to vector<1x1x1xf32>
    %339 = vector.extract %338[0, 0, 0] : f32 from vector<1x1x1xf32>
    %340 = vector.shape_cast %335 : vector<3x3xf32> to vector<1x3x3xf32>
    %cst_145 = arith.constant dense<0.000000e+00> : vector<1xf32>
    %341 = vector.multi_reduction <add>, %340, %cst_145 [1, 2] : vector<1x3x3xf32> to vector<1xf32>
    %342 = vector.shape_cast %341 : vector<1xf32> to vector<1x1x1xf32>
    %343 = vector.extract %342[0, 0, 0] : f32 from vector<1x1x1xf32>
    %cst_146 = arith.constant dense<0.000000e+00> : vector<8x3xf32>
    %344 = tpu.matmul %274, %278, %cst_146 {dimension_numbers = #tpu.dot_dimension_numbers<[1], [0], [0], [1], [0, 0, 1, 1], [], []>} : vector<8x6xf32>, vector<6x3xf32>, vector<8x3xf32> -> vector<8x3xf32>
    %cst_147 = arith.constant dense<0.000000e+00> : vector<8x3xf32>
    %345 = tpu.matmul %279, %344, %cst_147 {dimension_numbers = #tpu.dot_dimension_numbers<[1], [0], [0], [1], [0, 0, 1, 1], [], []>} : vector<8x8xf32>, vector<8x3xf32>, vector<8x3xf32> -> vector<8x3xf32>
    %cst_148 = arith.constant dense<0.000000e+00> : vector<8x3xf32>
    %346 = tpu.matmul %276, %278, %cst_148 {dimension_numbers = #tpu.dot_dimension_numbers<[1], [0], [0], [1], [0, 0, 1, 1], [], []>} : vector<8x6xf32>, vector<6x3xf32>, vector<8x3xf32> -> vector<8x3xf32>
    %cst_149 = arith.constant dense<0.000000e+00> : vector<8x3xf32>
    %347 = tpu.matmul %279, %346, %cst_149 {dimension_numbers = #tpu.dot_dimension_numbers<[1], [0], [0], [1], [0, 0, 1, 1], [], []>} : vector<8x8xf32>, vector<8x3xf32>, vector<8x3xf32> -> vector<8x3xf32>
    %c0_150 = arith.constant 0 : index
    %c0_151 = arith.constant 0 : index
    %348 = vector.load %arg15[%c0_150, %c0_151] : memref<3x1xf32, #tpu.memory_space<vmem>>, vector<3x1xf32>
    %349 = arith.mulf %345, %345 : vector<8x3xf32>
    %350 = arith.mulf %347, %347 : vector<8x3xf32>
    %351 = arith.mulf %345, %347 : vector<8x3xf32>
    %352 = tpu.concatenate %345, %347, %349, %350, %351 in 0 : vector<8x3xf32>, vector<8x3xf32>, vector<8x3xf32>, vector<8x3xf32>, vector<8x3xf32> -> vector<40x3xf32>
    %cst_152 = arith.constant dense<0.000000e+00> : vector<40x1xf32>
    %353 = tpu.matmul %352, %348, %cst_152 {dimension_numbers = #tpu.dot_dimension_numbers<[1], [0], [0], [1], [0, 0, 1, 1], [], []>} : vector<40x3xf32>, vector<3x1xf32>, vector<40x1xf32> -> vector<40x1xf32>
    %cst_153 = arith.constant 0.0457894504 : f32
    %354 = vector.broadcast %cst_153 : f32 to vector<40x1xf32>
    %355 = arith.mulf %354, %353 : vector<40x1xf32>
    %c39_i32_154 = arith.constant 39 : i32
    %356 = tpu.dynamic_rotate %353 by %c39_i32_154 dim 0 : vector<40x1xf32>, i32 -> vector<40x1xf32>
    %cst_155 = arith.constant 0.908421099 : f32
    %357 = vector.broadcast %cst_155 : f32 to vector<40x1xf32>
    %358 = arith.mulf %357, %356 : vector<40x1xf32>
    %359 = arith.addf %355, %358 : vector<40x1xf32>
    %c39_i32_156 = arith.constant 39 : i32
    %360 = tpu.dynamic_rotate %356 by %c39_i32_156 dim 0 : vector<40x1xf32>, i32 -> vector<40x1xf32>
    %cst_157 = arith.constant 0.0457894504 : f32
    %361 = vector.broadcast %cst_157 : f32 to vector<40x1xf32>
    %362 = arith.mulf %361, %360 : vector<40x1xf32>
    %363 = arith.addf %359, %362 : vector<40x1xf32>
    %364 = vector.extract_strided_slice %363 {offsets = [0, 0], sizes = [1, 1], strides = [1, 1]} : vector<40x1xf32> to vector<1x1xf32>
    %365 = vector.extract_strided_slice %363 {offsets = [8, 0], sizes = [1, 1], strides = [1, 1]} : vector<40x1xf32> to vector<1x1xf32>
    %366 = vector.extract_strided_slice %363 {offsets = [16, 0], sizes = [1, 1], strides = [1, 1]} : vector<40x1xf32> to vector<1x1xf32>
    %367 = vector.extract_strided_slice %363 {offsets = [24, 0], sizes = [1, 1], strides = [1, 1]} : vector<40x1xf32> to vector<1x1xf32>
    %368 = vector.extract_strided_slice %363 {offsets = [32, 0], sizes = [1, 1], strides = [1, 1]} : vector<40x1xf32> to vector<1x1xf32>
    %369 = arith.mulf %364, %364 : vector<1x1xf32>
    %370 = arith.mulf %365, %365 : vector<1x1xf32>
    %371 = arith.mulf %364, %365 : vector<1x1xf32>
    %372 = arith.subf %368, %371 : vector<1x1xf32>
    %cst_158 = arith.constant 2.000000e+00 : f32
    %373 = vector.broadcast %cst_158 : f32 to vector<1x1xf32>
    %374 = arith.mulf %373, %372 : vector<1x1xf32>
    %cst_159 = arith.constant 5.852250e+01 : f32
    %375 = vector.broadcast %cst_159 : f32 to vector<1x1xf32>
    %376 = arith.addf %374, %375 : vector<1x1xf32>
    %377 = arith.subf %366, %369 : vector<1x1xf32>
    %378 = arith.subf %367, %370 : vector<1x1xf32>
    %379 = arith.addf %377, %378 : vector<1x1xf32>
    %cst_160 = arith.constant 5.852250e+01 : f32
    %380 = vector.broadcast %cst_160 : f32 to vector<1x1xf32>
    %381 = arith.addf %379, %380 : vector<1x1xf32>
    %cst_161 = arith.constant 2.000000e+00 : f32
    %382 = vector.broadcast %cst_161 : f32 to vector<1x1xf32>
    %383 = arith.mulf %382, %371 : vector<1x1xf32>
    %cst_162 = arith.constant 6.502500e+00 : f32
    %384 = vector.broadcast %cst_162 : f32 to vector<1x1xf32>
    %385 = arith.addf %383, %384 : vector<1x1xf32>
    %386 = arith.mulf %385, %376 : vector<1x1xf32>
    %387 = arith.addf %369, %370 : vector<1x1xf32>
    %cst_163 = arith.constant 6.502500e+00 : f32
    %388 = vector.broadcast %cst_163 : f32 to vector<1x1xf32>
    %389 = arith.addf %387, %388 : vector<1x1xf32>
    %390 = arith.mulf %389, %381 : vector<1x1xf32>
    %391 = arith.divf %386, %390 : vector<1x1xf32>
    %392 = arith.divf %376, %381 : vector<1x1xf32>
    %393 = vector.shape_cast %391 : vector<1x1xf32> to vector<1x1x1xf32>
    %cst_164 = arith.constant dense<0.000000e+00> : vector<1xf32>
    %394 = vector.multi_reduction <add>, %393, %cst_164 [1, 2] : vector<1x1x1xf32> to vector<1xf32>
    %395 = vector.shape_cast %394 : vector<1xf32> to vector<1x1x1xf32>
    %396 = vector.extract %395[0, 0, 0] : f32 from vector<1x1x1xf32>
    %397 = vector.shape_cast %392 : vector<1x1xf32> to vector<1x1x1xf32>
    %cst_165 = arith.constant dense<0.000000e+00> : vector<1xf32>
    %398 = vector.multi_reduction <add>, %397, %cst_165 [1, 2] : vector<1x1x1xf32> to vector<1xf32>
    %399 = vector.shape_cast %398 : vector<1xf32> to vector<1x1x1xf32>
    %400 = vector.extract %399[0, 0, 0] : f32 from vector<1x1x1xf32>
    %401 = tpu.iota {dimensions = array<i32: 1>} : vector<1x10xi32>
    %cst_166 = arith.constant 0.000000e+00 : f32
    %402 = vector.broadcast %cst_166 : f32 to vector<1x10xf32>
    %c0_i32 = arith.constant 0 : i32
    %403 = vector.broadcast %c0_i32 : i32 to vector<1x10xi32>
    %404 = arith.cmpi eq, %401, %403 : vector<1x10xi32>
    %405 = arith.extui %404 : vector<1x10xi1> to vector<1x10xi32>
    %406 = arith.sitofp %405 : vector<1x10xi32> to vector<1x10xf32>
    %407 = vector.broadcast %86 : f32 to vector<1x1xf32>
    %408 = vector.broadcast %407 : vector<1x1xf32> to vector<1x10xf32>
    %409 = arith.mulf %406, %408 : vector<1x10xf32>
    %410 = arith.addf %402, %409 : vector<1x10xf32>
    %c1_i32 = arith.constant 1 : i32
    %411 = vector.broadcast %c1_i32 : i32 to vector<1x10xi32>
    %412 = arith.cmpi eq, %401, %411 : vector<1x10xi32>
    %413 = arith.extui %412 : vector<1x10xi1> to vector<1x10xi32>
    %414 = arith.sitofp %413 : vector<1x10xi32> to vector<1x10xf32>
    %415 = vector.broadcast %90 : f32 to vector<1x1xf32>
    %416 = vector.broadcast %415 : vector<1x1xf32> to vector<1x10xf32>
    %417 = arith.mulf %414, %416 : vector<1x10xf32>
    %418 = arith.addf %410, %417 : vector<1x10xf32>
    %c2_i32 = arith.constant 2 : i32
    %419 = vector.broadcast %c2_i32 : i32 to vector<1x10xi32>
    %420 = arith.cmpi eq, %401, %419 : vector<1x10xi32>
    %421 = arith.extui %420 : vector<1x10xi1> to vector<1x10xi32>
    %422 = arith.sitofp %421 : vector<1x10xi32> to vector<1x10xf32>
    %423 = vector.broadcast %177 : f32 to vector<1x1xf32>
    %424 = vector.broadcast %423 : vector<1x1xf32> to vector<1x10xf32>
    %425 = arith.mulf %422, %424 : vector<1x10xf32>
    %426 = arith.addf %418, %425 : vector<1x10xf32>
    %c3_i32 = arith.constant 3 : i32
    %427 = vector.broadcast %c3_i32 : i32 to vector<1x10xi32>
    %428 = arith.cmpi eq, %401, %427 : vector<1x10xi32>
    %429 = arith.extui %428 : vector<1x10xi1> to vector<1x10xi32>
    %430 = arith.sitofp %429 : vector<1x10xi32> to vector<1x10xf32>
    %431 = vector.broadcast %181 : f32 to vector<1x1xf32>
    %432 = vector.broadcast %431 : vector<1x1xf32> to vector<1x10xf32>
    %433 = arith.mulf %430, %432 : vector<1x10xf32>
    %434 = arith.addf %426, %433 : vector<1x10xf32>
    %c4_i32 = arith.constant 4 : i32
    %435 = vector.broadcast %c4_i32 : i32 to vector<1x10xi32>
    %436 = arith.cmpi eq, %401, %435 : vector<1x10xi32>
    %437 = arith.extui %436 : vector<1x10xi1> to vector<1x10xi32>
    %438 = arith.sitofp %437 : vector<1x10xi32> to vector<1x10xf32>
    %439 = vector.broadcast %268 : f32 to vector<1x1xf32>
    %440 = vector.broadcast %439 : vector<1x1xf32> to vector<1x10xf32>
    %441 = arith.mulf %438, %440 : vector<1x10xf32>
    %442 = arith.addf %434, %441 : vector<1x10xf32>
    %c5_i32 = arith.constant 5 : i32
    %443 = vector.broadcast %c5_i32 : i32 to vector<1x10xi32>
    %444 = arith.cmpi eq, %401, %443 : vector<1x10xi32>
    %445 = arith.extui %444 : vector<1x10xi1> to vector<1x10xi32>
    %446 = arith.sitofp %445 : vector<1x10xi32> to vector<1x10xf32>
    %447 = vector.broadcast %272 : f32 to vector<1x1xf32>
    %448 = vector.broadcast %447 : vector<1x1xf32> to vector<1x10xf32>
    %449 = arith.mulf %446, %448 : vector<1x10xf32>
    %450 = arith.addf %442, %449 : vector<1x10xf32>
    %c6_i32 = arith.constant 6 : i32
    %451 = vector.broadcast %c6_i32 : i32 to vector<1x10xi32>
    %452 = arith.cmpi eq, %401, %451 : vector<1x10xi32>
    %453 = arith.extui %452 : vector<1x10xi1> to vector<1x10xi32>
    %454 = arith.sitofp %453 : vector<1x10xi32> to vector<1x10xf32>
    %455 = vector.broadcast %339 : f32 to vector<1x1xf32>
    %456 = vector.broadcast %455 : vector<1x1xf32> to vector<1x10xf32>
    %457 = arith.mulf %454, %456 : vector<1x10xf32>
    %458 = arith.addf %450, %457 : vector<1x10xf32>
    %c7_i32 = arith.constant 7 : i32
    %459 = vector.broadcast %c7_i32 : i32 to vector<1x10xi32>
    %460 = arith.cmpi eq, %401, %459 : vector<1x10xi32>
    %461 = arith.extui %460 : vector<1x10xi1> to vector<1x10xi32>
    %462 = arith.sitofp %461 : vector<1x10xi32> to vector<1x10xf32>
    %463 = vector.broadcast %343 : f32 to vector<1x1xf32>
    %464 = vector.broadcast %463 : vector<1x1xf32> to vector<1x10xf32>
    %465 = arith.mulf %462, %464 : vector<1x10xf32>
    %466 = arith.addf %458, %465 : vector<1x10xf32>
    %c8_i32 = arith.constant 8 : i32
    %467 = vector.broadcast %c8_i32 : i32 to vector<1x10xi32>
    %468 = arith.cmpi eq, %401, %467 : vector<1x10xi32>
    %469 = arith.extui %468 : vector<1x10xi1> to vector<1x10xi32>
    %470 = arith.sitofp %469 : vector<1x10xi32> to vector<1x10xf32>
    %471 = vector.broadcast %396 : f32 to vector<1x1xf32>
    %472 = vector.broadcast %471 : vector<1x1xf32> to vector<1x10xf32>
    %473 = arith.mulf %470, %472 : vector<1x10xf32>
    %474 = arith.addf %466, %473 : vector<1x10xf32>
    %c9_i32 = arith.constant 9 : i32
    %475 = vector.broadcast %c9_i32 : i32 to vector<1x10xi32>
    %476 = arith.cmpi eq, %401, %475 : vector<1x10xi32>
    %477 = arith.extui %476 : vector<1x10xi1> to vector<1x10xi32>
    %478 = arith.sitofp %477 : vector<1x10xi32> to vector<1x10xf32>
    %479 = vector.broadcast %400 : f32 to vector<1x1xf32>
    %480 = vector.broadcast %479 : vector<1x1xf32> to vector<1x10xf32>
    %481 = arith.mulf %478, %480 : vector<1x10xf32>
    %482 = arith.addf %474, %481 : vector<1x10xf32>
    %c0_167 = arith.constant 0 : index
    %c0_168 = arith.constant 0 : index
    %c0_169 = arith.constant 0 : index
    %483 = vector.load %arg16[%c0_167, %c0_168, %c0_169] : memref<1x1x10xf32, #tpu.memory_space<vmem>>, vector<1x1x10xf32>
    %484 = vector.shape_cast %483 : vector<1x1x10xf32> to vector<1x10xf32>
    %485 = vector.shape_cast %482 : vector<1x10xf32> to vector<1x1x10xf32>
    tpu.vector_store %arg16[%c0_167, %c0_168, %c0_169], %485 {strides = array<i32>} : memref<1x1x10xf32, #tpu.memory_space<vmem>>, vector<1x1x10xf32>,
    return
  }
  func.func @transform_0(%arg0: i32) -> (i32, i32, i32) {
    %c0_i32 = arith.constant 0 : i32
    %c0_i32_0 = arith.constant 0 : i32
    %c0_i32_1 = arith.constant 0 : i32
    return %arg0, %c0_i32, %c0_i32_0 : i32, i32, i32
  }
  func.func @transform_1(%arg0: i32) -> (i32, i32, i32) {
    %c0_i32 = arith.constant 0 : i32
    %c0_i32_0 = arith.constant 0 : i32
    %c0_i32_1 = arith.constant 0 : i32
    return %arg0, %c0_i32, %c0_i32_0 : i32, i32, i32
  }
  func.func @transform_2(%arg0: i32) -> (i32, i32) {
    %c0_i32 = arith.constant 0 : i32
    %c0_i32_0 = arith.constant 0 : i32
    %c0_i32_1 = arith.constant 0 : i32
    return %c0_i32, %c0_i32_0 : i32, i32
  }
  func.func @transform_3(%arg0: i32) -> (i32, i32) {
    %c0_i32 = arith.constant 0 : i32
    %c0_i32_0 = arith.constant 0 : i32
    %c0_i32_1 = arith.constant 0 : i32
    return %c0_i32, %c0_i32_0 : i32, i32
  }
  func.func @transform_4(%arg0: i32) -> (i32, i32) {
    %c0_i32 = arith.constant 0 : i32
    %c0_i32_0 = arith.constant 0 : i32
    %c0_i32_1 = arith.constant 0 : i32
    return %c0_i32, %c0_i32_0 : i32, i32
  }
  func.func @transform_5(%arg0: i32) -> (i32, i32) {
    %c0_i32 = arith.constant 0 : i32
    %c0_i32_0 = arith.constant 0 : i32
    %c0_i32_1 = arith.constant 0 : i32
    return %c0_i32, %c0_i32_0 : i32, i32
  }
  func.func @transform_6(%arg0: i32) -> (i32, i32) {
    %c0_i32 = arith.constant 0 : i32
    %c0_i32_0 = arith.constant 0 : i32
    %c0_i32_1 = arith.constant 0 : i32
    return %c0_i32, %c0_i32_0 : i32, i32
  }
  func.func @transform_7(%arg0: i32) -> (i32, i32) {
    %c0_i32 = arith.constant 0 : i32
    %c0_i32_0 = arith.constant 0 : i32
    %c0_i32_1 = arith.constant 0 : i32
    return %c0_i32, %c0_i32_0 : i32, i32
  }
  func.func @transform_8(%arg0: i32) -> (i32, i32) {
    %c0_i32 = arith.constant 0 : i32
    %c0_i32_0 = arith.constant 0 : i32
    %c0_i32_1 = arith.constant 0 : i32
    return %c0_i32, %c0_i32_0 : i32, i32
  }
  func.func @transform_9(%arg0: i32) -> (i32, i32) {
    %c0_i32 = arith.constant 0 : i32
    %c0_i32_0 = arith.constant 0 : i32
    %c0_i32_1 = arith.constant 0 : i32
    return %c0_i32, %c0_i32_0 : i32, i32
  }
  func.func @transform_10(%arg0: i32) -> (i32, i32) {
    %c0_i32 = arith.constant 0 : i32
    %c0_i32_0 = arith.constant 0 : i32
    %c0_i32_1 = arith.constant 0 : i32
    return %c0_i32, %c0_i32_0 : i32, i32
  }
  func.func @transform_11(%arg0: i32) -> (i32, i32) {
    %c0_i32 = arith.constant 0 : i32
    %c0_i32_0 = arith.constant 0 : i32
    %c0_i32_1 = arith.constant 0 : i32
    return %c0_i32, %c0_i32_0 : i32, i32
  }
  func.func @transform_12(%arg0: i32) -> (i32, i32) {
    %c0_i32 = arith.constant 0 : i32
    %c0_i32_0 = arith.constant 0 : i32
    %c0_i32_1 = arith.constant 0 : i32
    return %c0_i32, %c0_i32_0 : i32, i32
  }
  func.func @transform_13(%arg0: i32) -> (i32, i32) {
    %c0_i32 = arith.constant 0 : i32
    %c0_i32_0 = arith.constant 0 : i32
    %c0_i32_1 = arith.constant 0 : i32
    return %c0_i32, %c0_i32_0 : i32, i32
  }
  func.func @transform_14(%arg0: i32) -> (i32, i32) {
    %c0_i32 = arith.constant 0 : i32
    %c0_i32_0 = arith.constant 0 : i32
    %c0_i32_1 = arith.constant 0 : i32
    return %c0_i32, %c0_i32_0 : i32, i32
  }
  func.func @transform_15(%arg0: i32) -> (i32, i32, i32) {
    %c0_i32 = arith.constant 0 : i32
    %c0_i32_0 = arith.constant 0 : i32
    %c0_i32_1 = arith.constant 0 : i32
    return %arg0, %c0_i32, %c0_i32_0 : i32, i32, i32
  }
}

</mosaic_0001>

<bundles_post_ra>
// kernel: _ms_ssim_jit.1
= control target key start
LH: loop header
LB: loop body
LE: loop exit
PB: predicated region body
PF: predicated region fallthrough
CT: control target
= control target key end

     0   :  { %s10580_s0 = inlined_call_operand.hbm [shape: f32[6,48,48], index: 0, kind: input, shape index: {}]   ;;  %s10581_s1 = inlined_call_operand.hbm [shape: f32[6,48,48], index: 1, kind: input, shape index: {}]   ;;  %s10582_s2 = inlined_call_operand.hbm [shape: f32[48,38], index: 2, kind: input, shape index: {}]   ;;  %s10583_s3 = inlined_call_operand.hbm [shape: f32[48,24], index: 3, kind: input, shape index: {}]   ;;  %s10584_s4 = inlined_call_operand.hbm [shape: f32[24,48], index: 4, kind: input, shape index: {}]   ;;  %s10585_s5 = inlined_call_operand.hbm [shape: f32[24,14], index: 5, kind: input, shape index: {}]   ;;  %s10586_s6 = inlined_call_operand.hbm [shape: f32[24,12], index: 6, kind: input, shape index: {}]   ;;  %s10587_s7 = inlined_call_operand.hbm [shape: f32[16,24], index: 7, kind: input, shape index: {}]   ;;  %s10588_s8 = inlined_call_operand.hbm [shape: f32[12,2], index: 8, kind: input, shape index: {}]   ;;  %s10589_s9 = inlined_call_operand.vmem [shape: f32[12,6], index: 9, kind: input, shape index: {}]   ;;  %s10590_s10 = inlined_call_operand.hbm [shape: f32[8,16], index: 10, kind: input, shape index: {}]   ;;  %s10591_s11 = inlined_call_operand.hbm [shape: f32[6,3], index: 11, kind: input, shape index: {}]   ;;  %s10592_s12 = inlined_call_operand.vmem [shape: f32[6,3], index: 12, kind: input, shape index: {}]   ;;  %s10593_s13 = inlined_call_operand.vmem [shape: f32[8,8], index: 13, kind: input, shape index: {}]   ;;  %s10594_s14 = inlined_call_operand.vmem [shape: f32[3,1], index: 14, kind: input, shape index: {}]   ;;  %s10595_s15 = inlined_call_operand.vmem [shape: f32[6,1,10], index: 15, kind: output, shape index: {}]  }
   0x1   :  { %10701 = sst [smem:[#allocation64_spill]] %s10580_s0 }
   0x2   :  { %10702 = sst [smem:[#allocation65_spill]] %s10582_s2 }
   0x3   :  { %10703 = sst [smem:[#allocation66_spill]] %s10583_s3 }
   0x4   :  { %10704 = sst [smem:[#allocation67_spill]] %s10584_s4 }
   0x5   :  { %10705 = sst [smem:[#allocation68_spill]] %s10585_s5 }
   0x6   :  { %10706 = sst [smem:[#allocation69_spill]] %s10586_s6 }
   0x7   :  { %10707 = sst [smem:[#allocation70_spill]] %s10587_s7 }
   0x8   :  { %10708 = sst [smem:[#allocation71_spill]] %s10594_s14 }
   0x9   :  { %10709 = sst [smem:[#allocation72_spill]] %s10595_s15 }
   0xa   :  { %20 = vsyncpa [#allocation3], 0 }
   0xb   :  { %22 = vsyncpa [#allocation3 + $0x1], 0 }
   0xc   :  { %23 = vsyncpa [#allocation5], 0 }
   0xd   :  { %25 = vsyncpa [#allocation5 + $0x1], 0 }
   0xe   :  { %26 = vsyncpa [#allocation8], 0 }
   0xf   :  { %27 = vsyncpa [#allocation11], 0 }
  0x10   :  { %28 = vsyncpa [#allocation14], 0 }
  0x11   :  { %29 = vsyncpa [#allocation17], 0  ;;  %s6815_s18 = smov 0   ;;  %s6817_s19 = smov 0  }
  0x12   :  { %s6819_s20 = smov 0   ;;  %s6821_s21 = smov 0  }
  0x13 LB: > { %s6720_s22 = smov [#allocation6]   ;;  %s6836_s24 = sadd.s32 4294967295, %s6718_s21   ;;  %s6718_s21 = sphi %s6821_s21, %s11036_s21   ;;  %s6714_s20 = sphi %s6819_s20, %s11035_s20   ;;  %s6710_s19 = sphi %s6817_s19, %s11034_s19   ;;  %s6706_s18 = sphi %s6815_s18, %s11033_s18  }
  0x14   : > { %s403_s23 = sshll.u32 %s6720_s22, 4  ;;  %p5501_p0 = scmp.ge.s32.totalorder %s6718_s21, 1  ;;  %s404_s23 = int_to_ptr.vmem [resolvable:$true] %s403_s23 }
  0x15   : > { %p10601_p1 = scmp.eq.s32.totalorder %s6836_s24, 0  ;;  %p391_p2 = scmp.lt.s32.totalorder %s6718_s21, 7 }
  0x16   : > { %s6721_s26 = smov [#allocation7]   ;;  %s6722_s29 = smov [#allocation10]  }
  0x17   : > { %p6841_p3 = pnand %p5501_p0, %p391_p2  ;;  %s416_s27 = sshll.u32 %s6721_s26, 4  ;;  %s6853_s27 = int_to_ptr.vmem [resolvable:$true] %s416_s27 }
  0x18   : > { %s442_s30 = sshll.u32 %s6722_s29, 4  ;;  %s6381_s17 = scalar_lea.vmem %s404_s23, 768  ;;  %s6855_s30 = int_to_ptr.vmem [resolvable:$true] %s442_s30 }
  0x19   : > { %p6222_p4 = pneg %p6841_p3  ;;  %p6382_p7 = scmp.ne.s32.totalorder %s404_s23, %s6381_s17 }
  0x1a   : > { %p6389_p10 = scmp.lt.s32.totalorder %s404_s23, %s404_s23  ;;  %p6390_p11 = scmp.lt.s32.totalorder %s6381_s17, %s6381_s17 }
  0x1b   : > { %p6849_p5 = pnand %p6222_p4, %p10601_p1 }
  0x1c   : > { %p6391_p12 = por %p6390_p11, %p6389_p10 }
  0x1d   : > { %p6859_p6 = pneg %p6849_p5 }
  0x1f   : > { %p6384_p8 = pnand %p6382_p7, %p6859_p6 }
  0x21   : > { %p6385_p9 = pneg %p6384_p8 }
  0x23   : > { %p6392_p13 = pnand %p6391_p12, %p6385_p9 }
  0x25   : > { %6395 = shalt.err (!%p6392_p13)
}
  0x26   : > { %s10596_s22 = smov 128   ;;  %s10598_s26 = smov 8  }
  0x27   : > { %s10713_s2 = sld [smem:[#allocation65_spill]]  ;;  %s6407_s14 = scalar_lea.vmem %s6853_s27, 768 }
  0x28   : > { %p6408_p0 = scmp.ne.s32.totalorder %s6853_s27, %s6407_s14  ;;  %p6415_p7 = scmp.lt.s32.totalorder %s6853_s27, %s6853_s27 }
  0x29   : > { %p6416_p8 = scmp.lt.s32.totalorder %s6407_s14, %s6407_s14 }
  0x2a   : > { %p6410_p2 = pnand %p6408_p0, %p6859_p6 }
  0x2b   : > { %p6417_p9 = por %p6416_p8, %p6415_p7 }
  0x2c   : > { %p6411_p4 = pneg %p6410_p2 }
  0x2d   : > { %6225 = dma.hbm_to_vmem [thread:$0]  (!%p6849_p5), %s10713_s2, 768, %s404_s23, [#allocation5], %s10596_s22, %s10596_s22, %s10598_s26  }
  0x2e   : > { %p6418_p10 = pnand %p6417_p9, %p6411_p4 }
  0x30   : > { %6421 = shalt.err (!%p6418_p10)
}
  0x31   : > { %s10714_s3 = sld [smem:[#allocation66_spill]]  ;;  %s6433_s23 = scalar_lea.vmem %s6855_s30, 384 }
  0x32   : > { %p6434_p11 = scmp.ne.s32.totalorder %s6855_s30, %s6433_s23  ;;  %p6441_p0 = scmp.lt.s32.totalorder %s6855_s30, %s6855_s30 }
  0x33   : > { %p6442_p2 = scmp.lt.s32.totalorder %s6433_s23, %s6433_s23 }
  0x34   : > { %p6436_p12 = pnand %p6434_p11, %p6859_p6 }
  0x35   : > { %p6443_p4 = por %p6442_p2, %p6441_p0 }
  0x36   : > { %p6437_p13 = pneg %p6436_p12 }
  0x37   : > { %6228 = dma.hbm_to_vmem [thread:$0]  (!%p6849_p5), %s10714_s3, 768, %s6853_s27, [#allocation8], %s10596_s22, %s10596_s22, %s10598_s26  }
  0x38   : > { %p6444_p7 = pnand %p6443_p4, %p6437_p13 }
  0x3a   : > { %6447 = shalt.err (!%p6444_p7)
}
  0x3b   : > { %s10715_s5 = sld [smem:[#allocation68_spill]]  ;;  %s6725_s27 = smov [#allocation13]  }
  0x3c   : > { %s468_s17 = sshll.u32 %s6725_s27, 4  ;;  %s6726_s15 = smov [#allocation16]   ;;  %s469_s17 = int_to_ptr.vmem [resolvable:$true] %s468_s17 }
  0x3d   : > { %s498_s2 = sshll.u32 %s6726_s15, 4  ;;  %s6459_s23 = scalar_lea.vmem %s469_s17, 256  ;;  %s499_s2 = int_to_ptr.vmem [resolvable:$true] %s498_s2 }
  0x3e   : > { %p6460_p8 = scmp.ne.s32.totalorder %s469_s17, %s6459_s23  ;;  %p6467_p11 = scmp.lt.s32.totalorder %s469_s17, %s469_s17 }
  0x3f   : > { %p6468_p12 = scmp.lt.s32.totalorder %s6459_s23, %s6459_s23 }
  0x40   : > { %p6462_p9 = pnand %p6460_p8, %p6859_p6 }
  0x41   : > { %6234 = dma.hbm_to_vmem [thread:$0]  (!%p6849_p5), %s10715_s5, 384, %s6855_s30, [#allocation11], %s10596_s22, %s10596_s22, %s10598_s26  }
  0x42   : > { %p6463_p10 = pneg %p6462_p9  ;;  %p6469_p13 = por %p6468_p12, %p6467_p11 }
  0x44   : > { %p6470_p0 = pnand %p6469_p13, %p6463_p10 }
  0x46   : > { %6473 = shalt.err (!%p6470_p0)
}
  0x47   : > { %s10716_s7 = sld [smem:[#allocation70_spill]]  ;;  %s6485_s29 = scalar_lea.vmem %s499_s2, 128 }
  0x48   : > { %p6486_p2 = scmp.ne.s32.totalorder %s499_s2, %s6485_s29  ;;  %p6493_p8 = scmp.lt.s32.totalorder %s499_s2, %s499_s2 }
  0x49   : > { %p6494_p9 = scmp.lt.s32.totalorder %s6485_s29, %s6485_s29 }
  0x4a   : > { %p6488_p4 = pnand %p6486_p2, %p6859_p6 }
  0x4b   : > { %p6495_p10 = por %p6494_p9, %p6493_p8 }
  0x4c   : > { %p6489_p7 = pneg %p6488_p4 }
  0x4d   : > { %6240 = dma.hbm_to_vmem [thread:$0]  (!%p6849_p5), %s10716_s7, 256, %s469_s17, [#allocation14], %s10596_s22, %s10596_s22, %s10598_s26  }
  0x4e   : > { %p6496_p11 = pnand %p6495_p10, %p6489_p7 }
  0x50   : > { %6499 = shalt.err (!%p6496_p11)
}
  0x51   : > { %6246 = dma.hbm_to_vmem [thread:$0]  (!%p6849_p5), %s10590_s10, 128, %s499_s2, [#allocation17]  }
  0x52   : > { %s6727_s23 = smov [#allocation9]   ;;  %s6728_s30 = smov [#allocation12]  }
  0x53   : > { %s429_s17 = sshll.u32 %s6727_s23, 4  ;;  %s455_s14 = sshll.u32 %s6728_s30, 4  ;;  %s430_s17 = int_to_ptr.vmem [resolvable:$true] %s429_s17  ;;  %s456_s14 = int_to_ptr.vmem [resolvable:$true] %s455_s14 }
  0x54   : > { %s6511_s22 = scalar_lea.vmem %s430_s17, 384  ;;  %p6519_p2 = scmp.lt.s32.totalorder %s430_s17, %s430_s17 }
  0x55   : > { %p6512_p12 = scmp.ne.s32.totalorder %s430_s17, %s6511_s22  ;;  %p6520_p4 = scmp.lt.s32.totalorder %s6511_s22, %s6511_s22 }
  0x57   : > { %p6514_p13 = pnand %p6512_p12, %p6859_p6  ;;  %p6521_p7 = por %p6520_p4, %p6519_p2 }
  0x59   : > { %p6515_p0 = pneg %p6514_p13 }
  0x5b   : > { %p6522_p8 = pnand %p6521_p7, %p6515_p0 }
  0x5d   : > { %6525 = shalt.err (!%p6522_p8)
}
  0x5e   : > { %s10717_s29 = smov 128   ;;  %s10718_s4 = sld [smem:[#allocation67_spill]] }
  0x5f   : > { %s6537_s15 = scalar_lea.vmem %s456_s14, 384  ;;  %p6545_p12 = scmp.lt.s32.totalorder %s456_s14, %s456_s14 }
  0x60   : > { %p6538_p9 = scmp.ne.s32.totalorder %s456_s14, %s6537_s15  ;;  %p6546_p13 = scmp.lt.s32.totalorder %s6537_s15, %s6537_s15 }
  0x62   : > { %p6540_p10 = pnand %p6538_p9, %p6859_p6  ;;  %p6547_p0 = por %p6546_p13, %p6545_p12 }
  0x64   : > { %6231 = dma.hbm_to_vmem [thread:$0]  (!%p6849_p5), %s10718_s4, 384, %s430_s17, [#allocation8], %s10717_s29, %s10717_s29, %s10598_s26  }
  0x65   : > { %p6541_p11 = pneg %p6540_p10 }
  0x67   : > { %p6548_p2 = pnand %p6547_p0, %p6541_p11 }
  0x69   : > { %6551 = shalt.err (!%p6548_p2)
}
  0x6a   : > { %s10719_s6 = sld [smem:[#allocation69_spill]]  ;;  %s6729_s17 = smov [#allocation15]  }
  0x6b   : > { %s481_s30 = sshll.u32 %s6729_s17, 4  ;;  %s6730_s2 = smov [#allocation18]   ;;  %s482_s30 = int_to_ptr.vmem [resolvable:$true] %s481_s30 }
  0x6c   : > { %s509_s27 = sshll.u32 %s6730_s2, 4  ;;  %s6563_s3 = scalar_lea.vmem %s482_s30, 256  ;;  %s510_s27 = int_to_ptr.vmem [resolvable:$true] %s509_s27 }
  0x6d   : > { %p6564_p4 = scmp.ne.s32.totalorder %s482_s30, %s6563_s3  ;;  %p6571_p9 = scmp.lt.s32.totalorder %s482_s30, %s482_s30 }
  0x6e   : > { %p6572_p10 = scmp.lt.s32.totalorder %s6563_s3, %s6563_s3 }
  0x6f   : > { %p6566_p7 = pnand %p6564_p4, %p6859_p6 }
  0x70   : > { %6237 = dma.hbm_to_vmem [thread:$0]  (!%p6849_p5), %s10719_s6, 384, %s456_s14, [#allocation11], %s10717_s29, %s10717_s29, %s10598_s26  }
  0x71   : > { %p6567_p8 = pneg %p6566_p7  ;;  %p6573_p11 = por %p6572_p10, %p6571_p9 }
  0x73   : > { %p6574_p12 = pnand %p6573_p11, %p6567_p8 }
  0x75   : > { %6577 = shalt.err (!%p6574_p12)
}
  0x76   : > { %6243 = dma.hbm_to_vmem [thread:$0]  (!%p6849_p5), %s10588_s8, 256, %s482_s30, [#allocation14], %s10717_s29, %s10717_s29, %s10598_s26  }
  0x77   : > { %s6589_s22 = scalar_lea.vmem %s510_s27, 128  ;;  %p6597_p4 = scmp.lt.s32.totalorder %s510_s27, %s510_s27 }
  0x78   : > { %p6590_p13 = scmp.ne.s32.totalorder %s510_s27, %s6589_s22  ;;  %p6598_p7 = scmp.lt.s32.totalorder %s6589_s22, %s6589_s22 }
  0x7a   : > { %p6592_p0 = pnand %p6590_p13, %p6859_p6  ;;  %p6599_p8 = por %p6598_p7, %p6597_p4 }
  0x7c   : > { %p6593_p2 = pneg %p6592_p0 }
  0x7e   : > { %p6600_p9 = pnand %p6599_p8, %p6593_p2 }
  0x80   : > { %6603 = shalt.err (!%p6600_p9)
}
  0x81   : > { %6249 = dma.hbm_to_vmem [thread:$0]  (!%p6849_p5), %s10591_s11, 128, %s510_s27, [#allocation17]  }
  0x82   : > { %s6958_s16 = sadd.s32 1, %s6718_s21   ;;  %s42_s17 = sadd.s32 1, %s6714_s20 }
  0x83   : > { %s39_s28 = ssub.s32 %s6718_s21, %s6958_s16  ;;  %p49_p10 = scmp.ne.s32.totalorder %s6714_s20, %s6710_s19 }
  0x84   : > { %p40_p6 = scmp.eq.s32.totalorder %s39_s28, 0  ;;  %p50_p11 = scmp.eq.s32.totalorder %s6718_s21, 0 }
  0x85   : > { %p55_p12 = scmp.ne.s32.totalorder %s6710_s19, %s6706_s18  ;;  %p6266_p5 = scmp.lt.s32.totalorder %s6718_s21, 6 }
  0x86   : > { %s6969_s30 = scalar_select %p40_p6, %s6714_s20, %s42_s17  }
  0x87   : > { %p51_p13 = por %p50_p11, %p49_p10  ;;  %p6973_p0 = por %p10601_p1, %p55_p12 }
  0x88   : > { %s529_s27 = sand.u32 1, %s6714_s20   ;;  %s10600_s15 = smul.u32 768, %s6718_s21 }
  0x89   : > { %s10720_s2 = scalar_select %p6973_p0, 1, 0 }
  0x8a   : > { %s6979_s14 = smul.u32 48, %s529_s27  ;;  %p6982_p2 = pnand %p6266_p5, %p51_p13 }
  0x8b   : > { %s10722_s0 = sld [smem:[#allocation64_spill]]  ;;  %s6997_s4 = scalar_lea.sflag [#allocation3], %s529_s27 }
  0x8c   : > { %s533_s17 = scalar_lea.vmem [#allocation2], %s6979_s14  ;;  %p6606_p7 = pneg %p6982_p2 }
  0x8d   : > { %s540_s26 = sshll.u32 %s533_s17, 4  ;;  %s6995_s26 = int_to_ptr.vmem [resolvable:$true] %s540_s26 }
  0x91   : > { %s6992_s28 = scalar_lea.hbm %s10722_s0, %s10600_s15  ;;  %s6609_s18 = scalar_lea.hbm %s10722_s0, 4608 }
  0x92   : > { %s6604_s5 = scalar_lea.hbm %s6992_s28, 768  ;;  %p6610_p6 = scmp.lt.s32.totalorder %s6992_s28, %s10722_s0 }
  0x93   : > { %p6605_p4 = scmp.ne.s32.totalorder %s6992_s28, %s6604_s5  ;;  %p6611_p10 = scmp.lt.s32.totalorder %s6609_s18, %s6604_s5 }
  0x95   : > { %p6607_p8 = pnand %p6606_p7, %p6605_p4  ;;  %p6612_p11 = por %p6611_p10, %p6610_p6 }
  0x97   : > { %p6608_p9 = pneg %p6607_p8 }
  0x99   : > { %p6613_p12 = pnand %p6612_p11, %p6608_p9 }
  0x9b   : > { %6616 = shalt.err (!%p6613_p12)
}
  0x9c   : > { %s6617_s27 = scalar_lea.vmem %s6995_s26, 768  ;;  %s6731_s17 = smov [#allocation2]  }
  0x9d   : > { %p6618_p13 = scmp.ne.s32.totalorder %s6995_s26, %s6617_s27  ;;  %s6622_s3 = sshll.u32 %s6731_s17, 4  ;;  %s6623_s3 = int_to_ptr.vmem [resolvable:$false] %s6622_s3 }
  0x9e   : > { %s6624_s23 = scalar_lea.vmem %s6623_s3, 1536  ;;  %p6625_p8 = scmp.lt.s32.totalorder %s6995_s26, %s6623_s3 }
  0x9f   : > { %p6620_p5 = pnand %p6618_p13, %p6606_p7  ;;  %p6626_p1 = scmp.lt.s32.totalorder %s6624_s23, %s6617_s27 }
  0xa1   : > { %p6621_p4 = pneg %p6620_p5  ;;  %p6627_p0 = por %p6626_p1, %p6625_p8 }
  0xa3   : > { %p6628_p6 = pnand %p6627_p0, %p6621_p4 }
  0xa5   : > { %6631 = shalt.err (!%p6628_p6)
}
  0xa6   : > { %s10723_s5 = smov 8   ;;  %s10724_s6 = smul.u32 768, %s6718_s21 }
  0xa7   : > { %6253 = dma.hbm_to_vmem [thread:$0]  (!%p6982_p2), %s6992_s28, 768, %s6995_s26, %s6997_s4, %s10717_s29, %s10717_s29, %s10723_s5  }
  0xa8   : > { %s7032_s27 = scalar_lea.hbm %s10581_s1, %s10724_s6  ;;  %s554_s17 = scalar_lea.vmem [#allocation4], %s6979_s14 }
  0xa9   : > { %s561_s3 = sshll.u32 %s554_s17, 4  ;;  %s10725_s23 = sand.u32 1, %s6718_s21   ;;  %s7035_s3 = int_to_ptr.vmem [resolvable:$true] %s561_s3 }
  0xaa   : > { %s551_s0 = scalar_lea.sflag [#allocation5], %s10725_s23  ;;  %s6632_s7 = scalar_lea.hbm %s7032_s27, 768 }
  0xab   : > { %p6633_p1 = scmp.ne.s32.totalorder %s7032_s27, %s6632_s7  ;;  %s6637_s28 = scalar_lea.hbm %s10581_s1, 4608 }
  0xac   : > { %p6638_p10 = scmp.lt.s32.totalorder %s7032_s27, %s10581_s1  ;;  %p6639_p11 = scmp.lt.s32.totalorder %s6637_s28, %s6632_s7 }
  0xad   : > { %p6635_p0 = pnand %p6633_p1, %p6606_p7 }
  0xae   : > { %p6640_p12 = por %p6639_p11, %p6638_p10 }
  0xaf   : > { %p6636_p9 = pneg %p6635_p0 }
  0xb1   : > { %p6641_p13 = pnand %p6640_p12, %p6636_p9 }
  0xb3   : > { %6644 = shalt.err (!%p6641_p13)
}
  0xb4   : > { %s6645_s21 = scalar_lea.vmem %s7035_s3, 768  ;;  %s6732_s14 = smov [#allocation4]  }
  0xb5   : > { %p6646_p5 = scmp.ne.s32.totalorder %s7035_s3, %s6645_s21  ;;  %s6650_s18 = sshll.u32 %s6732_s14, 4  ;;  %s6651_s18 = int_to_ptr.vmem [resolvable:$false] %s6650_s18 }
  0xb6   : > { %s6652_s17 = scalar_lea.vmem %s6651_s18, 1536  ;;  %p6653_p6 = scmp.lt.s32.totalorder %s7035_s3, %s6651_s18 }
  0xb7   : > { %p6648_p4 = pnand %p6646_p5, %p6606_p7  ;;  %p6654_p1 = scmp.lt.s32.totalorder %s6652_s17, %s6645_s21 }
  0xb9   : > { %p6649_p8 = pneg %p6648_p4  ;;  %p6655_p0 = por %p6654_p1, %p6653_p6 }
  0xbb   : > { %p6656_p10 = pnand %p6655_p0, %p6649_p8 }
  0xbd   : > { %6659 = shalt.err (!%p6656_p10)
}
  0xbe   : > { %6256 = dma.hbm_to_vmem [thread:$0]  (!%p6982_p2), %s7032_s27, 768, %s7035_s3, %s551_s0, %s10717_s29, %s10717_s29, %s10723_s5  }
  0xbf   : > { %573 = sbr.rel (%p6841_p3) target bundleno = 2374 (0x946), region = 80 }
  0xc4   : > { %s575_s7 = sand.u32 1, %s6710_s19   ;;  %p10726_p7 = scmp.ne.s32.totalorder %s10720_s2, 0 }
  0xc5   : > { %s6161_s23 = smul.u32 48, %s575_s7  ;;  %s576_s4 = scalar_lea.sflag [#allocation3], %s575_s7 }
  0xc7   : > { %s7067_s26 = scalar_lea.vmem [#allocation2], %s6161_s23 }
  0xc8   : > { %6677 = dma.done.wait (%p10726_p7), %s576_s4, 768  }
  0xc9   : > { %6679 = vsyncadd (%p10726_p7), %s576_s4, 4294966528  ;;  %s584_s22 = sand.u32 1, %s6836_s24   ;;  %s7074_s0 = scalar_lea.vmem [#allocation4], %s6161_s23 }
  0xca   : > { %s585_s28 = scalar_lea.sflag [#allocation5], %s584_s22 }
  0xcb   : > { %6681 = dma.done.wait (%p10726_p7), %s585_s28, 768  }
  0xcc   : > { %6683 = vsyncadd (%p10726_p7), %s585_s28, 4294966528  ;;  %p10727_p3 = scmp.eq.s32.totalorder %s6836_s24, 0 }
  0xce   : > { %6685 = dma.done.wait (%p10727_p3), [#allocation5], 768   ;;  %p10728_p2 = pmov %p10727_p3 }
  0xd0   : > { %6687 = vsyncadd (%p10728_p2), [#allocation5], 4294966528  ;;  %p10729_p9 = pmov %p10728_p2 }
  0xd1   : > { %p10730_p11 = pmov %p10728_p2 }
  0xd2   : > { %6689 = dma.done.wait (%p10729_p9), [#allocation8], 1152  }
  0xd3   : > { %6691 = vsyncadd (%p10730_p11), [#allocation8], 4294966144  ;;  %p10731_p12 = pmov %p10728_p2 }
  0xd4   : > { %p10732_p13 = pmov %p10728_p2 }
  0xd5   : > { %6693 = dma.done.wait (%p10731_p12), [#allocation11], 768  }
  0xd6   : > { %6695 = vsyncadd (%p10732_p13), [#allocation11], 4294966528  ;;  %p10733_p5 = pmov %p10728_p2 }
  0xd7   : > { %p10734_p4 = pmov %p10728_p2 }
  0xd8   : > { %6697 = dma.done.wait (%p10733_p5), [#allocation14], 512  }
  0xd9   : > { %6699 = vsyncadd (%p10734_p4), [#allocation14], 4294966784  ;;  %p10735_p8 = pmov %p10728_p2 }
  0xda   : > { %p10736_p6 = pmov %p10728_p2 }
  0xdb   : > { %6701 = dma.done.wait (%p10735_p8), [#allocation17], 256  }
  0xdc   : > { %6703 = vsyncadd (%p10736_p6), [#allocation17], 4294967040  ;;  %v7100_v0 = vld [vmem:[#allocation7 + $0x28] sm:$0xff]  ;;  %v7102_v1 = vld [vmem:[#allocation7 + $0x20] sm:$0xff]  ;;  %vm722_vm0 = vcmask 392192   ;;  %v10610_v12 = vmov 0.0   ;;  %v10603_v56 = vlaneseq }
  0xdd   : > { %5867 = vmatprep.subr.mxu1 %v7100_v0  ;;  %v7106_v2 = vld [vmem:[#allocation7 + $0x18] sm:$0xff]  ;;  %v7109_v3 = vld [vmem:[%s7067_s26] sm:$0xff]  ;;  %v7121_v5 = vld [vmem:[#allocation7 + $0x8] sm:$0xff]  ;;  %vm6734_vm1 = vmmov 0   ;;  %vm2665_vm3 = vcmask 195584   ;;  %vm2251_vm4 = vcmask 310272  }
  0xde   : > { %5868 = vmatpush3.msra.mxu1 %v7100_v0  ;;  %5879 = vmatprep.mubr.msk.f32.mxu1 %vm722_vm0, %v7109_v3  ;;  %v7115_v4 = vld [vmem:[#allocation7 + $0x10] sm:$0xff]  ;;  %v7125_v6 = vld [vmem:[#allocation7] sm:$0xff]  ;;  %v7130_v7 = vld [vmem:[%s7067_s26 + $0x8] sm:$0xff]  ;;  %v704_v27 = vmul.f32 %v7109_v3, %v7109_v3  ;;  %v7301_v58 = vshrl.u32 %v10603_v56, 7  ;;  %vm2259_vm5 = vcmask 308224   ;;  %vm3780_vm6 = vcmask 1043456  }
  0xdf   : > { %5869 = vmatprep.subr.mxu1 %v7102_v1  ;;  %5822 = vmatprep.mubr.msk.f32.mxu0 %vm722_vm0, %v7109_v3  ;;  %v7134_v8 = vld [vmem:[%s7067_s26 + $0x10] sm:$0xff]  ;;  %v7142_v9 = vld [vmem:[%s7067_s26 + $0x18] sm:$0xff]  ;;  %v7145_v10 = vld [vmem:[%s7067_s26 + $0x20] sm:$0xff]  ;;  %v705_v29 = vmul.f32 %v7130_v7, %v7130_v7  ;;  %vm3749_vm7 = vcmask 97280   ;;  %vm3396_vm8 = vcmask 113664   ;;  %vm3398_vm9 = vcmask 111616  }
  0xe0   : > { %5870 = vmatpush3.msra.mxu1 %v7102_v1  ;;  %v7152_v11 = vld [vmem:[%s7067_s26 + $0x28] sm:$0xff]  ;;  %v693_v14 = vld [vmem:[#allocation6 + $0x20] sm:$0xff]  ;;  %v691_v16 = vld [vmem:[#allocation6 + $0x10] sm:$0xff]  ;;  %v706_v30 = vmul.f32 %v7134_v8, %v7134_v8  ;;  %v707_v31 = vmul.f32 %v7142_v9, %v7142_v9  ;;  %v708_v32 = vmul.f32 %v7145_v10, %v7145_v10  ;;  %10737 = vst [vmem:[#allocation26_spill] sm:$0xff] %v7301_v58  ;;  %vm1085_vm2 = vcmp.lt.s32.totalorder %v7301_v58, 7  ;;  %s11030_s18 = sld [smem:[#allocation71_spill]] }
  0xe1   : > { %5871 = vmatprep.subr.mxu1 %v7106_v2  ;;  %v694_v13 = vld [vmem:[#allocation6 + $0x28] sm:$0xff]  ;;  %v692_v15 = vld [vmem:[#allocation6 + $0x18] sm:$0xff]  ;;  %v689_v18 = vld [vmem:[#allocation6] sm:$0xff]  ;;  %v709_v33 = vmul.f32 %v7152_v11, %v7152_v11  ;;  %vm4318_vm10 = vcmask 130048   ;;  %vm4559_vm11 = vcmask 1045504   ;;  %vm4543_vm12 = vcmask 48128  }
  0xe2   : > { %5872 = vmatpush3.msra.mxu1 %v7106_v2  ;;  %5810 = vmatprep.subr.mxu0 %v694_v13  ;;  %v690_v17 = vld [vmem:[#allocation6 + $0x8] sm:$0xff]  ;;  %v2649_v20 = vld [vmem:[#allocation10 + $0x8] sm:$0xff]  ;;  %v2648_v21 = vld [vmem:[#allocation10] sm:$0xff]  ;;  %vm4219_vm13 = vcmask 9216   ;;  %vm4872_vm14 = vcmask 64512   ;;  %vm5106_vm15 = vcmask 1042432  }
  0xe3   : > { %5873 = vmatprep.subr.mxu1 %v7115_v4  ;;  %5811 = vmatpush3.msra.mxu0 %v694_v13  ;;  %v2650_v19 = vld [vmem:[#allocation10 + $0x10] sm:$0xff]  ;;  %v7172_v22 = vld [vmem:[%s7074_s0] sm:$0xff]  ;;  %v7182_v24 = vld [vmem:[%s7074_s0 + $0x10] sm:$0xff]  ;;  %p674_p1 = scmp.lt.s32.totalorder %s6836_s24, 5  ;;  %s11032_s27 = sld [smem:[#allocation72_spill]] }
  0xe4   : > { %5874 = vmatpush3.msra.mxu1 %v7115_v4  ;;  %5812 = vmatprep.subr.mxu0 %v693_v14  ;;  %v7179_v23 = vld [vmem:[%s7074_s0 + $0x8] sm:$0xff]  ;;  %v7189_v25 = vld [vmem:[%s7074_s0 + $0x18] sm:$0xff]  ;;  %v7192_v26 = vld [vmem:[%s7074_s0 + $0x20] sm:$0xff]  ;;  %v710_v34 = vmul.f32 %v7172_v22, %v7172_v22  ;;  %v712_v36 = vmul.f32 %v7182_v24, %v7182_v24  ;;  %v716_v40 = vmul.f32 %v7172_v22, %v7109_v3 }
  0xe5   : > { %5875 = vmatprep.subr.mxu1 %v7121_v5  ;;  %5813 = vmatpush3.msra.mxu0 %v693_v14  ;;  %v7201_v28 = vld [vmem:[%s7074_s0 + $0x28] sm:$0xff]  ;;  %v711_v35 = vmul.f32 %v7179_v23, %v7179_v23  ;;  %v713_v37 = vmul.f32 %v7189_v25, %v7189_v25  ;;  %v714_v38 = vmul.f32 %v7192_v26, %v7192_v26  ;;  %v701_v52 = vld [vmem:[#allocation9] sm:$0xff]  ;;  %v703_v54 = vld [vmem:[#allocation9 + $0x10] sm:$0xff]  ;;  %s11038_s24 = smov (!%p674_p1, %s6836_s24), 5 }
  0xe6   : > { %5876 = vmatpush3.msra.mxu1 %v7121_v5  ;;  %5814 = vmatprep.subr.mxu0 %v692_v15  ;;  %v715_v39 = vmul.f32 %v7201_v28, %v7201_v28  ;;  %v717_v41 = vmul.f32 %v7179_v23, %v7130_v7  ;;  %v718_v42 = vmul.f32 %v7182_v24, %v7134_v8  ;;  %v702_v53 = vld [vmem:[#allocation9 + $0x8] sm:$0xff] }
  0xe7   : > { %5877 = vmatprep.subr.mxu1 %v7125_v6  ;;  %5815 = vmatpush3.msra.mxu0 %v692_v15  ;;  %v719_v43 = vmul.f32 %v7189_v25, %v7142_v9  ;;  %v720_v44 = vmul.f32 %v7192_v26, %v7145_v10  ;;  %v721_v45 = vmul.f32 %v7201_v28, %v7152_v11 }
  0xe8   : > { %5878 = vmatpush3.msra.mxu1 %v7125_v6  ;;  %5816 = vmatprep.subr.mxu0 %v691_v16 }
  0xe9   : > { %5880 = vmatmul.mubr.msk.f32.vlgmr.msra.gmra.mxu1 %vm722_vm0, %v7130_v7  ;;  %5888 = vmatprep.subr.mxu1 %v10610_v12  ;;  %s676_s3 = scalar_lea.vmem %s11032_s27, %s11038_s24 }
  0xea   : > { %5882 = vmatprep.mubr.msk.f32.mxu1 %vm722_vm0, %v7134_v8  ;;  %5817 = vmatpush3.msra.mxu0 %v691_v16 }
  0xeb   : > { %5818 = vmatprep.subr.mxu0 %v690_v17 }
  0xec   : > { %5819 = vmatpush3.msra.mxu0 %v690_v17 }
  0xed   : > { %5883 = vmatmul.mubr.msk.f32.gmra.mxu1 %vm722_vm0, %v7142_v9  ;;  %5820 = vmatprep.subr.mxu0 %v689_v18 }
  0xee   : > { %5885 = vmatprep.mubr.msk.f32.mxu1 %vm722_vm0, %v7145_v10  ;;  %5821 = vmatpush3.msra.mxu0 %v689_v18 }
  0xef   : > { %5823 = vmatmul.mubr.msk.f32.vlgmr.msra.gmra.mxu0 %vm722_vm0, %v7130_v7  ;;  %5951 = vmatprep.subr.mxu0 %v10610_v12 }
  0xf0   : > { %5825 = vmatprep.mubr.msk.f32.mxu0 %vm722_vm0, %v7134_v8  ;;  %5952 = vmatpush3.msra.mxu0 %v2650_v19 }
  0xf1   : > { %5886 = vmatmul.mubr.msk.f32.gmra.mxu1 %vm722_vm0, %v7152_v11  ;;  %5953 = vmatprep.subr.mxu0 %v10610_v12 }
  0xf2   : > { %5900 = vmatprep.mubr.msk.f32.mxu1 %vm6734_vm1, %v10610_v12  ;;  %5954 = vmatpush3.msra.mxu0 %v2649_v20 }
  0xf3   : > { %5826 = vmatmul.mubr.msk.f32.gmra.mxu0 %vm722_vm0, %v7142_v9  ;;  %5955 = vmatprep.subr.mxu0 %v10610_v12 }
  0xf4   : > { %5828 = vmatprep.mubr.msk.f32.mxu0 %vm722_vm0, %v7145_v10  ;;  %5956 = vmatpush3.msra.mxu0 %v2648_v21 }
  0xf5   : > { %6002 = vmatprep.subr.mxu0 %v10610_v12 }
  0xf7   : > { %5829 = vmatmul.mubr.msk.f32.gmra.mxu0 %vm722_vm0, %v7152_v11 }
  0xf8   : > { %5831 = vmatprep.mubr.msk.f32.mxu0 %vm722_vm0, %v7172_v22 }
  0xfb   : > { %5832 = vmatmul.mubr.msk.f32.gmra.mxu0 %vm722_vm0, %v7179_v23 }
  0xfc   : > { %5834 = vmatprep.mubr.msk.f32.mxu0 %vm722_vm0, %v7182_v24 }
  0xff   : > { %5835 = vmatmul.mubr.msk.f32.gmra.mxu0 %vm722_vm0, %v7189_v25 }
 0x100   : > { %5837 = vmatprep.mubr.msk.f32.mxu0 %vm722_vm0, %v7192_v26 }
 0x103   : > { %5838 = vmatmul.mubr.msk.f32.gmra.mxu0 %vm722_vm0, %v7201_v28 }
 0x104   : > { %5840 = vmatprep.mubr.msk.f32.mxu0 %vm722_vm0, %v704_v27 }
 0x107   : > { %5841 = vmatmul.mubr.msk.f32.gmra.mxu0 %vm722_vm0, %v705_v29 }
 0x108   : > { %5843 = vmatprep.mubr.msk.f32.mxu0 %vm722_vm0, %v706_v30 }
 0x10b   : > { %5844 = vmatmul.mubr.msk.f32.gmra.mxu0 %vm722_vm0, %v707_v31 }
 0x10c   : > { %5846 = vmatprep.mubr.msk.f32.mxu0 %vm722_vm0, %v708_v32 }
 0x10f   : > { %5847 = vmatmul.mubr.msk.f32.gmra.mxu0 %vm722_vm0, %v709_v33 }
 0x110   : > { %5849 = vmatprep.mubr.msk.f32.mxu0 %vm722_vm0, %v710_v34 }
 0x113   : > { %5850 = vmatmul.mubr.msk.f32.gmra.mxu0 %vm722_vm0, %v711_v35 }
 0x114   : > { %5852 = vmatprep.mubr.msk.f32.mxu0 %vm722_vm0, %v712_v36 }
 0x117   : > { %5853 = vmatmul.mubr.msk.f32.gmra.mxu0 %vm722_vm0, %v713_v37 }
 0x118   : > { %5855 = vmatprep.mubr.msk.f32.mxu0 %vm722_vm0, %v714_v38 }
 0x11b   : > { %5856 = vmatmul.mubr.msk.f32.gmra.mxu0 %vm722_vm0, %v715_v39 }
 0x11c   : > { %5858 = vmatprep.mubr.msk.f32.mxu0 %vm722_vm0, %v716_v40 }
 0x11f   : > { %5859 = vmatmul.mubr.msk.f32.gmra.mxu0 %vm722_vm0, %v717_v41 }
 0x120   : > { %5861 = vmatprep.mubr.msk.f32.mxu0 %vm722_vm0, %v718_v42 }
 0x123   : > { %5862 = vmatmul.mubr.msk.f32.gmra.mxu0 %vm722_vm0, %v719_v43 }
 0x124   : > { %5864 = vmatprep.mubr.msk.f32.mxu0 %vm722_vm0, %v720_v44 }
 0x127   : > { %5865 = vmatmul.mubr.msk.f32.gmra.mxu0 %vm722_vm0, %v721_v45 }
 0x128   : > { %5957 = vmatprep.mubr.msk.f32.mxu0 %vm6734_vm1, %v10610_v12 }
 0x1a9   : > { %v5881_v46 = vpop.f32.mrf.mxu1 }
 0x1ab   : > { %v2355_v47 = vpop.f32.mrf.mxu1 }
 0x1ad   : > { %v5884_v48 = vpop.f32.mrf.mxu1 }
 0x1af   : > { %v2365_v49 = vpop.f32.mrf.mxu1  ;;  %v5824_v55 = vpop.f32.mrf.mxu0 }
 0x1b0   : > { %v1054_v60 = vrot.slane %v5824_v55, 1 }
 0x1b1   : > { %v5887_v50 = vpop.f32.mrf.mxu1  ;;  %v7298_v57 = vpop.f32.mrf.mxu0 }
 0x1b2   : > { %5889 = vmatpush3.msra.mxu1 %v5887_v50  ;;  %v10609_v61 = vrot.slane %v7298_v57, 1 }
 0x1b3   : > { %v2375_v51 = vpop.f32.mrf.mxu1  ;;  %5890 = vmatprep.subr.mxu1 %v10610_v12  ;;  %v5827_v59 = vpop.f32.mrf.mxu0 }
 0x1b4   : > { %5891 = vmatpush3.msra.mxu1 %v2375_v51  ;;  %v1056_v62 = vrot.slane %v5827_v59, 1  ;;  %v1031_v40 = vmul.f32 0.0010283801, %v5827_v59 }
 0x1b5   : > { %5892 = vmatprep.subr.mxu1 %v10610_v12  ;;  %v889_v63 = vpop.f32.mrf.mxu0 }
 0x1b6   : > { %5893 = vmatpush3.msra.mxu1 %v5884_v48  ;;  %v1030_v36 = vmul.f32 0.0010283801, %v889_v63 }
 0x1b7   : > { %5894 = vmatprep.subr.mxu1 %v10610_v12 }
 0x1b8   : > { %5895 = vmatpush3.msra.mxu1 %v2365_v49 }
 0x1b9   : > { %5896 = vmatprep.subr.mxu1 %v10610_v12 }
 0x1ba   : > { %5897 = vmatpush3.msra.mxu1 %v5881_v46 }
 0x1bb   : > { %5898 = vmatprep.subr.mxu1 %v10610_v12 }
 0x1bc   : > { %5899 = vmatpush3.msra.mxu1 %v2355_v47 }
 0x1bd   : > { %5901 = vmatmul.mubr.msk.f32.vlgmr.msra.gmra.mxu1 %vm722_vm0, %v701_v52  ;;  %5909 = vmatprep.subr.mxu1 %v7100_v0 }
 0x1be   : > { %5910 = vmatpush3.msra.mxu1 %v7100_v0  ;;  %5903 = vmatprep.mubr.msk.f32.mxu1 %vm6734_vm1, %v10610_v12  ;;  %v1055_v0 = vrot.slane %v889_v63, 1 }
 0x1bf   : > { %5911 = vmatprep.subr.mxu1 %v7102_v1 }
 0x1c0   : > { %5912 = vmatpush3.msra.mxu1 %v7102_v1  ;;  %v5830_v1 = vpop.f32.mrf.mxu0  ;;  %v1112_v3 = vsel %vm1085_vm2, %v1055_v0, %v1056_v62 }
 0x1c1   : > { %5904 = vmatmul.mubr.msk.f32.gmra.mxu1 %vm722_vm0, %v702_v53  ;;  %5913 = vmatprep.subr.mxu1 %v7106_v2  ;;  %v1168_v11 = vrot.slane %v1112_v3, 1  ;;  %v1118_v37 = vmul.f32 0.007598758, %v1112_v3 }
 0x1c2   : > { %5914 = vmatpush3.msra.mxu1 %v7106_v2  ;;  %5906 = vmatprep.mubr.msk.f32.mxu1 %vm6734_vm1, %v10610_v12  ;;  %v7309_v2 = vsel %vm1085_vm2, %v10609_v61, %v1054_v60 }
 0x1c3   : > { %5915 = vmatprep.subr.mxu1 %v7115_v4  ;;  %v10608_v9 = vrot.slane %v7309_v2, 1  ;;  %v1143_v50 = vadd.f32 %v1118_v37, %v1030_v36 }
 0x1c4   : > { %5916 = vmatpush3.msra.mxu1 %v7115_v4  ;;  %v1113_v4 = vsel %vm1085_vm2, %v1054_v60, %v1055_v0 }
 0x1c5   : > { %5907 = vmatmul.mubr.msk.f32.gmra.mxu1 %vm722_vm0, %v703_v54  ;;  %5917 = vmatprep.subr.mxu1 %v7121_v5  ;;  %v1167_v10 = vrot.slane %v1113_v4, 1 }
 0x1c6   : > { %5918 = vmatpush3.msra.mxu1 %v7121_v5  ;;  %5921 = vmatprep.mubr.msk.f32.mxu1 %vm722_vm0, %v7172_v22  ;;  %v1058_v5 = vrot.slane %v5830_v1, 1  ;;  %v1029_v22 = vmul.f32 0.0010283801, %v5824_v55 }
 0x1c7   : > { %5919 = vmatprep.subr.mxu1 %v7125_v6  ;;  %v1223_v18 = vsel %vm1085_vm2, %v1167_v10, %v1168_v11  ;;  %v7329_v19 = vsel %vm1085_vm2, %v10608_v9, %v1167_v10 }
 0x1c8   : > { %5920 = vmatpush3.msra.mxu1 %v7125_v6  ;;  %v899_v6 = vpop.f32.mrf.mxu0  ;;  %v10607_v29 = vrot.slane %v7329_v19, 1  ;;  %v1277_v30 = vrot.slane %v1223_v18, 1  ;;  %v1226_v42 = vmul.f32 0.036000773, %v7329_v19  ;;  %v1227_v43 = vmul.f32 0.036000773, %v1223_v18 }
 0x1c9   : > { %5922 = vmatmul.mubr.msk.f32.vlgmr.msra.gmra.mxu1 %vm722_vm0, %v7179_v23  ;;  %5930 = vmatprep.subr.mxu1 %v10610_v12  ;;  %v1057_v7 = vrot.slane %v899_v6, 1  ;;  %v1028_v23 = vmul.f32 0.0010283801, %v7298_v57  ;;  %v1032_v51 = vmul.f32 0.0010283801, %v899_v6 }
 0x1ca   : > { %5924 = vmatprep.mubr.msk.f32.mxu1 %vm722_vm0, %v7182_v24  ;;  %v7315_v8 = vpop.f32.mrf.mxu0  ;;  %v7360_v46 = vsel %vm1085_vm2, %v10607_v29, %v1277_v30 }
 0x1cb   : > { %v1110_v13 = vsel %vm1085_vm2, %v1057_v7, %v1058_v5  ;;  %v1111_v14 = vsel %vm1085_vm2, %v1056_v62, %v1057_v7  ;;  %v1060_v15 = vrot.slane %v7315_v8, 1  ;;  %v7367_v52 = vmul.f32 0.0010283801, %v7315_v8 }
 0x1cc   : > { %v1169_v16 = vrot.slane %v1111_v14, 1  ;;  %v909_v17 = vpop.f32.mrf.mxu0  ;;  %v1170_v20 = vrot.slane %v1110_v13, 1  ;;  %v1119_v47 = vmul.f32 0.007598758, %v1111_v14  ;;  %v10606_v0 = vrot.slane %v7360_v46, 1 }
 0x1cd   : > { %5925 = vmatmul.mubr.msk.f32.gmra.mxu1 %vm722_vm0, %v7189_v25  ;;  %v1059_v21 = vrot.slane %v909_v17, 1  ;;  %v1116_v25 = vmul.f32 0.007598758, %v7309_v2  ;;  %v1120_v6 = vmul.f32 0.007598758, %v1110_v13 }
 0x1ce   : > { %5927 = vmatprep.mubr.msk.f32.mxu1 %vm722_vm0, %v7192_v26  ;;  %v1222_v24 = vsel %vm1085_vm2, %v1168_v11, %v1169_v16  ;;  %v1117_v26 = vmul.f32 0.007598758, %v1113_v4  ;;  %v1221_v27 = vsel %vm1085_vm2, %v1169_v16, %v1170_v20  ;;  %v7345_v38 = vpop.f32.mrf.mxu0  ;;  %v1144_v7 = vadd.f32 %v1119_v47, %v1031_v40 }
 0x1cf   : > { %v1109_v31 = vsel %vm1085_vm2, %v1058_v5, %v1059_v21  ;;  %v1278_v32 = vrot.slane %v1222_v24, 1  ;;  %v1279_v33 = vrot.slane %v1221_v27, 1  ;;  %v1141_v39 = vadd.f32 %v1116_v25, %v1028_v23 }
 0x1d0   : > { %v1171_v34 = vrot.slane %v1109_v31, 1  ;;  %v1142_v41 = vadd.f32 %v1117_v26, %v1029_v22  ;;  %v919_v54 = vpop.f32.mrf.mxu0  ;;  %v1228_v55 = vmul.f32 0.036000773, %v1222_v24  ;;  %v1062_v60 = vrot.slane %v7345_v38, 1 }
 0x1d1   : > { %5928 = vmatmul.mubr.msk.f32.gmra.mxu1 %vm722_vm0, %v7201_v28  ;;  %v7339_v28 = vsel %vm1085_vm2, %v1059_v21, %v1060_v15  ;;  %v1332_v48 = vsel %vm1085_vm2, %v1278_v32, %v1279_v33  ;;  %v1333_v49 = vsel %vm1085_vm2, %v1277_v30, %v1278_v32  ;;  %v1061_v62 = vrot.slane %v919_v54, 1 }
 0x1d2   : > { %5942 = vmatprep.mubr.msk.f32.mxu1 %vm6734_vm1, %v10610_v12  ;;  %v1172_v35 = vrot.slane %v7339_v28, 1  ;;  %v1220_v45 = vsel %vm1085_vm2, %v1170_v20, %v1171_v34  ;;  %v1251_v63 = vadd.f32 %v1226_v42, %v1141_v39  ;;  %v1387_v1 = vrot.slane %v1333_v49, 1 }
 0x1d3   : > { %v1280_v53 = vrot.slane %v1220_v45, 1  ;;  %v1388_v3 = vrot.slane %v1332_v48, 1  ;;  %v1252_v4 = vadd.f32 %v1227_v43, %v1142_v41  ;;  %v1336_v5 = vmul.f32 0.10936069, %v7360_v46 }
 0x1d4   : > { %v7352_v44 = vsel %vm1085_vm2, %v1171_v34, %v1172_v35  ;;  %v1229_v8 = vmul.f32 0.036000773, %v1221_v27  ;;  %v1033_v10 = vmul.f32 0.0010283801, %v909_v17  ;;  %v1121_v11 = vmul.f32 0.007598758, %v7339_v28  ;;  %v7388_v17 = vpop.f32.mrf.mxu0 }
 0x1d5   : > { %v1281_v59 = vrot.slane %v7352_v44, 1  ;;  %v1331_v14 = vsel %vm1085_vm2, %v1279_v33, %v1280_v53  ;;  %v1253_v16 = vadd.f32 %v1228_v55, %v1143_v50  ;;  %v7384_v20 = vsel %vm1085_vm2, %v1061_v62, %v1062_v60 }
 0x1d6   : > { %v1107_v13 = vsel %vm1085_vm2, %v1060_v15, %v1061_v62  ;;  %v1337_v21 = vmul.f32 0.10936069, %v1333_v49  ;;  %v1338_v22 = vmul.f32 0.10936069, %v1332_v48  ;;  %v7392_v23 = vsel %vm1085_vm2, %v1387_v1, %v1388_v3  ;;  %v929_v40 = vpop.f32.mrf.mxu0 }
 0x1d7   : > { %v7380_v18 = vsel %vm1085_vm2, %v1280_v53, %v1281_v59  ;;  %v7398_v24 = vsel %vm1085_vm2, %v10606_v0, %v1387_v1  ;;  %v1361_v25 = vadd.f32 %v1336_v5, %v1251_v63  ;;  %v1145_v26 = vadd.f32 %v1120_v6, %v1032_v51 }
 0x1d8   : > { %v1446_v27 = vmul.f32 0.21300554, %v7398_v24  ;;  %v1389_v30 = vrot.slane %v1331_v14, 1  ;;  %v1390_v15 = vrot.slane %v7380_v18, 1  ;;  %v7403_v31 = vmul.f32 0.0010283801, %v7345_v38 }
 0x1d9   : > { %v1173_v32 = vrot.slane %v1107_v13, 1  ;;  %v1174_v33 = vrot.slane %v7384_v20, 1  ;;  %v1254_v34 = vadd.f32 %v1229_v8, %v1144_v7  ;;  %v10605_v36 = vrot.slane %v7398_v24, 1 }
 0x1da   : > { %v1497_v37 = vrot.slane %v7392_v23, 1  ;;  %v1230_v39 = vmul.f32 0.036000773, %v1220_v45  ;;  %v1362_v41 = vadd.f32 %v1337_v21, %v1252_v4  ;;  %v1363_v42 = vadd.f32 %v1338_v22, %v1253_v16 }
 0x1db   : > { %v1447_v43 = vmul.f32 0.21300554, %v7392_v23  ;;  %v1146_v47 = vadd.f32 %v1121_v11, %v1033_v10  ;;  %v7409_v48 = vadd.f32 %v1446_v27, %v1361_v25  ;;  %v1442_v38 = vsel %vm1085_vm2, %v1388_v3, %v1389_v30  ;;  %v7433_v3 = vpop.f32.mrf.mxu0 }
 0x1dc   : > { %v1035_v49 = vmul.f32 0.0010283801, %v919_v54  ;;  %v1064_v50 = vrot.slane %v7388_v17, 1  ;;  %v7418_v51 = vsel %vm1085_vm2, %v1389_v30, %v1390_v15  ;;  %v1217_v45 = vsel %vm1085_vm2, %v1173_v32, %v1174_v33 }
 0x1dd   : > { %10738 = vst [vmem:[#allocation27_spill] sm:$0xff] %v7409_v48  ;;  %10739 = vst [vmem:[#allocation28_spill] sm:$0xff] %v7418_v51  ;;  %v1218_v53 = vsel %vm1085_vm2, %v1172_v35, %v1173_v32  ;;  %v1063_v55 = vrot.slane %v929_v40, 1  ;;  %v7430_v54 = vsel %vm1085_vm2, %v10605_v36, %v1497_v37  ;;  %v1255_v62 = vadd.f32 %v1230_v39, %v1145_v26  ;;  %v939_v23 = vpop.f32.mrf.mxu0 }
 0x1de   : > { %v1339_v63 = vmul.f32 0.10936069, %v1331_v14  ;;  %v1340_v1 = vmul.f32 0.10936069, %v7380_v18  ;;  %v1498_v4 = vrot.slane %v1442_v38, 1  ;;  %v10604_v6 = vrot.slane %v7418_v51, 1 }
 0x1df   : > { %v1122_v5 = vmul.f32 0.007598758, %v1107_v13  ;;  %v1123_v28 = vmul.f32 0.007598758, %v7384_v20  ;;  %v1104_v35 = vsel %vm1085_vm2, %v1063_v55, %v1064_v50  ;;  %v1282_v7 = vrot.slane %v1218_v53, 1 }
 0x1e0   : > { %v1283_v8 = vrot.slane %v1217_v45, 1  ;;  %v1105_v10 = vsel %vm1085_vm2, %v1062_v60, %v1063_v55  ;;  %v7441_v11 = vadd.f32 %v1447_v43, %v1362_v41  ;;  %v7444_v14 = vmul.f32 0.26601171, %v7430_v54  ;;  %v7481_v55 = vpop.f32.mrf.mxu0 }
 0x1e1   : > { %v1176_v16 = vrot.slane %v1104_v35, 1  ;;  %v1066_v13 = vrot.slane %v7433_v3, 1  ;;  %v1364_v17 = vadd.f32 %v1339_v63, %v1254_v34  ;;  %v7447_v20 = vadd.f32 %v1340_v1, %v1255_v62 }
 0x1e2   : > { %10740 = vst [vmem:[#allocation29_spill] sm:$0xff] %v7441_v11  ;;  %10741 = vst [vmem:[#allocation30_spill] sm:$0xff] %v7444_v14  ;;  %v1448_v21 = vmul.f32 0.21300554, %v1442_v38  ;;  %v1449_v22 = vmul.f32 0.21300554, %v7418_v51  ;;  %v1147_v25 = vadd.f32 %v1122_v5, %v7367_v52  ;;  %v7451_v26 = vadd.f32 %v1123_v28, %v1035_v49 }
 0x1e3   : > { %v1175_v60 = vrot.slane %v1105_v10, 1  ;;  %v1065_v27 = vrot.slane %v939_v23, 1  ;;  %v7457_v30 = vsel %vm1085_vm2, %v1498_v4, %v10604_v6  ;;  %v1231_v32 = vmul.f32 0.036000773, %v1218_v53 }
 0x1e4   : > { %10742 = vst [vmem:[#allocation31_spill] sm:$0xff] %v7457_v30  ;;  %v1328_v34 = vsel %vm1085_vm2, %v1282_v7, %v1283_v8  ;;  %v1329_v39 = vsel %vm1085_vm2, %v1281_v59, %v1282_v7  ;;  %v7479_v44 = vsel %vm1085_vm2, %v1497_v37, %v1498_v4  ;;  %v1232_v59 = vmul.f32 0.036000773, %v1217_v45 }
 0x1e5   : > { %v1215_v52 = vsel %vm1085_vm2, %v1175_v60, %v1176_v16  ;;  %v1216_v41 = vsel %vm1085_vm2, %v1174_v33, %v1175_v60  ;;  %v7473_v43 = vsel %vm1085_vm2, %v1065_v27, %v1066_v13  ;;  %v1103_v38 = vsel %vm1085_vm2, %v1064_v50, %v1065_v27  ;;  %10743 = vst [vmem:[#allocation32_spill] sm:$0xff] %v7479_v44 }
 0x1e6   : > { %v1284_v49 = vrot.slane %v1216_v41, 1  ;;  %v1285_v53 = vrot.slane %v1215_v52, 1  ;;  %v7483_v62 = vadd.f32 %v1448_v21, %v1363_v42  ;;  %v7485_v33 = vadd.f32 %v1449_v22, %v1364_v17  ;;  %v949_v21 = vpop.f32.mrf.mxu0 }
 0x1e7   : > { %v1177_v63 = vrot.slane %v1103_v38, 1  ;;  %v10613_v1 = vrot.slane %v7473_v43, 1  ;;  %v1256_v5 = vadd.f32 %v1231_v32, %v1146_v47  ;;  %v1341_v28 = vmul.f32 0.10936069, %v1328_v34 }
 0x1e8   : > { %10744 = vst [vmem:[#allocation33_spill] sm:$0xff] %v7483_v62  ;;  %10745 = vst [vmem:[#allocation34_spill] sm:$0xff] %v7485_v33  ;;  %v1391_v7 = vrot.slane %v1329_v39, 1  ;;  %v1392_v50 = vrot.slane %v1328_v34, 1  ;;  %v7489_v60 = vmul.f32 0.26601171, %v7479_v44  ;;  %v1257_v27 = vadd.f32 %v1232_v59, %v1147_v25  ;;  %v7526_v56 = vpop.f32.mrf.mxu0 }
 0x1e9   : > { %v1037_v4 = vmul.f32 0.0010283801, %v929_v40  ;;  %v7495_v42 = vsel %vm1085_vm2, %v1284_v49, %v1285_v53  ;;  %v1327_v17 = vsel %vm1085_vm2, %v1283_v8, %v1284_v49  ;;  %v7500_v47 = vmul.f32 0.0010283801, %v7433_v3  ;;  %v2653_v62 = vld [vmem:[#allocation12 + $0x10] sm:$0xff] }
 0x1ea   : > { %10746 = vst [vmem:[#allocation35_spill] sm:$0xff] %v7489_v60  ;;  %v1125_v22 = vmul.f32 0.007598758, %v1104_v35  ;;  %v1038_v32 = vmul.f32 0.0010283801, %v939_v23  ;;  %v7506_v34 = vsel %vm1085_vm2, %v1177_v63, %v10613_v1  ;;  %v1214_v40 = vsel %vm1085_vm2, %v1176_v16, %v1177_v63 }
 0x1eb   : > { %v1366_v25 = vadd.f32 %v1341_v28, %v1256_v5  ;;  %v7512_v39 = vsel %vm1085_vm2, %v1391_v7, %v1392_v50  ;;  %v7518_v35 = vsel %vm1085_vm2, %v1390_v15, %v1391_v7  ;;  %v1124_v8 = vmul.f32 0.007598758, %v1105_v10 }
 0x1ec   : > { %v1393_v23 = vrot.slane %v1327_v17, 1  ;;  %v1394_v38 = vrot.slane %v7495_v42, 1  ;;  %v1068_v59 = vrot.slane %v7481_v55, 1  ;;  %v1067_v49 = vrot.slane %v949_v21, 1 }
 0x1ed   : > { %v7523_v16 = vmul.f32 0.21300554, %v7518_v35  ;;  %v1233_v63 = vmul.f32 0.036000773, %v1216_v41  ;;  %v1286_v5 = vrot.slane %v1214_v40, 1  ;;  %v10612_v28 = vrot.slane %v7506_v34, 1 }
 0x1ee   : > { %v1150_v10 = vadd.f32 %v1125_v22, %v1037_v4  ;;  %v1342_v7 = vmul.f32 0.10936069, %v1327_v17  ;;  %v1149_v45 = vadd.f32 %v1124_v8, %v7403_v31  ;;  %v1234_v37 = vmul.f32 0.036000773, %v1215_v52  ;;  %v959_v22 = vpop.f32.mrf.mxu0 }
 0x1ef   : > { %v1126_v6 = vmul.f32 0.007598758, %v7473_v43  ;;  %v10616_v36 = vrot.slane %v7526_v56, 1  ;;  %v7535_v41 = vsel %vm1085_vm2, %v1393_v23, %v1394_v38  ;;  %v7539_v0 = vsel %vm1085_vm2, %v1392_v50, %v1393_v23 }
 0x1f0   : > { %10747 = vst [vmem:[#allocation36_spill] sm:$0xff] %v7539_v0  ;;  %v1100_v18 = vsel %vm1085_vm2, %v1067_v49, %v1068_v59  ;;  %v1101_v31 = vsel %vm1085_vm2, %v1066_v13, %v1067_v49  ;;  %v1258_v52 = vadd.f32 %v1233_v63, %v7451_v26  ;;  %v1343_v4 = vmul.f32 0.10936069, %v7495_v42 }
 0x1f1   : > { %v7553_v17 = vsel %vm1085_vm2, %v1286_v5, %v10612_v28  ;;  %v1325_v50 = vsel %vm1085_vm2, %v1285_v53, %v1286_v5  ;;  %v1367_v8 = vadd.f32 %v1342_v7, %v1257_v27  ;;  %v1451_v3 = vmul.f32 0.21300554, %v7539_v0 }
 0x1f2   : > { %v1452_v23 = vmul.f32 0.21300554, %v7535_v41  ;;  %v1069_v13 = vrot.slane %v959_v22, 1  ;;  %v10614_v26 = vrot.slane %v7539_v0, 1  ;;  %v1503_v42 = vrot.slane %v7535_v41, 1 }
 0x1f3   : > { %v7562_v49 = vmul.f32 0.0010283801, %v7481_v55  ;;  %v1179_v63 = vrot.slane %v1101_v31, 1  ;;  %v1395_v15 = vrot.slane %v1325_v50, 1  ;;  %v10615_v29 = vrot.slane %v7553_v17, 1 }
 0x1f4   : > { %v1040_v9 = vmul.f32 0.0010283801, %v949_v21  ;;  %v1180_v53 = vrot.slane %v1100_v18, 1  ;;  %v1259_v5 = vadd.f32 %v1234_v37, %v1149_v45  ;;  %v1368_v27 = vadd.f32 %v1343_v4, %v1258_v52 }
 0x1f5   : > { %v1151_v7 = vadd.f32 %v1126_v6, %v1038_v32  ;;  %v1235_v61 = vmul.f32 0.036000773, %v1214_v40  ;;  %v7565_v12 = vadd.f32 %v1451_v3, %v1366_v25  ;;  %v7567_v28 = vadd.f32 %v1452_v23, %v1367_v8  ;;  %v7587_v40 = vpop.f32.mrf.mxu0 }
 0x1f6   : > { %v1127_v1 = vmul.f32 0.007598758, %v1101_v31  ;;  %v7573_v55 = vsel %vm1085_vm2, %v1069_v13, %v10616_v36  ;;  %v7579_v21 = vsel %vm1085_vm2, %v10614_v26, %v1503_v42  ;;  %v1128_v37 = vmul.f32 0.007598758, %v1100_v18 }
 0x1f7   : > { %10748 = vst [vmem:[#allocation37_spill] sm:$0xff] %v7565_v12  ;;  %10749 = vst [vmem:[#allocation38_spill] sm:$0xff] %v7567_v28  ;;  %v10751_v6 = vrot.slane %v7473_v43, 1  ;;  %v1099_v32 = vsel %vm1085_vm2, %v1068_v59, %v1069_v13  ;;  %v1344_v25 = vmul.f32 0.10936069, %v1325_v50  ;;  %v7593_v41 = vsel %vm1085_vm2, %v1395_v15, %v10615_v29 }
 0x1f8   : > { %10750 = vst [vmem:[#allocation39_spill] sm:$0xff] %v7579_v21  ;;  %v1436_v18 = vsel %vm1085_vm2, %v1394_v38, %v1395_v15  ;;  %v1211_v43 = vsel %vm1085_vm2, %v1179_v63, %v1180_v53  ;;  %v1260_v31 = vadd.f32 %v1235_v61, %v1150_v10  ;;  %v1345_v52 = vmul.f32 0.10936069, %v7553_v17  ;;  %v7613_v10 = vpop.f32.mrf.mxu0 }
 0x1f9   : > { %v1212_v45 = vsel %vm1085_vm2, %v10751_v6, %v1179_v63  ;;  %v1181_v4 = vrot.slane %v1099_v32, 1  ;;  %v1182_v59 = vrot.slane %v7573_v55, 1  ;;  %v7602_v50 = vmul.f32 0.26601171, %v7579_v21 }
 0x1fa   : > { %v7606_v3 = vadd.f32 %v1127_v1, %v7500_v47  ;;  %v1288_v23 = vrot.slane %v1212_v45, 1  ;;  %v1504_v13 = vrot.slane %v1436_v18, 1  ;;  %v1289_v15 = vrot.slane %v1211_v43, 1 }
 0x1fb   : > { %10752 = vst [vmem:[#allocation40_spill] sm:$0xff] %v7602_v50  ;;  %v7611_v61 = vsel %vm1085_vm2, %v1181_v4, %v1182_v59  ;;  %v1369_v63 = vadd.f32 %v1344_v25, %v1259_v5  ;;  %v1453_v6 = vmul.f32 0.21300554, %v1436_v18  ;;  %v1454_v26 = vmul.f32 0.21300554, %v7593_v41 }
 0x1fc   : > { %v1210_v8 = vsel %vm1085_vm2, %v1180_v53, %v1181_v4  ;;  %v7618_v1 = vadd.f32 %v1345_v52, %v1260_v31  ;;  %v7620_v47 = vadd.f32 %v1128_v37, %v1040_v9  ;;  %v1291_v36 = vrot.slane %v7611_v61, 1  ;;  %v7641_v31 = vpop.f32.mrf.mxu0 }
 0x1fd   : > { %v1290_v29 = vrot.slane %v1210_v8, 1  ;;  %v10753_v38 = vrot.slane %v7506_v34, 1  ;;  %v1042_v44 = vmul.f32 0.0010283801, %v959_v22  ;;  %v1072_v5 = vrot.slane %v7587_v40, 1 }
 0x1fe   : > { %v1071_v25 = vrot.slane %v7613_v10, 1  ;;  %v10754_v18 = vrot.slane %v7593_v41, 1  ;;  %v7637_v9 = vsel %vm1085_vm2, %v1503_v42, %v1504_v13  ;;  %v1236_v37 = vmul.f32 0.036000773, %v1212_v45 }
 0x1ff   : > { %v1323_v21 = vsel %vm1085_vm2, %v10753_v38, %v1288_v23  ;;  %10756 = vst [vmem:[#allocation42_spill] sm:$0xff] %v7637_v9  ;;  %v1322_v34 = vsel %vm1085_vm2, %v1288_v23, %v1289_v15  ;;  %v7643_v22 = vadd.f32 %v1453_v6, %v1368_v27  ;;  %v7645_v52 = vadd.f32 %v1454_v26, %v1369_v63 }
 0x200   : > { %v7633_v53 = vsel %vm1085_vm2, %v1504_v13, %v10754_v18  ;;  %v7649_v4 = vsel %vm1085_vm2, %v1290_v29, %v1291_v36  ;;  %v1321_v38 = vsel %vm1085_vm2, %v1289_v15, %v1290_v29  ;;  %v7654_v42 = vmul.f32 0.26601171, %v7637_v9 }
 0x201   : > { %10755 = vst [vmem:[#allocation41_spill] sm:$0xff] %v7633_v53  ;;  %10757 = vst [vmem:[#allocation43_spill] sm:$0xff] %v7643_v22  ;;  %v1397_v45 = vrot.slane %v1323_v21, 1  ;;  %v1096_v23 = vsel %vm1085_vm2, %v1071_v25, %v1072_v5  ;;  %v10760_v13 = vrot.slane %v7526_v56, 1  ;;  %v1398_v6 = vrot.slane %v1322_v34, 1  ;;  %v979_v21 = vpop.f32.mrf.mxu0 }
 0x202   : > { %10758 = vst [vmem:[#allocation44_spill] sm:$0xff] %v7645_v52  ;;  %10759 = vst [vmem:[#allocation45_spill] sm:$0xff] %v7654_v42  ;;  %v1129_v18 = vmul.f32 0.007598758, %v1099_v32  ;;  %v1237_v52 = vmul.f32 0.036000773, %v1211_v43  ;;  %v1261_v29 = vadd.f32 %v1236_v37, %v1151_v7 }
 0x203   : > { %v1097_v26 = vsel %vm1085_vm2, %v10760_v13, %v1071_v25  ;;  %v1399_v15 = vrot.slane %v1321_v38, 1  ;;  %v10621_v22 = vrot.slane %v7649_v4, 1  ;;  %v1184_v28 = vrot.slane %v1096_v23, 1 }
 0x204   : > { %v1183_v42 = vrot.slane %v1097_v26, 1  ;;  %v10622_v50 = vrot.slane %v7641_v31, 1  ;;  %v1073_v56 = vrot.slane %v979_v21, 1  ;;  %v1346_v12 = vmul.f32 0.10936069, %v1322_v34 }
 0x205   : > { %v10761_v25 = vrot.slane %v7553_v17, 1  ;;  %v1130_v32 = vmul.f32 0.007598758, %v7573_v55  ;;  %v7674_v7 = vmul.f32 0.0010283801, %v7587_v40  ;;  %v7678_v43 = vsel %vm1085_vm2, %v1397_v45, %v1398_v6 }
 0x206   : > { %v1154_v37 = vadd.f32 %v1129_v18, %v7562_v49  ;;  %v1239_v26 = vmul.f32 0.036000773, %v7611_v61  ;;  %v7684_v17 = vsel %vm1085_vm2, %v1183_v42, %v1184_v28  ;;  %v1238_v34 = vmul.f32 0.036000773, %v1210_v8 }
 0x207   : > { %v7670_v13 = vsel %vm1085_vm2, %v10761_v25, %v1397_v45  ;;  %v7690_v55 = vsel %vm1085_vm2, %v1399_v15, %v10621_v22  ;;  %v1208_v40 = vsel %vm1085_vm2, %v1182_v59, %v1183_v42  ;;  %v1095_v45 = vsel %vm1085_vm2, %v1072_v5, %v1073_v56 }
 0x208   : > { %v7698_v49 = vsel %vm1085_vm2, %v1398_v6, %v1399_v15  ;;  %v1292_v61 = vrot.slane %v1208_v40, 1  ;;  %v7705_v18 = vsel %vm1085_vm2, %v1073_v56, %v10622_v50  ;;  %v1262_v25 = vadd.f32 %v1237_v52, %v7606_v3  ;;  %v7718_v52 = vpop.f32.mrf.mxu0 }
 0x209   : > { %v7709_v59 = vmul.f32 0.21300554, %v7670_v13  ;;  %v1347_v42 = vmul.f32 0.10936069, %v1321_v38  ;;  %v1371_v27 = vadd.f32 %v1346_v12, %v1261_v29  ;;  %v1155_v15 = vadd.f32 %v1130_v32, %v1042_v44 }
 0x20a   : > { %v1185_v63 = vrot.slane %v1095_v45, 1  ;;  %v10625_v8 = vrot.slane %v7690_v55, 1  ;;  %v1319_v56 = vsel %vm1085_vm2, %v1291_v36, %v1292_v61  ;;  %v1263_v50 = vadd.f32 %v1238_v34, %v7620_v47 }
 0x20b   : > { %v1264_v5 = vadd.f32 %v1239_v26, %v1154_v37  ;;  %v1348_v12 = vmul.f32 0.10936069, %v7649_v4  ;;  %v10762_v38 = vrot.slane %v7684_v17, 1  ;;  %v1372_v29 = vadd.f32 %v1347_v42, %v1262_v25  ;;  %v989_v42 = vpop.f32.mrf.mxu0 }
 0x20c   : > { %v1456_v32 = vmul.f32 0.21300554, %v7698_v49  ;;  %v1457_v36 = vmul.f32 0.21300554, %v7690_v55  ;;  %v1043_v6 = vmul.f32 0.0010283801, %v7613_v10  ;;  %v1206_v37 = vsel %vm1085_vm2, %v1184_v28, %v1185_v63 }
 0x20d   : > { %v7726_v44 = vsel %vm1085_vm2, %v1292_v61, %v10762_v38  ;;  %v1131_v3 = vmul.f32 0.007598758, %v1096_v23  ;;  %v1401_v22 = vrot.slane %v1319_v56, 1  ;;  %v7732_v47 = vmul.f32 0.0010283801, %v7641_v31  ;;  %v2652_v61 = vld [vmem:[#allocation12 + $0x8] sm:$0xff] }
 0x20e   : > { %v10763_v26 = vrot.slane %v7698_v49, 1  ;;  %v1045_v25 = vmul.f32 0.0010283801, %v979_v21  ;;  %v10765_v10 = vrot.slane %v7705_v18, 1  ;;  %v1373_v38 = vadd.f32 %v1348_v12, %v1263_v50 }
 0x20f   : > { %v1240_v28 = vmul.f32 0.036000773, %v1208_v40  ;;  %v10626_v9 = vrot.slane %v7718_v52, 1  ;;  %v1075_v33 = vrot.slane %v989_v42, 1  ;;  %v1481_v60 = vadd.f32 %v1456_v32, %v1371_v27 }
 0x210   : > { %v7742_v34 = vsel %vm1085_vm2, %v10763_v26, %v10625_v8  ;;  %v7749_v23 = vsel %vm1085_vm2, %v1185_v63, %v10765_v10  ;;  %v7752_v11 = vadd.f32 %v1457_v36, %v1372_v29  ;;  %v1294_v8 = vrot.slane %v1206_v37, 1 }
 0x211   : > { %10764 = vst [vmem:[#allocation46_spill] sm:$0xff] %v7742_v34  ;;  %v1566_v26 = vmul.f32 0.26601171, %v7742_v34  ;;  %v7758_v63 = vadd.f32 %v1131_v3, %v1043_v6  ;;  %v10767_v50 = vrot.slane %v7649_v4, 1  ;;  %v1349_v27 = vmul.f32 0.10936069, %v1319_v56 }
 0x212   : > { %v10768_v29 = vrot.slane %v7726_v44, 1  ;;  %v1132_v36 = vmul.f32 0.007598758, %v1095_v45  ;;  %v1133_v6 = vmul.f32 0.007598758, %v7705_v18  ;;  %v10769_v4 = vmov 0.0  }
 0x213   : > { %v1430_v40 = vsel %vm1085_vm2, %v10767_v50, %v1401_v22  ;;  %v1265_v10 = vadd.f32 %v1240_v28, %v1155_v15  ;;  %v1350_v50 = vmul.f32 0.10936069, %v7726_v44  ;;  %v7781_v56 = vsel %vm1085_vm2, %v1075_v33, %v10626_v9 }
 0x214   : > { %v7771_v32 = vsel %vm1085_vm2, %v1401_v22, %v10768_v29  ;;  %v10770_v22 = vrot.slane %v7641_v31, 1  ;;  %v2651_v29 = vld [vmem:[#allocation12] sm:$0xff]  ;;  %v10772_v15 = vrot.slane %v7684_v17, 1  ;;  %v1458_v9 = vmul.f32 0.21300554, %v1430_v40 }
 0x215   : > { %v1374_v17 = vadd.f32 %v1349_v27, %v1264_v5  ;;  %v10775_v5 = vrot.slane %v7690_v55, 1  ;;  %v10784_v34 = vrot.slane %v7749_v23, 1 }
 0x216   : > { %v1093_v45 = vsel %vm1085_vm2, %v10770_v22, %v1075_v33  ;;  %v1317_v28 = vsel %vm1085_vm2, %v10772_v15, %v1294_v8  ;;  %v10774_v33 = vrot.slane %v7749_v23, 1  ;;  %v7811_v15 = vpop.f32.mrf.mxu0  ;;  %v1483_v55 = vadd.f32 %v1458_v9, %v1373_v38 }
 0x217   : > { %v1187_v14 = vrot.slane %v1093_v45, 1 }
 0x218   : > { %v7801_v22 = vsel %vm1085_vm2, %v1294_v8, %v10774_v33  ;;  %v1375_v8 = vadd.f32 %v1350_v50, %v1265_v10  ;;  %v7815_v33 = vadd.f32 %v1133_v6, %v1045_v25  ;;  %v10778_v10 = vrot.slane %v7705_v18, 1  ;;  %v7850_v38 = vpop.f32.mrf.mxu0 }
 0x219   : > { %v10780_v6 = vrot.slane %v7771_v32, 1 }
 0x27d   : > { %v7755_v21 = vpop.f32.mrf.mxu1 }
 0x27e   : > { %10766 = vst [vmem:[#allocation47_spill] sm:$0xff] %v7755_v21  ;;  %5958 = vmatmul.mubr.msk.f32.vlgmr.msra.gmra.mxu0 %vm2665_vm3, %v7755_v21 }
 0x27f   : > { %v5902_v3 = vpop.f32.mrf.mxu1  ;;  %5960 = vmatprep.mubr.msk.f32.mxu0 %vm6734_vm1, %v10769_v4  ;;  %6003 = vmatpush3.msra.mxu0 %v2653_v62  ;;  %v1510_v62 = vrot.slane %v1430_v40, 1  ;;  %v7809_v40 = vmul.f32 0.0010283801, %v989_v42  ;;  %v10777_v42 = vrot.slane %v7781_v56, 1 }
 0x280   : > { %6004 = vmatprep.subr.mxu0 %v10769_v4  ;;  %v7788_v3 = vadd.f32 %v1566_v26, %v1481_v60  ;;  %v1459_v26 = vmul.f32 0.21300554, %v7771_v32  ;;  %v1241_v60 = vmul.f32 0.036000773, %v1206_v37  ;;  %v1204_v37 = vsel %vm1085_vm2, %v10778_v10, %v1187_v14 }
 0x281   : > { %v7794_v12 = vpop.f32.mrf.mxu1  ;;  %6005 = vmatpush3.msra.mxu0 %v2652_v61  ;;  %v1157_v61 = vadd.f32 %v1132_v36, %v7674_v7  ;;  %v7821_v27 = vsel %vm1085_vm2, %v10775_v5, %v1510_v62  ;;  %v10631_v7 = vrot.slane %v7801_v22, 1  ;;  %v7828_v36 = vsel %vm1085_vm2, %v1187_v14, %v10777_v42 }
 0x282   : > { %10771 = vst [vmem:[#allocation48_spill] sm:$0xff] %v7788_v3  ;;  %10773 = vst [vmem:[#allocation49_spill] sm:$0xff] %v7794_v12  ;;  %5961 = vmatmul.mubr.msk.f32.gmra.mxu0 %vm2665_vm3, %v7794_v12  ;;  %6006 = vmatprep.subr.mxu0 %v10769_v4  ;;  %v1403_v3 = vrot.slane %v1317_v28, 1  ;;  %v7840_v50 = vsel %vm1085_vm2, %v1510_v62, %v10780_v6  ;;  %v7846_v18 = vadd.f32 %v1459_v26, %v1374_v17 }
 0x283   : > { %v5905_v31 = vpop.f32.mrf.mxu1  ;;  %6007 = vmatpush3.msra.mxu0 %v2651_v29  ;;  %6008 = vmatprep.mubr.msk.f32.mxu0 %vm6734_vm1, %v10769_v4  ;;  %10776 = vst [vmem:[#allocation50_spill] sm:$0xff] %v7821_v27  ;;  %10781 = vst [vmem:[#allocation52_spill] sm:$0xff] %v7840_v50  ;;  %v1242_v29 = vmul.f32 0.036000773, %v7749_v23  ;;  %v1567_v14 = vmul.f32 0.26601171, %v7821_v27  ;;  %v1266_v28 = vadd.f32 %v1241_v60, %v7758_v63 }
 0x284   : > { %10782 = vst [vmem:[#allocation53_spill] sm:$0xff] %v7846_v18  ;;  %v1568_v31 = vmul.f32 0.26601171, %v7840_v50  ;;  %v1296_v9 = vrot.slane %v1204_v37, 1  ;;  %v10783_v42 = vrot.slane %v7726_v44, 1  ;;  %v1297_v17 = vrot.slane %v7828_v36, 1  ;;  %v7901_v50 = vpop.f32.mrf.mxu0 }
 0x285   : > { %v7834_v25 = vpop.f32.mrf.mxu1  ;;  %v1077_v26 = vrot.slane %v7850_v38, 1  ;;  %v7868_v62 = vsel %vm1085_vm2, %v1403_v3, %v10631_v7  ;;  %v10785_v63 = vrot.slane %v7811_v15, 1  ;;  %v1135_v7 = vmul.f32 0.007598758, %v7781_v56 }
 0x286   : > { %10779 = vst [vmem:[#allocation51_spill] sm:$0xff] %v7834_v25  ;;  %6009 = vmatmul.mubr.msk.f32.vlgmr.msra.gmra.mxu0 %vm2665_vm3, %v7755_v21  ;;  %v1428_v10 = vsel %vm1085_vm2, %v10783_v42, %v1403_v3  ;;  %v7872_v21 = vadd.f32 %v1242_v29, %v1157_v61  ;;  %v1134_v42 = vmul.f32 0.007598758, %v1093_v45  ;;  %v1315_v6 = vsel %vm1085_vm2, %v10784_v34, %v1296_v9 }
 0x287   : > { %v5908_v5 = vpop.f32.mrf.mxu1  ;;  %6011 = vmatprep.mubr.msk.f32.mxu0 %vm6734_vm1, %v10769_v4  ;;  %v7882_v60 = vsel %vm1085_vm2, %v1077_v26, %v10785_v63  ;;  %v1512_v3 = vrot.slane %v1428_v10, 1  ;;  %v7889_v45 = vsel %vm1085_vm2, %v1296_v9, %v1297_v17  ;;  %v10786_v23 = vrot.slane %v7718_v52, 1 }
 0x288   : > { %v1351_v5 = vmul.f32 0.10936069, %v7801_v22  ;;  %v1460_v29 = vmul.f32 0.21300554, %v1428_v10  ;;  %v10641_v63 = vrot.slane %v7868_v62, 1  ;;  %v10640_v27 = vrot.slane %v7882_v60, 1 }
 0x289   : > { %v7870_v44 = vpop.f32.mrf.mxu1  ;;  %v1091_v34 = vsel %vm1085_vm2, %v10786_v23, %v1077_v26  ;;  %v7904_v9 = vadd.f32 %v1567_v14, %v7752_v11  ;;  %v7906_v52 = vadd.f32 %v1568_v31, %v1483_v55  ;;  %v1405_v26 = vrot.slane %v1315_v6, 1 }
 0x28a   : > { %6012 = vmatmul.mubr.msk.f32.gmra.mxu0 %vm2665_vm3, %v7794_v12  ;;  %v1189_v12 = vrot.slane %v1091_v34, 1  ;;  %v7908_v18 = vadd.f32 %v1351_v5, %v1266_v28  ;;  %v1243_v48 = vmul.f32 0.036000773, %v1204_v37  ;;  %v1406_v53 = vrot.slane %v7889_v45, 1 }
 0x28b   : > { %v7895_v61 = vpop.f32.mrf.mxu1  ;;  %6014 = vmatprep.mubr.msk.f32.mxu0 %vm6734_vm1, %v10769_v4  ;;  %10787 = vst [vmem:[#allocation54_spill] sm:$0xff] %v7904_v9  ;;  %10788 = vst [vmem:[#allocation55_spill] sm:$0xff] %v7906_v52  ;;  %v7912_v10 = vmul.f32 0.0010283801, %v7811_v15  ;;  %v10789_v11 = vrot.slane %v7771_v32, 1  ;;  %v1159_v37 = vadd.f32 %v1134_v42, %v7732_v47  ;;  %v10791_v28 = vrot.slane %v7781_v56, 1  ;;  %v7946_v56 = vpop.f32.mrf.mxu0 }
 0x28c   : > { %v7918_v34 = vsel %vm1085_vm2, %v1189_v12, %v10640_v27  ;;  %v1485_v27 = vadd.f32 %v1460_v29, %v1375_v8  ;;  %v7938_v32 = vsel %vm1085_vm2, %v1512_v3, %v10641_v63  ;;  %v7944_v47 = vadd.f32 %v1135_v7, %v7809_v40 }
 0x28d   : > { %v5926_v23 = vpop.f32.mrf.mxu1  ;;  %v7926_v55 = vsel %vm1085_vm2, %v10789_v11, %v1512_v3  ;;  %v1202_v14 = vsel %vm1085_vm2, %v10791_v28, %v1189_v12  ;;  %v1570_v12 = vmul.f32 0.26601171, %v7938_v32  ;;  %v10793_v42 = vrot.slane %v7801_v22, 1 }
 0x28e   : > { %6015 = vmatmul.mubr.msk.f32.gmra.mxu0 %vm2665_vm3, %v7834_v25  ;;  %10790 = vst [vmem:[#allocation56_spill] sm:$0xff] %v7926_v55  ;;  %v7941_v11 = vmul.f32 0.26601171, %v7926_v55  ;;  %v1298_v29 = vrot.slane %v1202_v14, 1  ;;  %v1244_v63 = vmul.f32 0.036000773, %v7828_v36  ;;  %v1268_v31 = vadd.f32 %v1243_v48, %v7815_v33 }
 0x28f   : > { %v2549_v5 = vpop.f32.mrf.mxu1  ;;  %v1426_v8 = vsel %vm1085_vm2, %v10793_v42, %v1405_v26  ;;  %v7958_v40 = vsel %vm1085_vm2, %v1405_v26, %v1406_v53  ;;  %v1079_v7 = vrot.slane %v7946_v56, 1  ;;  %v1352_v52 = vmul.f32 0.10936069, %v1315_v6 }
 0x290   : > { %10792 = vst [vmem:[#allocation57_spill] sm:$0xff] %v7941_v11  ;;  %v1353_v22 = vmul.f32 0.10936069, %v7889_v45  ;;  %v10794_v42 = vrot.slane %v7918_v34, 1  ;;  %v1313_v36 = vsel %vm1085_vm2, %v1297_v17, %v1298_v29  ;;  %v1514_v26 = vrot.slane %v1426_v8, 1  ;;  %v5866_v45 = vpop.f32.mrf.mxu0 }
 0x291   : > { %v5929_v3 = vpop.f32.mrf.mxu1  ;;  %v1136_v6 = vmul.f32 0.007598758, %v7882_v60  ;;  %v1515_v9 = vrot.slane %v7958_v40, 1  ;;  %v1407_v11 = vrot.slane %v1313_v36, 1  ;;  %v1461_v55 = vmul.f32 0.21300554, %v1426_v8 }
 0x292   : > { %5931 = vmatpush3.msra.mxu1 %v5929_v3  ;;  %v7966_v28 = vsel %vm1085_vm2, %v1298_v29, %v10794_v42  ;;  %v1048_v3 = vmul.f32 0.0010283801, %v7850_v38  ;;  %v10795_v42 = vrot.slane %v7901_v50, 1  ;;  %v10796_v29 = vrot.slane %v7811_v15, 1 }
 0x293   : > { %v2559_v48 = vpop.f32.mrf.mxu1  ;;  %5932 = vmatprep.subr.mxu1 %v10769_v4  ;;  %v7986_v38 = vadd.f32 %v1570_v12, %v1485_v27  ;;  %v10650_v0 = vrot.slane %v7966_v28, 1  ;;  %v1269_v30 = vadd.f32 %v1244_v63, %v1159_v37  ;;  %v1377_v51 = vadd.f32 %v1352_v52, %v7872_v21 }
 0x294   : > { %5933 = vmatpush3.msra.mxu1 %v2559_v48  ;;  %v7979_v17 = vsel %vm1085_vm2, %v1079_v7, %v10795_v42  ;;  %v1089_v33 = vsel %vm1085_vm2, %v10796_v29, %v1079_v7  ;;  %v7991_v42 = vadd.f32 %v1353_v22, %v1268_v31  ;;  %v7994_v15 = vmul.f32 0.0010283801, %v7901_v50  ;;  %v1019_v29 = vpop.f32.mrf.mxu0 }
 0x295   : > { %5934 = vmatprep.subr.mxu1 %v10769_v4  ;;  %v1462_v7 = vmul.f32 0.21300554, %v7958_v40  ;;  %v7998_v27 = vadd.f32 %v1136_v6, %v1048_v3  ;;  %v1191_v12 = vrot.slane %v1089_v33, 1  ;;  %v10651_v8 = vrot.slane %v7979_v17, 1 }
 0x296   : > { %5935 = vmatpush3.msra.mxu1 %v5926_v23  ;;  %v8003_v63 = vsel %vm1085_vm2, %v1514_v26, %v1515_v9  ;;  %v10797_v21 = vrot.slane %v7868_v62, 1  ;;  %v1245_v23 = vmul.f32 0.036000773, %v1202_v14  ;;  %v1424_v37 = vsel %vm1085_vm2, %v1406_v53, %v1407_v11 }
 0x297   : > { %5936 = vmatprep.subr.mxu1 %v10769_v4  ;;  %v1486_v31 = vadd.f32 %v1461_v55, %v7908_v18  ;;  %v8020_v40 = vsel %vm1085_vm2, %v1407_v11, %v10650_v0  ;;  %v1082_v62 = vrot.slane %v5866_v45, 1  ;;  %v1354_v22 = vmul.f32 0.10936069, %v1313_v36 }
 0x298   : > { %5937 = vmatpush3.msra.mxu1 %v2549_v5  ;;  %v8009_v52 = vsel %vm1085_vm2, %v10797_v21, %v1514_v26  ;;  %v1571_v5 = vmul.f32 0.26601171, %v8003_v63  ;;  %v8027_v53 = vsel %vm1085_vm2, %v1191_v12, %v10651_v8  ;;  %v10798_v18 = vrot.slane %v7882_v60, 1  ;;  %v6361_v21 = vld [vmem:[#allocation9] sm:$0xff] }
 0x299   : > { %5938 = vmatprep.subr.mxu1 %v10769_v4  ;;  %v1081_v14 = vrot.slane %v1019_v29, 1  ;;  %v1487_v11 = vadd.f32 %v1462_v7, %v1377_v51  ;;  %v1516_v36 = vrot.slane %v1424_v37, 1  ;;  %v1270_v3 = vadd.f32 %v1245_v23, %v7944_v47 }
 0x29a   : > { %5939 = vmatpush3.msra.mxu1 %v7870_v44  ;;  %v1200_v55 = vsel %vm1085_vm2, %v10798_v18, %v1191_v12  ;;  %v10648_v6 = vrot.slane %v8020_v40, 1  ;;  %v1050_v60 = vmul.f32 0.0010283801, %v7946_v56  ;;  %v8042_v51 = vadd.f32 %v1571_v5, %v1486_v31  ;;  %v6362_v56 = vld [vmem:[#allocation10 + $0x10] sm:$0xff] }
 0x29b   : > { %5940 = vmatprep.subr.mxu1 %v10769_v4  ;;  %v1300_v45 = vrot.slane %v1200_v55, 1  ;;  %v1355_v7 = vmul.f32 0.10936069, %v7966_v28  ;;  %v10649_v12 = vrot.slane %v8027_v53, 1  ;;  %v1379_v23 = vadd.f32 %v1354_v22, %v1269_v30 }
 0x29c   : > { %5941 = vmatpush3.msra.mxu1 %v7895_v61  ;;  %v10799_v61 = vrot.slane %v7298_v57, 1  ;;  %v1463_v18 = vmul.f32 0.21300554, %v1424_v37  ;;  %v1086_v31 = vsel %vm1085_vm2, %v1081_v14, %v1082_v62  ;;  %v10800_v5 = vrot.slane %v7901_v50, 1  ;;  %v6363_v37 = vld [vmem:[#allocation10 + $0x8] sm:$0xff] }
 0x29d   : > { %5943 = vmatmul.mubr.msk.f32.vlgmr.msra.gmra.mxu1 %vm722_vm0, %v6361_v21  ;;  %6151 = vmatprep.subr.mxu1 %v10769_v4  ;;  %v1464_v57 = vmul.f32 0.21300554, %v8020_v40  ;;  %v1137_v48 = vmul.f32 0.007598758, %v1089_v33  ;;  %v8070_v50 = vsel %vm1085_vm2, %v1516_v36, %v10648_v6  ;;  %v1138_v22 = vmul.f32 0.007598758, %v7979_v17 }
 0x29e   : > { %v1115_v47 = vsel %vm1085_vm2, %v1082_v62, %v10799_v61  ;;  %5945 = vmatprep.mubr.msk.f32.mxu1 %vm6734_vm1, %v10769_v4  ;;  %6154 = vmatpush3.msra.mxu1 %v6362_v56  ;;  %v1087_v21 = vsel %vm1085_vm2, %v10800_v5, %v1081_v14  ;;  %v1535_v61 = vsel %vm1085_vm2, %v1515_v9, %v1516_v36  ;;  %v10801_v56 = vrot.slane %v7918_v34, 1  ;;  %v6364_v34 = vld [vmem:[#allocation9 + $0x8] sm:$0xff]  ;;  %v6365_v36 = vld [vmem:[#allocation10] sm:$0xff] }
 0x29f   : > { %6152 = vmatprep.subr.mxu1 %v10769_v4  ;;  %v1572_v62 = vmul.f32 0.26601171, %v1535_v61  ;;  %v8077_v9 = vsel %vm1085_vm2, %v1300_v45, %v10649_v12  ;;  %v1195_v33 = vrot.slane %v1115_v47, 1  ;;  %v1052_v14 = vmul.f32 0.0010283801, %v1019_v29 }
 0x2a0   : > { %v1311_v30 = vsel %vm1085_vm2, %v10801_v56, %v1300_v45  ;;  %6155 = vmatpush3.msra.mxu1 %v6363_v37  ;;  %v1193_v5 = vrot.slane %v1087_v21, 1  ;;  %v1194_v56 = vrot.slane %v1086_v31, 1  ;;  %v1380_v37 = vadd.f32 %v1355_v7, %v1270_v3  ;;  %v6366_v7 = vld [vmem:[#allocation9 + $0x10] sm:$0xff] }
 0x2a1   : > { %5946 = vmatmul.mubr.msk.f32.gmra.mxu1 %vm722_vm0, %v6364_v34  ;;  %6153 = vmatprep.subr.mxu1 %v10769_v4  ;;  %v1488_v26 = vadd.f32 %v1463_v18, %v7991_v42  ;;  %v1573_v45 = vmul.f32 0.26601171, %v8070_v50  ;;  %v1409_v6 = vrot.slane %v1311_v30, 1  ;;  %v1625_v12 = vrot.slane %v1535_v61, 1 }
 0x2a2   : > { %5948 = vmatprep.mubr.msk.f32.mxu1 %vm6734_vm1, %v10769_v4  ;;  %6156 = vmatpush3.msra.mxu1 %v6365_v36  ;;  %v10652_v34 = vrot.slane %v8070_v50, 1  ;;  %v1410_v44 = vrot.slane %v8077_v9, 1  ;;  %v10802_v29 = vrot.slane %v7309_v2, 1  ;;  %v8091_v0 = vadd.f32 %v1464_v57, %v1379_v23 }
 0x2a3   : > { %v8093_v8 = vadd.f32 %v1572_v62, %v1487_v11  ;;  %v1162_v3 = vadd.f32 %v1137_v48, %v7912_v10  ;;  %v1163_v42 = vadd.f32 %v1138_v22, %v1050_v60  ;;  %v1246_v18 = vmul.f32 0.036000773, %v1200_v55 }
 0x2a4   : > { %v1225_v47 = vsel %vm1085_vm2, %v1195_v33, %v10802_v29  ;;  %v1196_v61 = vsel %vm1085_vm2, %v1194_v56, %v1195_v33  ;;  %v1197_v2 = vsel %vm1085_vm2, %v1193_v5, %v1194_v56  ;;  %v10803_v30 = vrot.slane %v7979_v17, 1 }
 0x2a5   : > { %5949 = vmatmul.mubr.msk.f32.gmra.mxu1 %vm722_vm0, %v6366_v7  ;;  %v8107_v10 = vadd.f32 %v1573_v45, %v1488_v26  ;;  %v1247_v48 = vmul.f32 0.036000773, %v8027_v53  ;;  %v10804_v55 = vrot.slane %v7966_v28, 1  ;;  %v1305_v60 = vrot.slane %v1225_v47, 1 }
 0x2a6   : > { %v1198_v23 = vsel %vm1085_vm2, %v10803_v30, %v1193_v5  ;;  %5963 = vmatprep.mubr.msk.f32.mxu1 %vm6734_vm1, %v10769_v4  ;;  %v8118_v17 = vsel %vm1085_vm2, %v1625_v12, %v10652_v34  ;;  %v10806_v57 = vrot.slane %v8003_v63, 1  ;;  %v8130_v28 = vsel %vm1085_vm2, %v1409_v6, %v1410_v44 }
 0x2a7   : > { %v1422_v11 = vsel %vm1085_vm2, %v10804_v55, %v1409_v6  ;;  %10805 = vst [vmem:[#allocation58_spill] sm:$0xff] %v8118_v17  ;;  %v1140_v62 = vmul.f32 0.007598758, %v1086_v31  ;;  %v10807_v22 = vrot.slane %v7329_v19, 1  ;;  %v1302_v5 = vrot.slane %v1198_v23, 1 }
 0x2a8   : > { %v8124_v26 = vsel %vm1085_vm2, %v10806_v57, %v1625_v12  ;;  %v1303_v56 = vrot.slane %v1197_v2, 1  ;;  %v1304_v36 = vrot.slane %v1196_v61, 1  ;;  %v1271_v12 = vadd.f32 %v1246_v18, %v7998_v27 }
 0x2a9   : > { %v1335_v33 = vsel %vm1085_vm2, %v1305_v60, %v10807_v22  ;;  %5964 = vmatmul.mubr.msk.f32.vlgmr.msra.gmra.mxu1 %vm2665_vm3, %v7834_v25  ;;  %v1356_v45 = vmul.f32 0.10936069, %v8077_v9  ;;  %v1518_v29 = vrot.slane %v1422_v11, 1  ;;  %v1139_v47 = vmul.f32 0.007598758, %v1087_v21 }
 0x2aa   : > { %v8141_v6 = vmul.f32 0.21300554, %v8118_v17  ;;  %v1272_v31 = vadd.f32 %v1247_v48, %v1162_v3  ;;  %v1465_v7 = vmul.f32 0.21300554, %v1422_v11  ;;  %5966 = vmatprep.mubr.msk.f32.mxu1 %vm6734_vm1, %v10769_v4  ;;  %v10653_v30 = vrot.slane %v8130_v28, 1 }
 0x2ab   : > { %v1415_v55 = vrot.slane %v1335_v33, 1  ;;  %v1306_v27 = vsel %vm1085_vm2, %v1304_v36, %v1305_v60  ;;  %v1307_v18 = vsel %vm1085_vm2, %v1303_v56, %v1304_v36  ;;  %v1165_v21 = vadd.f32 %v1140_v62, %v1052_v14 }
 0x2ac   : > { %v1250_v57 = vmul.f32 0.036000773, %v1196_v61  ;;  %v1308_v22 = vsel %vm1085_vm2, %v1302_v5, %v1303_v56  ;;  %v10808_v3 = vrot.slane %v8027_v53, 1  ;;  %v8157_v11 = vadd.f32 %v1356_v45, %v1271_v12 }
 0x2ad   : > { %v10809_v33 = vrot.slane %v8020_v40, 1  ;;  %v10810_v36 = vrot.slane %v7360_v46, 1  ;;  %v1164_v61 = vadd.f32 %v1139_v47, %v7994_v15  ;;  %v1248_v62 = vmul.f32 0.036000773, %v1198_v23 }
 0x2ae   : > { %v1309_v48 = vsel %vm1085_vm2, %v10808_v3, %v1302_v5  ;;  %v1249_v53 = vmul.f32 0.036000773, %v1197_v2  ;;  %v1413_v56 = vrot.slane %v1307_v18, 1  ;;  %v1414_v19 = vrot.slane %v1306_v27, 1 }
 0x2af   : > { %v8163_v60 = vsel %vm1085_vm2, %v10809_v33, %v1518_v29  ;;  %v1445_v14 = vsel %vm1085_vm2, %v1415_v55, %v10810_v36  ;;  %v1490_v5 = vadd.f32 %v1465_v7, %v1380_v37  ;;  %v8174_v40 = vsel %vm1085_vm2, %v1518_v29, %v10653_v30 }
 0x2b0   : > { %v1411_v12 = vrot.slane %v1309_v48, 1  ;;  %v1412_v45 = vrot.slane %v1308_v22, 1  ;;  %v1275_v3 = vadd.f32 %v1250_v57, %v1165_v21  ;;  %v1357_v46 = vmul.f32 0.10936069, %v1309_v48 }
 0x2b1   : > { %v1360_v33 = vmul.f32 0.10936069, %v1306_v27  ;;  %v1416_v36 = vsel %vm1085_vm2, %v1414_v19, %v1415_v55  ;;  %v8179_v15 = vmul.f32 0.26601171, %v8163_v60  ;;  %v1575_v2 = vmul.f32 0.26601171, %v8174_v40 }
 0x2b2   : > { %v1525_v23 = vrot.slane %v1445_v14, 1  ;;  %v1273_v47 = vadd.f32 %v1248_v62, %v1163_v42  ;;  %v1274_v7 = vadd.f32 %v1249_v53, %v1164_v61  ;;  %v1358_v29 = vmul.f32 0.10936069, %v1308_v22 }
 0x2b3   : > { %v1418_v34 = vsel %vm1085_vm2, %v1412_v45, %v1413_v56  ;;  %v1359_v21 = vmul.f32 0.10936069, %v1307_v18  ;;  %v1419_v27 = vsel %vm1085_vm2, %v1411_v12, %v1412_v45  ;;  %v1420_v55 = vsel %vm1085_vm2, %v1410_v44, %v1411_v12  ;;  %v10839_v44 = vld [vmem:[#allocation33_spill] sm:$0xff] }
 0x2b4   : > { %v1524_v57 = vrot.slane %v1416_v36, 1  ;;  %v1382_v48 = vadd.f32 %v1357_v46, %v1272_v31  ;;  %v1385_v30 = vadd.f32 %v1360_v33, %v1275_v3  ;;  %v1417_v42 = vsel %vm1085_vm2, %v1413_v56, %v1414_v19 }
 0x2b5   : > { %v1467_v14 = vmul.f32 0.21300554, %v1419_v27  ;;  %v1470_v22 = vmul.f32 0.21300554, %v1416_v36  ;;  %v1522_v61 = vrot.slane %v1418_v34, 1  ;;  %v10811_v62 = vrot.slane %v7398_v24, 1 }
 0x2b6   : > { %v1526_v18 = vsel %vm1085_vm2, %v1524_v57, %v1525_v23  ;;  %v8199_v53 = vadd.f32 %v1575_v2, %v1490_v5  ;;  %v1520_v31 = vrot.slane %v1420_v55, 1  ;;  %v1521_v12 = vrot.slane %v1419_v27, 1 }
 0x2b7   : > { %v1555_v9 = vsel %vm1085_vm2, %v1525_v23, %v10811_v62  ;;  %v1383_v45 = vadd.f32 %v1358_v29, %v1273_v47  ;;  %v1384_v3 = vadd.f32 %v1359_v21, %v1274_v7  ;;  %v1466_v19 = vmul.f32 0.21300554, %v1420_v55 }
 0x2b8   : > { %v1523_v56 = vrot.slane %v1417_v42, 1  ;;  %v1468_v46 = vmul.f32 0.21300554, %v1418_v34  ;;  %v1469_v33 = vmul.f32 0.21300554, %v1417_v42  ;;  %v1634_v36 = vrot.slane %v1526_v18, 1 }
 0x2b9   : > { %v1635_v37 = vrot.slane %v1555_v9, 1  ;;  %v1492_v25 = vadd.f32 %v1467_v14, %v1382_v48  ;;  %v1495_v4 = vadd.f32 %v1470_v22, %v1385_v30  ;;  %v8204_v24 = vsel %vm1085_vm2, %v1521_v12, %v1522_v61 }
 0x2ba   : > { %v10659_v5 = vrot.slane %v7430_v54, 1  ;;  %v1527_v2 = vsel %vm1085_vm2, %v1523_v56, %v1524_v57  ;;  %v8211_v23 = vsel %vm1085_vm2, %v1520_v31, %v1521_v12  ;;  %v10812_v34 = vrot.slane %v8130_v28, 1 }
 0x2bb   : > { %v1577_v30 = vmul.f32 0.26601171, %v8204_v24  ;;  %v8222_v7 = vsel %vm1085_vm2, %v1522_v61, %v1523_v56  ;;  %v1580_v29 = vmul.f32 0.26601171, %v1526_v18  ;;  %v8226_v21 = vsel %vm1085_vm2, %v1634_v36, %v1635_v37 }
 0x2bc   : > { %v8217_v47 = vsel %vm1085_vm2, %v10812_v34, %v1520_v31  ;;  %10813 = vst [vmem:[#allocation59_spill] sm:$0xff] %v8226_v21  ;;  %v8232_v28 = vsel %vm1085_vm2, %v1635_v37, %v10659_v5  ;;  %v1493_v27 = vadd.f32 %v1468_v46, %v1383_v45  ;;  %v1494_v55 = vadd.f32 %v1469_v33, %v1384_v3  ;;  %v10837_v5 = vld [vmem:[#allocation35_spill] sm:$0xff] }
 0x2bd   : > { %10814 = vst [vmem:[#allocation60_spill] sm:$0xff] %v8232_v28  ;;  %v1578_v57 = vmul.f32 0.26601171, %v8222_v7  ;;  %v1579_v48 = vmul.f32 0.26601171, %v1527_v2  ;;  %v1491_v42 = vadd.f32 %v1466_v19, %v8157_v11  ;;  %v1630_v14 = vrot.slane %v8211_v23, 1 }
 0x2be   : > { %v1633_v22 = vrot.slane %v1527_v2, 1  ;;  %v1475_v61 = vadd.f32 %v7523_v16, %v7447_v20  ;;  %v8239_v18 = vadd.f32 %v1577_v30, %v1492_v25  ;;  %v1629_v62 = vrot.slane %v8217_v47, 1  ;;  %v10825_v47 = vld [vmem:[#allocation28_spill] sm:$0xff] }
 0x2bf   : > { %v10658_v37 = vrot.slane %v8226_v21, 1  ;;  %v10657_v9 = vrot.slane %v8232_v28, 1  ;;  %v1605_v31 = vadd.f32 %v1580_v29, %v1495_v4  ;;  %v1631_v12 = vrot.slane %v8204_v24, 1  ;;  %v10827_v29 = vld [vmem:[#allocation31_spill] sm:$0xff] }
 0x2c0   : > { %v1632_v45 = vrot.slane %v8222_v7, 1  ;;  %v1690_v11 = vmul.f32 0.21300554, %v8226_v21  ;;  %v8247_v3 = vadd.f32 %v1578_v57, %v1493_v27  ;;  %v1604_v19 = vadd.f32 %v1579_v48, %v1494_v55 }
 0x2c1   : > { %v8251_v20 = vsel %vm1085_vm2, %v1633_v22, %v1634_v36  ;;  %v1480_v16 = vadd.f32 %v7709_v59, %v7618_v1  ;;  %v10817_v56 = vrot.slane %v7698_v49, 1  ;;  %v10818_v46 = vrot.slane %v7678_v43, 1 }
 0x2c2   : > { %10815 = vst [vmem:[#allocation61_spill] sm:$0xff] %v8251_v20  ;;  %v8257_v25 = vsel %vm1085_vm2, %v1632_v45, %v1633_v22  ;;  %v1689_v4 = vmul.f32 0.21300554, %v8251_v20  ;;  %v10819_v24 = vrot.slane %v7670_v13, 1  ;;  %v10820_v36 = vrot.slane %v7593_v41, 1  ;;  %v10841_v20 = vld [vmem:[#allocation37_spill] sm:$0xff] }
 0x2c3   : > { %10816 = vst [vmem:[#allocation62_spill] sm:$0xff] %v8257_v25  ;;  %v1543_v33 = vsel %vm1085_vm2, %v10818_v46, %v10817_v56  ;;  %v8278_v59 = vsel %vm1085_vm2, %v10658_v37, %v10657_v9  ;;  %v10822_v49 = vrot.slane %v7512_v39, 1  ;;  %v10823_v2 = vrot.slane %v7518_v35, 1  ;;  %v10830_v35 = vld [vmem:[#allocation36_spill] sm:$0xff]  ;;  %v10836_v37 = vld [vmem:[#allocation29_spill] sm:$0xff] }
 0x2c4   : > { %v1545_v1 = vsel %vm1085_vm2, %v10820_v36, %v10819_v24  ;;  %10821 = vst [vmem:[#allocation63_spill] sm:$0xff] %v8278_v59  ;;  %v10826_v30 = vrot.slane %v10825_v47, 1  ;;  %v1558_v27 = vmul.f32 0.26601171, %v10827_v29  ;;  %v1715_v55 = vadd.f32 %v1690_v11, %v1605_v31  ;;  %v10840_v47 = vld [vmem:[#allocation34_spill] sm:$0xff] }
 0x2c5   : > { %v1550_v34 = vsel %vm1085_vm2, %v10823_v2, %v10822_v49  ;;  %v10824_v41 = vmov %v10823_v2  ;;  %v1800_v57 = vmul.f32 0.10936069, %v8278_v59  ;;  %v10828_v56 = vmov %v10818_v46 }
 0x2c6   : > { %v1551_v7 = vsel %vm1085_vm2, %v10826_v30, %v10824_v41  ;;  %v1560_v22 = vmul.f32 0.26601171, %v1550_v34  ;;  %v10829_v46 = vmov %v10819_v24  ;;  %v10831_v36 = vrot.slane %v10830_v35, 1  ;;  %v10832_v41 = vld [vmem:[#allocation41_spill] sm:$0xff]  ;;  %v10835_v35 = vld [vmem:[#allocation30_spill] sm:$0xff] }
 0x2c7   : > { %v1559_v48 = vmul.f32 0.26601171, %v1551_v7  ;;  %v1544_v24 = vsel %vm1085_vm2, %v10829_v46, %v10828_v56  ;;  %v1563_v31 = vmul.f32 0.26601171, %v10832_v41  ;;  %v1564_v11 = vmul.f32 0.26601171, %v1545_v1 }
 0x2c8   : > { %v1549_v2 = vsel %vm1085_vm2, %v10822_v49, %v10831_v36  ;;  %v1565_v43 = vmul.f32 0.26601171, %v1544_v24  ;;  %v1576_v13 = vmul.f32 0.26601171, %v8211_v23  ;;  %v8310_v9 = vadd.f32 %v1689_v4, %v1604_v19  ;;  %v10834_v46 = vld [vmem:[#allocation27_spill] sm:$0xff]  ;;  %v10842_v23 = vld [vmem:[#allocation40_spill] sm:$0xff] }
 0x2c9   : > { %v1581_v39 = vadd.f32 %v10835_v35, %v10834_v46  ;;  %v1582_v36 = vadd.f32 %v10837_v5, %v10836_v37  ;;  %v8317_v49 = vadd.f32 %v1800_v57, %v1715_v55  ;;  %v1583_v28 = vadd.f32 %v1558_v27, %v10839_v44  ;;  %v10843_v4 = vld [vmem:[#allocation38_spill] sm:$0xff]  ;;  %v10844_v56 = vld [vmem:[#allocation45_spill] sm:$0xff]  ;;  %v10845_v46 = vld [vmem:[#allocation43_spill] sm:$0xff] }
 0x2ca   : > { %10833 = vst [vmem:[#allocation28_spill] sm:$0xff] %v8310_v9  ;;  %v1584_v17 = vadd.f32 %v1559_v48, %v10840_v47  ;;  %v8321_v30 = vadd.f32 %v1560_v22, %v1475_v61  ;;  %v8325_v19 = vadd.f32 %v10842_v23, %v10841_v20  ;;  %v8329_v59 = vadd.f32 %v10844_v56, %v10843_v4  ;;  %v10846_v5 = vld [vmem:[#allocation44_spill] sm:$0xff]  ;;  %v10847_v44 = vld [vmem:[#allocation53_spill] sm:$0xff] }
 0x2cb   : > { %10838 = vst [vmem:[#allocation31_spill] sm:$0xff] %v8317_v49  ;;  %v8332_v35 = vadd.f32 %v1563_v31, %v10845_v46  ;;  %v8335_v37 = vadd.f32 %v1564_v11, %v10846_v5  ;;  %v8337_v55 = vadd.f32 %v1565_v43, %v1480_v16  ;;  %v10848_v27 = vld [vmem:[#allocation57_spill] sm:$0xff]  ;;  %v8345_v20 = vadd.f32 %v8179_v15, %v8091_v0  ;;  %v10859_v43 = vld [vmem:[#allocation56_spill] sm:$0xff] }
 0x2cc   : > { %v8341_v61 = vadd.f32 %v10848_v27, %v10847_v44  ;;  %v8347_v57 = vadd.f32 %v1576_v13, %v1491_v42  ;;  %v1609_v48 = vrot.slane %v1551_v7, 1  ;;  %v1610_v22 = vrot.slane %v1550_v34, 1  ;;  %v10863_v46 = vld [vmem:[#allocation52_spill] sm:$0xff]  ;;  %v10866_v27 = vld [vmem:[#allocation50_spill] sm:$0xff] }
 0x2cd   : > { %v1611_v47 = vrot.slane %v1549_v2, 1  ;;  %v1617_v31 = vrot.slane %v1543_v33, 1  ;;  %v1615_v56 = vrot.slane %v1545_v1, 1  ;;  %v1616_v23 = vrot.slane %v1544_v24, 1 }
 0x2ce   : > { %v8351_v16 = vsel %vm1085_vm2, %v1631_v12, %v1632_v45  ;;  %v8355_v11 = vsel %vm1085_vm2, %v1630_v14, %v1631_v12  ;;  %v8359_v0 = vsel %vm1085_vm2, %v1629_v62, %v1630_v14  ;;  %v10849_v15 = vrot.slane %v8174_v40, 1 }
 0x2cf   : > { %v10851_v1 = vrot.slane %v8163_v60, 1  ;;  %v10853_v34 = vrot.slane %v8070_v50, 1  ;;  %v10854_v7 = vrot.slane %v8003_v63, 1  ;;  %v10857_v2 = vrot.slane %v7938_v32, 1 }
 0x2d0   : > { %v8365_v42 = vsel %vm1085_vm2, %v10849_v15, %v1629_v62  ;;  %v10850_v33 = vmov %v10849_v15  ;;  %v10855_v62 = vrot.slane %v8009_v52, 1  ;;  %v10860_v13 = vrot.slane %v10859_v43, 1  ;;  %v10872_v43 = vld [vmem:[#allocation32_spill] sm:$0xff] }
 0x2d1   : > { %v8373_v45 = vsel %vm1085_vm2, %v10851_v1, %v10850_v33  ;;  %v10852_v12 = vmov %v10851_v1  ;;  %v10858_v50 = vmov %v10857_v2  ;;  %v10864_v5 = vrot.slane %v10863_v46, 1  ;;  %v10869_v1 = vld [vmem:[#allocation46_spill] sm:$0xff] }
 0x2d2   : > { %v8381_v14 = vsel %vm1085_vm2, %v10853_v34, %v10852_v12  ;;  %v8389_v40 = vsel %vm1085_vm2, %v10855_v62, %v10854_v7  ;;  %v10856_v24 = vmov %v10855_v62  ;;  %v8405_v63 = vsel %vm1085_vm2, %v10860_v13, %v10858_v50 }
 0x2d3   : > { %v8397_v60 = vsel %vm1085_vm2, %v10857_v2, %v10856_v24  ;;  %10861 = vst [vmem:[#allocation36_spill] sm:$0xff] %v8405_v63  ;;  %v10862_v4 = vmov %v10860_v13  ;;  %v10865_v44 = vmov %v10864_v5  ;;  %v10867_v15 = vrot.slane %v10866_v27, 1 }
 0x2d4   : > { %v8413_v52 = vsel %vm1085_vm2, %v10864_v5, %v10862_v4  ;;  %v10870_v12 = vrot.slane %v10869_v1, 1  ;;  %v8439_v24 = vsel %vm1085_vm2, %v1609_v48, %v1610_v22  ;;  %v8443_v2 = vsel %vm1085_vm2, %v1616_v23, %v1617_v31 }
 0x2d5   : > { %v8421_v32 = vsel %vm1085_vm2, %v10867_v15, %v10865_v44  ;;  %v10868_v33 = vmov %v10867_v15  ;;  %v8447_v50 = vsel %vm1085_vm2, %v1615_v56, %v1616_v23  ;;  %v10873_v13 = vrot.slane %v10872_v43, 1  ;;  %v10877_v23 = vld [vmem:[#allocation42_spill] sm:$0xff] }
 0x2d6   : > { %v8429_v34 = vsel %vm1085_vm2, %v10870_v12, %v10868_v33  ;;  %v10871_v7 = vmov %v10870_v12  ;;  %v10874_v4 = vrot.slane %v7430_v54, 1  ;;  %v1669_v5 = vmul.f32 0.21300554, %v8439_v24 }
 0x2d7   : > { %v8435_v62 = vsel %vm1085_vm2, %v1617_v31, %v10871_v7  ;;  %v10875_v44 = vrot.slane %v10832_v41, 1  ;;  %v10878_v15 = vrot.slane %v10877_v23, 1  ;;  %v10879_v54 = vrot.slane %v10827_v29, 1 }
 0x2d8   : > { %v8455_v46 = vsel %vm1085_vm2, %v10874_v4, %v10873_v13  ;;  %v10880_v1 = vmov %v10873_v13  ;;  %v10882_v13 = vld [vmem:[#allocation39_spill] sm:$0xff]  ;;  %v1677_v9 = vmul.f32 0.21300554, %v8421_v32  ;;  %v1680_v58 = vmul.f32 0.21300554, %v8397_v60 }
 0x2d9   : > { %v8462_v31 = vsel %vm1085_vm2, %v10875_v44, %v1615_v56  ;;  %v10876_v27 = vmov %v10875_v44  ;;  %v8478_v12 = vsel %vm1085_vm2, %v10880_v1, %v10879_v54  ;;  %v1666_v7 = vmul.f32 0.21300554, %v8455_v46 }
 0x2da   : > { %v8470_v33 = vsel %vm1085_vm2, %v10878_v15, %v10876_v27  ;;  %v10881_v56 = vmov %v10878_v15  ;;  %v10883_v41 = vrot.slane %v10882_v13, 1  ;;  %v8491_v44 = vsel %vm1085_vm2, %v1610_v22, %v1611_v47 }
 0x2db   : > { %v10884_v43 = vmov %v10879_v54  ;;  %v1667_v15 = vmul.f32 0.21300554, %v8478_v12  ;;  %v8510_v22 = vadd.f32 %v8141_v6, %v8093_v8  ;;  %v1674_v13 = vmul.f32 0.21300554, %v8447_v50 }
 0x2dc   : > { %v8487_v4 = vsel %vm1085_vm2, %v10883_v41, %v10881_v56  ;;  %v8497_v27 = vsel %vm1085_vm2, %v10884_v43, %v1609_v48  ;;  %v10885_v23 = vmov %v10883_v41  ;;  %v1670_v56 = vmul.f32 0.21300554, %v8491_v44 }
 0x2dd   : > { %v8504_v54 = vsel %vm1085_vm2, %v1611_v47, %v10885_v23  ;;  %v1668_v1 = vmul.f32 0.21300554, %v8497_v27  ;;  %10886 = vst [vmem:[#allocation41_spill] sm:$0xff] %v8510_v22  ;;  %v1671_v29 = vmul.f32 0.21300554, %v8487_v4  ;;  %v8515_v43 = vadd.f32 %v1669_v5, %v1584_v17 }
 0x2de   : > { %v1672_v48 = vmul.f32 0.21300554, %v8470_v33  ;;  %v1673_v41 = vmul.f32 0.21300554, %v8462_v31  ;;  %v1675_v47 = vmul.f32 0.21300554, %v8443_v2  ;;  %v8520_v49 = vadd.f32 %v1666_v7, %v1581_v39 }
 0x2df   : > { %10887 = vst [vmem:[#allocation27_spill] sm:$0xff] %v8515_v43  ;;  %v1676_v23 = vmul.f32 0.21300554, %v8429_v34  ;;  %v1678_v8 = vmul.f32 0.21300554, %v8413_v52  ;;  %v8525_v22 = vadd.f32 %v1667_v15, %v1582_v36  ;;  %v8530_v43 = vadd.f32 %v1668_v1, %v1583_v28 }
 0x2e0   : > { %10888 = vst [vmem:[#allocation30_spill] sm:$0xff] %v8520_v49  ;;  %v1679_v6 = vmul.f32 0.21300554, %v8405_v63  ;;  %v1681_v17 = vmul.f32 0.21300554, %v8124_v26  ;;  %v8536_v49 = vadd.f32 %v1670_v56, %v8321_v30  ;;  %v8544_v63 = vadd.f32 %v1672_v48, %v8329_v59  ;;  %v10892_v30 = vld [vmem:[#allocation48_spill] sm:$0xff] }
 0x2e1   : > { %10889 = vst [vmem:[#allocation29_spill] sm:$0xff] %v8525_v22  ;;  %v1683_v5 = vmul.f32 0.21300554, %v8381_v14  ;;  %10890 = vst [vmem:[#allocation35_spill] sm:$0xff] %v8530_v43  ;;  %v1684_v21 = vmul.f32 0.21300554, %v8373_v45  ;;  %v8541_v22 = vadd.f32 %v1671_v29, %v8325_v19  ;;  %v8547_v28 = vadd.f32 %v1673_v41, %v8332_v35 }
 0x2e2   : > { %v1685_v39 = vmul.f32 0.21300554, %v8365_v42  ;;  %v1686_v7 = vmul.f32 0.21300554, %v8355_v11  ;;  %10891 = vst [vmem:[#allocation33_spill] sm:$0xff] %v8536_v49  ;;  %v8550_v1 = vadd.f32 %v1674_v13, %v8335_v37  ;;  %v8553_v43 = vadd.f32 %v1675_v47, %v8337_v55  ;;  %v10893_v49 = vld [vmem:[#allocation54_spill] sm:$0xff] }
 0x2e3   : > { %v1687_v36 = vmul.f32 0.21300554, %v8351_v16  ;;  %v1688_v15 = vmul.f32 0.21300554, %v8257_v25  ;;  %v8556_v56 = vadd.f32 %v1676_v23, %v10892_v30  ;;  %v8559_v25 = vadd.f32 %v1677_v9, %v10893_v49  ;;  %v10894_v19 = vld [vmem:[#allocation55_spill] sm:$0xff]  ;;  %v10895_v13 = vld [vmem:[#allocation36_spill] sm:$0xff] }
 0x2e4   : > { %v8562_v29 = vadd.f32 %v1678_v8, %v10894_v19  ;;  %v8565_v59 = vadd.f32 %v1679_v6, %v8341_v61  ;;  %v8568_v35 = vadd.f32 %v1680_v58, %v7986_v38  ;;  %v8571_v37 = vadd.f32 %v1681_v17, %v8042_v51  ;;  %v10896_v47 = vld [vmem:[#allocation59_spill] sm:$0xff]  ;;  %v10898_v23 = vld [vmem:[#allocation61_spill] sm:$0xff] }
 0x2e5   : > { %v8574_v55 = vadd.f32 %v1683_v5, %v8107_v10  ;;  %v8577_v48 = vadd.f32 %v1684_v21, %v8345_v20  ;;  %v8580_v9 = vadd.f32 %v1685_v39, %v8199_v53  ;;  %v8583_v49 = vadd.f32 %v1686_v7, %v8347_v57 }
 0x2e6   : > { %v8586_v61 = vadd.f32 %v1687_v36, %v8239_v18  ;;  %v8589_v58 = vadd.f32 %v1688_v15, %v8247_v3  ;;  %v1716_v38 = vrot.slane %v8455_v46, 1  ;;  %v1717_v51 = vrot.slane %v8478_v12, 1 }
 0x2e7   : > { %v1718_v10 = vrot.slane %v8497_v27, 1  ;;  %v1719_v21 = vrot.slane %v8439_v24, 1  ;;  %v1720_v53 = vrot.slane %v8491_v44, 1  ;;  %v1721_v20 = vrot.slane %v8504_v54, 1 }
 0x2e8   : > { %v1722_v57 = vrot.slane %v8487_v4, 1  ;;  %v1723_v18 = vrot.slane %v8470_v33, 1  ;;  %v1724_v41 = vrot.slane %v8462_v31, 1  ;;  %v1725_v3 = vrot.slane %v8447_v50, 1 }
 0x2e9   : > { %v1726_v46 = vrot.slane %v8443_v2, 1  ;;  %v1736_v12 = vrot.slane %v8381_v14, 1  ;;  %v1740_v27 = vrot.slane %v8355_v11, 1  ;;  %v1727_v24 = vrot.slane %v8435_v62, 1 }
 0x2ea   : > { %v1737_v44 = vrot.slane %v8373_v45, 1  ;;  %v1738_v54 = vrot.slane %v8365_v42, 1  ;;  %v1739_v4 = vrot.slane %v8359_v0, 1  ;;  %v1732_v33 = vrot.slane %v8397_v60, 1 }
 0x2eb   : > { %v1733_v31 = vrot.slane %v8389_v40, 1  ;;  %v1734_v50 = vrot.slane %v8124_v26, 1  ;;  %v1741_v2 = vrot.slane %v8351_v16, 1  ;;  %v1728_v14 = vrot.slane %v8429_v34, 1  ;;  %v10902_v40 = vld [vmem:[#allocation62_spill] sm:$0xff] }
 0x2ec   : > { %v1729_v11 = vrot.slane %v8421_v32, 1  ;;  %v1730_v62 = vrot.slane %v8413_v52, 1  ;;  %v1731_v45 = vrot.slane %v10895_v13, 1  ;;  %v10897_v42 = vrot.slane %v10896_v47, 1  ;;  %v10905_v32 = vld [vmem:[#allocation58_spill] sm:$0xff] }
 0x2ed   : > { %v10899_v0 = vrot.slane %v10898_v23, 1  ;;  %v10903_v16 = vrot.slane %v10902_v40, 1  ;;  %v8634_v52 = vsel %vm1085_vm2, %v1739_v4, %v1740_v27  ;;  %v10906_v6 = vrot.slane %v10905_v32, 1  ;;  %v10919_v32 = vld [vmem:[#allocation29_spill] sm:$0xff] }
 0x2ee   : > { %10904 = vst [vmem:[#allocation34_spill] sm:$0xff] %v8634_v52  ;;  %v8650_v7 = vsel %vm1085_vm2, %v1738_v54, %v1739_v4  ;;  %v8654_v36 = vsel %vm1085_vm2, %v1737_v44, %v1738_v54  ;;  %v8658_v15 = vsel %vm1085_vm2, %v1736_v12, %v1737_v44  ;;  %v8662_v30 = vsel %vm1085_vm2, %v1740_v27, %v1741_v2  ;;  %v10923_v52 = vld [vmem:[#allocation35_spill] sm:$0xff] }
 0x2ef   : > { %v8622_v60 = vsel %vm1085_vm2, %v10899_v0, %v10897_v42  ;;  %v10901_v26 = vmov %v10899_v0  ;;  %v8640_v17 = vsel %vm1085_vm2, %v10906_v6, %v1736_v12  ;;  %v10907_v5 = vmov %v10903_v16  ;;  %v10916_v0 = vld [vmem:[#allocation60_spill] sm:$0xff] }
 0x2f0   : > { %v8630_v34 = vsel %vm1085_vm2, %v10903_v16, %v10901_v26  ;;  %v8646_v39 = vsel %vm1085_vm2, %v1741_v2, %v10907_v5  ;;  %v10908_v19 = vmov %v10906_v6  ;;  %v8672_v4 = vsel %vm1085_vm2, %v1733_v31, %v1734_v50 }
 0x2f1   : > { %v8668_v13 = vsel %vm1085_vm2, %v1734_v50, %v10908_v19  ;;  %10910 = vst [vmem:[#allocation40_spill] sm:$0xff] %v8672_v4  ;;  %v8676_v54 = vsel %vm1085_vm2, %v1732_v33, %v1733_v31  ;;  %v8680_v12 = vsel %vm1085_vm2, %v1731_v45, %v1732_v33  ;;  %v8684_v27 = vsel %vm1085_vm2, %v1730_v62, %v1731_v45 }
 0x2f2   : > { %10909 = vst [vmem:[#allocation37_spill] sm:$0xff] %v8668_v13  ;;  %10911 = vst [vmem:[#allocation38_spill] sm:$0xff] %v8676_v54  ;;  %v8688_v44 = vsel %vm1085_vm2, %v1729_v11, %v1730_v62  ;;  %v8692_v50 = vsel %vm1085_vm2, %v1728_v14, %v1729_v11  ;;  %v8696_v31 = vsel %vm1085_vm2, %v1727_v24, %v1728_v14  ;;  %v10917_v26 = vrot.slane %v10916_v0, 1  ;;  %v10921_v0 = vld [vmem:[#allocation30_spill] sm:$0xff] }
 0x2f3   : > { %10912 = vst [vmem:[#allocation45_spill] sm:$0xff] %v8680_v12  ;;  %10913 = vst [vmem:[#allocation43_spill] sm:$0xff] %v8684_v27  ;;  %v8700_v33 = vsel %vm1085_vm2, %v1726_v46, %v1727_v24  ;;  %v8704_v2 = vsel %vm1085_vm2, %v1725_v3, %v1726_v46  ;;  %v8708_v62 = vsel %vm1085_vm2, %v1717_v51, %v1718_v10  ;;  %v1786_v5 = vmul.f32 0.10936069, %v8692_v50 }
 0x2f4   : > { %10914 = vst [vmem:[#allocation44_spill] sm:$0xff] %v8688_v44  ;;  %10915 = vst [vmem:[#allocation53_spill] sm:$0xff] %v8696_v31  ;;  %v8712_v11 = vsel %vm1085_vm2, %v1724_v41, %v1725_v3  ;;  %v8716_v14 = vsel %vm1085_vm2, %v1723_v18, %v1724_v41  ;;  %v8720_v24 = vsel %vm1085_vm2, %v1716_v38, %v1717_v51  ;;  %v1777_v45 = vmul.f32 0.10936069, %v8708_v62 }
 0x2f5   : > { %v8725_v46 = vsel %vm1085_vm2, %v1722_v57, %v1723_v18  ;;  %v8729_v47 = vsel %vm1085_vm2, %v1719_v21, %v1720_v53  ;;  %v8733_v3 = vsel %vm1085_vm2, %v1718_v10, %v1719_v21  ;;  %v1776_v41 = vmul.f32 0.10936069, %v8720_v24 }
 0x2f6   : > { %v8738_v51 = vsel %vm1085_vm2, %v1721_v20, %v1722_v57  ;;  %v8742_v42 = vsel %vm1085_vm2, %v1720_v53, %v1721_v20  ;;  %v1778_v18 = vmul.f32 0.10936069, %v8733_v3  ;;  %v1779_v23 = vmul.f32 0.10936069, %v8729_v47 }
 0x2f7   : > { %v8750_v10 = vsel %vm1085_vm2, %v10917_v26, %v1716_v38  ;;  %v1780_v21 = vmul.f32 0.10936069, %v8742_v42  ;;  %v1781_v40 = vmul.f32 0.10936069, %v8725_v46  ;;  %v1782_v57 = vmul.f32 0.10936069, %v8716_v14 }
 0x2f8   : > { %10918 = vst [vmem:[#allocation57_spill] sm:$0xff] %v8750_v10  ;;  %v1783_v16 = vmul.f32 0.10936069, %v8712_v11  ;;  %v1784_v53 = vmul.f32 0.10936069, %v8704_v2  ;;  %v8759_v6 = vadd.f32 %v1777_v45, %v10919_v32  ;;  %v8765_v26 = vadd.f32 %v1776_v41, %v10921_v0 }
 0x2f9   : > { %v1785_v20 = vmul.f32 0.10936069, %v8700_v33  ;;  %v1787_v38 = vmul.f32 0.10936069, %v8688_v44  ;;  %v1788_v19 = vmul.f32 0.10936069, %v8684_v27  ;;  %v8771_v31 = vadd.f32 %v1778_v18, %v10923_v52 }
 0x2fa   : > { %10920 = vst [vmem:[#allocation56_spill] sm:$0xff] %v8759_v6  ;;  %10922 = vst [vmem:[#allocation52_spill] sm:$0xff] %v8765_v26  ;;  %v1789_v8 = vmul.f32 0.10936069, %v8680_v12  ;;  %v1790_v4 = vmul.f32 0.10936069, %v8676_v54  ;;  %v8791_v12 = vadd.f32 %v1782_v57, %v8544_v63 }
 0x2fb   : > { %v1791_v10 = vmul.f32 0.10936069, %v8668_v13  ;;  %10924 = vst [vmem:[#allocation50_spill] sm:$0xff] %v8771_v31  ;;  %v1792_v45 = vmul.f32 0.10936069, %v8640_v17  ;;  %v10925_v44 = vld [vmem:[#allocation27_spill] sm:$0xff]  ;;  %v8788_v31 = vadd.f32 %v1781_v40, %v8541_v22  ;;  %v8809_v22 = vadd.f32 %v1788_v19, %v8562_v29 }
 0x2fc   : > { %v1793_v32 = vmul.f32 0.10936069, %v8658_v15  ;;  %v1794_v6 = vmul.f32 0.10936069, %v8654_v36  ;;  %v8777_v27 = vadd.f32 %v1779_v23, %v10925_v44  ;;  %v1795_v41 = vmul.f32 0.10936069, %v8650_v7 }
 0x2fd   : > { %v1796_v0 = vmul.f32 0.10936069, %v8662_v30  ;;  %v1797_v26 = vmul.f32 0.10936069, %v8646_v39  ;;  %v10927_v54 = vld [vmem:[#allocation33_spill] sm:$0xff]  ;;  %v8794_v44 = vadd.f32 %v1783_v16, %v8547_v28  ;;  %v8797_v23 = vadd.f32 %v1784_v53, %v8550_v1  ;;  %v8829_v29 = vld [vmem:[#allocation13] sm:$0xff] }
 0x2fe   : > { %10926 = vst [vmem:[#allocation46_spill] sm:$0xff] %v8777_v27  ;;  %v8783_v13 = vadd.f32 %v1780_v21, %v10927_v54  ;;  %v1798_v52 = vmul.f32 0.10936069, %v8630_v34  ;;  %v1799_v18 = vmul.f32 0.10936069, %v8622_v60  ;;  %v8800_v27 = vadd.f32 %v1785_v20, %v8553_v43  ;;  %v10928_v43 = vld [vmem:[#allocation41_spill] sm:$0xff]  ;;  %6023 = vmatprep.mubr.msk.f32.mxu0 %vm2665_vm3, %v8829_v29 }
 0x2ff   : > { %v8803_v54 = vadd.f32 %v1786_v5, %v8556_v56  ;;  %v8806_v21 = vadd.f32 %v1787_v38, %v8559_v25  ;;  %v8812_v63 = vadd.f32 %v1789_v8, %v8565_v59  ;;  %v8815_v28 = vadd.f32 %v1790_v4, %v8568_v35  ;;  %10929 = vst [vmem:[#allocation32_spill] sm:$0xff] %v8829_v29  ;;  %v10931_v5 = vld [vmem:[#allocation53_spill] sm:$0xff]  ;;  %v10932_v38 = vld [vmem:[#allocation34_spill] sm:$0xff] }
 0x300   : > { %v8818_v1 = vadd.f32 %v1791_v10, %v8571_v37  ;;  %v8821_v40 = vadd.f32 %v1792_v45, %v10928_v43  ;;  %v8824_v56 = vadd.f32 %v1793_v32, %v8574_v55  ;;  %v8827_v25 = vadd.f32 %v1794_v6, %v8577_v48  ;;  %v10930_v55 = vld [vmem:[#allocation28_spill] sm:$0xff]  ;;  %v10933_v19 = vld [vmem:[#allocation57_spill] sm:$0xff]  ;;  %v10939_v43 = vld [vmem:[#allocation43_spill] sm:$0xff] }
 0x301   : > { %v8832_v59 = vadd.f32 %v1795_v41, %v8580_v9  ;;  %v8835_v35 = vadd.f32 %v1796_v0, %v8583_v49  ;;  %v8838_v37 = vadd.f32 %v1797_v26, %v8586_v61  ;;  %v8841_v8 = vadd.f32 %v1798_v52, %v8589_v58  ;;  %v10934_v45 = vld [vmem:[#allocation45_spill] sm:$0xff]  ;;  %v10935_v41 = vld [vmem:[#allocation38_spill] sm:$0xff]  ;;  %v10936_v0 = vld [vmem:[#allocation40_spill] sm:$0xff] }
 0x302   : > { %v8846_v48 = vadd.f32 %v1799_v18, %v10930_v55  ;;  %v1826_v4 = vrot.slane %v8720_v24, 1  ;;  %v1827_v9 = vrot.slane %v8708_v62, 1  ;;  %v1828_v10 = vrot.slane %v8733_v3, 1  ;;  %v10937_v52 = vld [vmem:[#allocation37_spill] sm:$0xff]  ;;  %v10938_v18 = vld [vmem:[#allocation44_spill] sm:$0xff] }
 0x303   : > { %v1829_v49 = vrot.slane %v8729_v47, 1  ;;  %v1830_v61 = vrot.slane %v8742_v42, 1  ;;  %v1831_v57 = vrot.slane %v8738_v51, 1  ;;  %v1832_v58 = vrot.slane %v8725_v46, 1 }
 0x304   : > { %v1833_v16 = vrot.slane %v8716_v14, 1  ;;  %v1834_v53 = vrot.slane %v8712_v11, 1  ;;  %v1835_v20 = vrot.slane %v8704_v2, 1  ;;  %v1836_v6 = vrot.slane %v8700_v33, 1 }
 0x305   : > { %v1837_v62 = vrot.slane %v10931_v5, 1  ;;  %v1846_v3 = vrot.slane %v8658_v15, 1  ;;  %v1849_v47 = vrot.slane %v10932_v38, 1  ;;  %v1850_v42 = vrot.slane %v8662_v30, 1  ;;  %v10959_v5 = vld [vmem:[#allocation52_spill] sm:$0xff] }
 0x306   : > { %v1847_v51 = vrot.slane %v8654_v36, 1  ;;  %v1848_v46 = vrot.slane %v8650_v7, 1  ;;  %v1853_v14 = vrot.slane %v8622_v60, 1  ;;  %v1855_v11 = vrot.slane %v10933_v19, 1 }
 0x307   : > { %v1838_v2 = vrot.slane %v8692_v50, 1  ;;  %v1845_v33 = vrot.slane %v8640_v17, 1  ;;  %v1851_v26 = vrot.slane %v8646_v39, 1  ;;  %v1852_v15 = vrot.slane %v8630_v34, 1  ;;  %v10942_v34 = vld [vmem:[#allocation63_spill] sm:$0xff] }
 0x308   : > { %v1841_v32 = vrot.slane %v10934_v45, 1  ;;  %v1842_v30 = vrot.slane %v10935_v41, 1  ;;  %v1843_v36 = vrot.slane %v10936_v0, 1  ;;  %v1844_v7 = vrot.slane %v10937_v52, 1 }
 0x309   : > { %v1839_v60 = vrot.slane %v10938_v18, 1  ;;  %v1840_v55 = vrot.slane %v10939_v43, 1  ;;  %v8879_v50 = vsel %vm1085_vm2, %v1849_v47, %v1850_v42  ;;  %v8883_v17 = vsel %vm1085_vm2, %v1848_v46, %v1849_v47 }
 0x30a   : > { %10941 = vst [vmem:[#allocation42_spill] sm:$0xff] %v8879_v50  ;;  %v10943_v39 = vrot.slane %v10942_v34, 1  ;;  %v8899_v41 = vsel %vm1085_vm2, %v1847_v51, %v1848_v46  ;;  %v8903_v47 = vsel %vm1085_vm2, %v1846_v3, %v1847_v51  ;;  %v8907_v0 = vsel %vm1085_vm2, %v1852_v15, %v1853_v14  ;;  %v10957_v50 = vld [vmem:[#allocation56_spill] sm:$0xff] }
 0x30b   : > { %10945 = vst [vmem:[#allocation39_spill] sm:$0xff] %v8899_v41  ;;  %v8911_v52 = vsel %vm1085_vm2, %v1851_v26, %v1852_v15  ;;  %v8915_v18 = vsel %vm1085_vm2, %v1850_v42, %v1851_v26  ;;  %v8919_v46 = vsel %vm1085_vm2, %v1845_v33, %v1846_v3  ;;  %v8923_v51 = vsel %vm1085_vm2, %v1844_v7, %v1845_v33 }
 0x30c   : > { %v8889_v38 = vsel %vm1085_vm2, %v10943_v39, %v1855_v11  ;;  %v10944_v19 = vmov %v10943_v39  ;;  %v8931_v15 = vsel %vm1085_vm2, %v1842_v30, %v1843_v36  ;;  %v8935_v42 = vsel %vm1085_vm2, %v1841_v32, %v1842_v30 }
 0x30d   : > { %v8895_v45 = vsel %vm1085_vm2, %v1853_v14, %v10944_v19  ;;  %v8927_v14 = vsel %vm1085_vm2, %v1843_v36, %v1844_v7  ;;  %10947 = vst [vmem:[#allocation54_spill] sm:$0xff] %v8931_v15  ;;  %10948 = vst [vmem:[#allocation55_spill] sm:$0xff] %v8935_v42  ;;  %v8939_v3 = vsel %vm1085_vm2, %v1840_v55, %v1841_v32  ;;  %vm5090_vm0 = vcmask 23552  }
 0x30e   : > { %10946 = vst [vmem:[#allocation48_spill] sm:$0xff] %v8927_v14  ;;  %10949 = vst [vmem:[#allocation36_spill] sm:$0xff] %v8939_v3  ;;  %v8943_v33 = vsel %vm1085_vm2, %v1839_v60, %v1840_v55  ;;  %v8947_v26 = vsel %vm1085_vm2, %v1838_v2, %v1839_v60  ;;  %v8951_v36 = vsel %vm1085_vm2, %v1837_v62, %v1838_v2 }
 0x30f   : > { %10950 = vst [vmem:[#allocation59_spill] sm:$0xff] %v8947_v26  ;;  %10951 = vst [vmem:[#allocation61_spill] sm:$0xff] %v8951_v36  ;;  %v8955_v30 = vsel %vm1085_vm2, %v1836_v6, %v1837_v62  ;;  %v8959_v32 = vsel %vm1085_vm2, %v1835_v20, %v1836_v6  ;;  %v8963_v7 = vsel %vm1085_vm2, %v1834_v53, %v1835_v20  ;;  %v1896_v14 = vmul.f32 0.036000773, %v8947_v26 }
 0x310   : > { %10952 = vst [vmem:[#allocation62_spill] sm:$0xff] %v8955_v30  ;;  %10953 = vst [vmem:[#allocation58_spill] sm:$0xff] %v8959_v32  ;;  %v8967_v60 = vsel %vm1085_vm2, %v1827_v9, %v1828_v10  ;;  %v8971_v2 = vsel %vm1085_vm2, %v1833_v16, %v1834_v53  ;;  %v8975_v62 = vsel %vm1085_vm2, %v1832_v58, %v1833_v16  ;;  %v1893_v29 = vmul.f32 0.036000773, %v8963_v7 }
 0x311   : > { %10954 = vst [vmem:[#allocation60_spill] sm:$0xff] %v8963_v7  ;;  %10955 = vst [vmem:[#allocation29_spill] sm:$0xff] %v8971_v2  ;;  %v8981_v6 = vsel %vm1085_vm2, %v1826_v4, %v1827_v9  ;;  %v1887_v20 = vmul.f32 0.036000773, %v8967_v60  ;;  %v8986_v43 = vsel %vm1085_vm2, %v1830_v61, %v1831_v57  ;;  %v8990_v53 = vsel %vm1085_vm2, %v1829_v49, %v1830_v61 }
 0x312   : > { %v8994_v16 = vsel %vm1085_vm2, %v1828_v10, %v1829_v49  ;;  %v1886_v55 = vmul.f32 0.036000773, %v8981_v6  ;;  %v8999_v9 = vsel %vm1085_vm2, %v1831_v57, %v1832_v58  ;;  %v1889_v39 = vmul.f32 0.036000773, %v8990_v53 }
 0x313   : > { %v1888_v34 = vmul.f32 0.036000773, %v8994_v16  ;;  %v1890_v19 = vmul.f32 0.036000773, %v8986_v43  ;;  %v9008_v61 = vsel %vm1085_vm2, %v1855_v11, %v1826_v4  ;;  %v1891_v10 = vmul.f32 0.036000773, %v8975_v62 }
 0x314   : > { %10956 = vst [vmem:[#allocation30_spill] sm:$0xff] %v9008_v61  ;;  %v1892_v49 = vmul.f32 0.036000773, %v8971_v2  ;;  %v1894_v57 = vmul.f32 0.036000773, %v8959_v32  ;;  %v9017_v36 = vadd.f32 %v1887_v20, %v10957_v50  ;;  %v9023_v61 = vadd.f32 %v1886_v55, %v10959_v5  ;;  %v10961_v2 = vld [vmem:[#allocation50_spill] sm:$0xff] }
 0x315   : > { %v1895_v58 = vmul.f32 0.036000773, %v8955_v30  ;;  %v1897_v24 = vmul.f32 0.036000773, %v8943_v33  ;;  %v1898_v4 = vmul.f32 0.036000773, %v8939_v3  ;;  %v9029_v26 = vadd.f32 %v1888_v34, %v10961_v2 }
 0x316   : > { %10958 = vst [vmem:[#allocation35_spill] sm:$0xff] %v9017_v36  ;;  %v1899_v11 = vmul.f32 0.036000773, %v8935_v42  ;;  %10960 = vst [vmem:[#allocation27_spill] sm:$0xff] %v9023_v61  ;;  %v1900_v7 = vmul.f32 0.036000773, %v8931_v15  ;;  %v9041_v15 = vadd.f32 %v1890_v19, %v8783_v13  ;;  %v9061_v13 = vadd.f32 %v1896_v14, %v8803_v54 }
 0x317   : > { %v1901_v32 = vmul.f32 0.036000773, %v8923_v51  ;;  %v1902_v30 = vmul.f32 0.036000773, %v8919_v46  ;;  %10962 = vst [vmem:[#allocation33_spill] sm:$0xff] %v9029_v26  ;;  %v10963_v3 = vld [vmem:[#allocation46_spill] sm:$0xff]  ;;  %v9046_v26 = vadd.f32 %v1891_v10, %v8788_v31  ;;  %v9064_v19 = vadd.f32 %v1897_v24, %v8806_v21 }
 0x318   : > { %v1903_v50 = vmul.f32 0.036000773, %v8903_v47  ;;  %v1904_v20 = vmul.f32 0.036000773, %v8899_v41  ;;  %v1905_v36 = vmul.f32 0.036000773, %v8883_v17  ;;  %v9035_v42 = vadd.f32 %v1889_v39, %v10963_v3 }
 0x319   : > { %v1906_v5 = vmul.f32 0.036000773, %v8915_v18  ;;  %v1907_v55 = vmul.f32 0.036000773, %v8911_v52  ;;  %v1908_v61 = vmul.f32 0.036000773, %v8907_v0  ;;  %v9049_v41 = vadd.f32 %v1892_v49, %v8791_v12 }
 0x31a   : > { %10964 = vst [vmem:[#allocation41_spill] sm:$0xff] %v9035_v42  ;;  %v1909_v2 = vmul.f32 0.036000773, %v8895_v45  ;;  %v1910_v34 = vmul.f32 0.036000773, %v8889_v38  ;;  %v9052_v3 = vadd.f32 %v1893_v29, %v8794_v44  ;;  %v9055_v39 = vadd.f32 %v1894_v57, %v8797_v23  ;;  %v10969_v49 = vld [vmem:[#allocation62_spill] sm:$0xff] }
 0x31b   : > { %v9058_v42 = vadd.f32 %v1895_v58, %v8800_v27  ;;  %v9067_v31 = vadd.f32 %v1898_v4, %v8809_v22  ;;  %v9070_v12 = vadd.f32 %v1899_v11, %v8812_v63  ;;  %v9073_v44 = vadd.f32 %v1900_v7, %v8815_v28  ;;  %v10970_v58 = vld [vmem:[#allocation61_spill] sm:$0xff]  ;;  %v10971_v24 = vld [vmem:[#allocation59_spill] sm:$0xff]  ;;  %v10972_v11 = vld [vmem:[#allocation42_spill] sm:$0xff] }
 0x31c   : > { %v9076_v23 = vadd.f32 %v1901_v32, %v8818_v1  ;;  %v9079_v27 = vadd.f32 %v1902_v30, %v8821_v40  ;;  %v9082_v54 = vadd.f32 %v1903_v50, %v8824_v56  ;;  %v9085_v21 = vadd.f32 %v1904_v20, %v8827_v25  ;;  %v10965_v56 = vld [vmem:[#allocation31_spill] sm:$0xff]  ;;  %v10966_v30 = vld [vmem:[#allocation29_spill] sm:$0xff]  ;;  %v10967_v32 = vld [vmem:[#allocation60_spill] sm:$0xff] }
 0x31d   : > { %v9088_v22 = vadd.f32 %v1905_v36, %v8832_v59  ;;  %v9091_v63 = vadd.f32 %v1906_v5, %v8835_v35  ;;  %v9094_v28 = vadd.f32 %v1907_v55, %v8838_v37  ;;  %v9097_v1 = vadd.f32 %v1908_v61, %v8841_v8  ;;  %v10968_v61 = vld [vmem:[#allocation58_spill] sm:$0xff] }
 0x31e   : > { %v9100_v40 = vadd.f32 %v1909_v2, %v8846_v48  ;;  %v9103_v29 = vadd.f32 %v1910_v34, %v10965_v56  ;;  %v1936_v25 = vrot.slane %v8981_v6, 1  ;;  %v1937_v59 = vrot.slane %v8967_v60, 1  ;;  %v10973_v55 = vld [vmem:[#allocation30_spill] sm:$0xff]  ;;  %v10974_v56 = vld [vmem:[#allocation39_spill] sm:$0xff] }
 0x31f   : > { %v1938_v14 = vrot.slane %v8994_v16, 1  ;;  %v1939_v35 = vrot.slane %v8990_v53, 1  ;;  %v1940_v37 = vrot.slane %v8986_v43, 1  ;;  %v1941_v36 = vrot.slane %v8999_v9, 1 }
 0x320   : > { %v1942_v8 = vrot.slane %v8975_v62, 1  ;;  %v1943_v48 = vrot.slane %v10966_v30, 1  ;;  %v1944_v7 = vrot.slane %v10967_v32, 1  ;;  %v1945_v10 = vrot.slane %v10968_v61, 1  ;;  %v10975_v30 = vld [vmem:[#allocation36_spill] sm:$0xff]  ;;  %v10976_v32 = vld [vmem:[#allocation55_spill] sm:$0xff] }
 0x321   : > { %v1946_v57 = vrot.slane %v10969_v49, 1  ;;  %v1947_v60 = vrot.slane %v10970_v58, 1  ;;  %v1948_v16 = vrot.slane %v10971_v24, 1  ;;  %v1949_v53 = vrot.slane %v8943_v33, 1  ;;  %v10977_v61 = vld [vmem:[#allocation54_spill] sm:$0xff]  ;;  %v10978_v58 = vld [vmem:[#allocation48_spill] sm:$0xff] }
 0x322   : > { %v1958_v43 = vrot.slane %v8883_v17, 1  ;;  %v1960_v9 = vrot.slane %v8915_v18, 1  ;;  %v1961_v62 = vrot.slane %v8911_v52, 1  ;;  %v1962_v4 = vrot.slane %v8907_v0, 1  ;;  %v10994_v24 = vld [vmem:[#allocation35_spill] sm:$0xff] }
 0x323   : > { %v1959_v50 = vrot.slane %v10972_v11, 1  ;;  %v1963_v20 = vrot.slane %v8895_v45, 1  ;;  %v1964_v5 = vrot.slane %v8889_v38, 1  ;;  %v1965_v2 = vrot.slane %v10973_v55, 1 }
 0x324   : > { %v1954_v34 = vrot.slane %v8923_v51, 1  ;;  %v1955_v33 = vrot.slane %v8919_v46, 1  ;;  %v1956_v17 = vrot.slane %v8903_v47, 1  ;;  %v1957_v18 = vrot.slane %v10974_v56, 1 }
 0x325   : > { %v1950_v52 = vrot.slane %v10975_v30, 1  ;;  %v1951_v0 = vrot.slane %v10976_v32, 1  ;;  %v1952_v49 = vrot.slane %v10977_v61, 1  ;;  %v1953_v45 = vrot.slane %v10978_v58, 1 }
 0x326   : > { %v9137_v38 = vsel %vm1085_vm2, %v1961_v62, %v1962_v4  ;;  %v9141_v51 = vsel %vm1085_vm2, %v1960_v9, %v1961_v62  ;;  %v9145_v47 = vsel %vm1085_vm2, %v1959_v50, %v1960_v9  ;;  %v9149_v46 = vsel %vm1085_vm2, %v1957_v18, %v1958_v43 }
 0x327   : > { %10980 = vst [vmem:[#allocation28_spill] sm:$0xff] %v9145_v47  ;;  %v9153_v11 = vsel %vm1085_vm2, %v1964_v5, %v1965_v2  ;;  %v9157_v55 = vsel %vm1085_vm2, %v1963_v20, %v1964_v5  ;;  %v9161_v62 = vsel %vm1085_vm2, %v1962_v4, %v1963_v20  ;;  %v9165_v9 = vsel %vm1085_vm2, %v1958_v43, %v1959_v50 }
 0x328   : > { %v9169_v56 = vsel %vm1085_vm2, %v1956_v17, %v1957_v18  ;;  %v9173_v30 = vsel %vm1085_vm2, %v1955_v33, %v1956_v17  ;;  %v9177_v5 = vsel %vm1085_vm2, %v1954_v34, %v1955_v33  ;;  %v9183_v4 = vsel %vm1085_vm2, %v1936_v25, %v1937_v59 }
 0x329   : > { %10981 = vst [vmem:[#allocation53_spill] sm:$0xff] %v9177_v5  ;;  %v9187_v43 = vsel %vm1085_vm2, %v1953_v45, %v1954_v34  ;;  %v9191_v50 = vsel %vm1085_vm2, %v1952_v49, %v1953_v45  ;;  %v9195_v20 = vsel %vm1085_vm2, %v1951_v0, %v1952_v49  ;;  %v9199_v33 = vsel %vm1085_vm2, %v1937_v59, %v1938_v14 }
 0x32a   : > { %10982 = vst [vmem:[#allocation34_spill] sm:$0xff] %v9187_v43  ;;  %10983 = vst [vmem:[#allocation57_spill] sm:$0xff] %v9195_v20  ;;  %v9203_v17 = vsel %vm1085_vm2, %v1950_v52, %v1951_v0  ;;  %v9207_v34 = vsel %vm1085_vm2, %v1949_v53, %v1950_v52  ;;  %v9211_v18 = vsel %vm1085_vm2, %v1948_v16, %v1949_v53  ;;  %v1996_v61 = vmul.f32 0.007598758, %v9183_v4 }
 0x32b   : > { %10984 = vst [vmem:[#allocation45_spill] sm:$0xff] %v9207_v34  ;;  %10985 = vst [vmem:[#allocation38_spill] sm:$0xff] %v9211_v18  ;;  %v9215_v32 = vsel %vm1085_vm2, %v1947_v60, %v1948_v16  ;;  %v9219_v59 = vsel %vm1085_vm2, %v1946_v57, %v1947_v60  ;;  %v9223_v0 = vsel %vm1085_vm2, %v1945_v10, %v1946_v57  ;;  %v1997_v57 = vmul.f32 0.007598758, %v9199_v33 }
 0x32c   : > { %10986 = vst [vmem:[#allocation40_spill] sm:$0xff] %v9215_v32  ;;  %10987 = vst [vmem:[#allocation37_spill] sm:$0xff] %v9223_v0  ;;  %v9227_v52 = vsel %vm1085_vm2, %v1942_v8, %v1943_v48  ;;  %v9232_v53 = vsel %vm1085_vm2, %v1944_v7, %v1945_v10  ;;  %v9236_v16 = vsel %vm1085_vm2, %v1943_v48, %v1944_v7  ;;  %v2005_v6 = vmul.f32 0.007598758, %v9219_v59 }
 0x32d   : > { %10988 = vst [vmem:[#allocation44_spill] sm:$0xff] %v9227_v52  ;;  %10989 = vst [vmem:[#allocation43_spill] sm:$0xff] %v9232_v53  ;;  %v9240_v60 = vsel %vm1085_vm2, %v1938_v14, %v1939_v35  ;;  %v9245_v49 = vsel %vm1085_vm2, %v1941_v36, %v1942_v8  ;;  %v9249_v58 = vsel %vm1085_vm2, %v1940_v37, %v1941_v36  ;;  %v2001_v45 = vmul.f32 0.007598758, %v9227_v52  ;;  %v10996_v52 = vld [vmem:[#allocation33_spill] sm:$0xff] }
 0x32e   : > { %10990 = vst [vmem:[#allocation63_spill] sm:$0xff] %v9236_v16  ;;  %v9253_v10 = vsel %vm1085_vm2, %v1939_v35, %v1940_v37  ;;  %v1998_v48 = vmul.f32 0.007598758, %v9240_v60  ;;  %v9260_v14 = vsel %vm1085_vm2, %v1965_v2, %v1936_v25  ;;  %v2000_v8 = vmul.f32 0.007598758, %v9249_v58  ;;  %v10992_v37 = vld [vmem:[#allocation27_spill] sm:$0xff] }
 0x32f   : > { %10991 = vst [vmem:[#allocation56_spill] sm:$0xff] %v9260_v14  ;;  %v1999_v7 = vmul.f32 0.007598758, %v9253_v10  ;;  %v2002_v36 = vmul.f32 0.007598758, %v9236_v16  ;;  %v9269_v47 = vadd.f32 %v1996_v61, %v10992_v37  ;;  %v9275_v14 = vadd.f32 %v1997_v57, %v10994_v24 }
 0x330   : > { %v2003_v43 = vmul.f32 0.007598758, %v9232_v53  ;;  %v2004_v35 = vmul.f32 0.007598758, %v9223_v0  ;;  %v2006_v25 = vmul.f32 0.007598758, %v9211_v18  ;;  %v9281_v0 = vadd.f32 %v1998_v48, %v10996_v52 }
 0x331   : > { %10993 = vst [vmem:[#allocation52_spill] sm:$0xff] %v9269_v47  ;;  %v2007_v2 = vmul.f32 0.007598758, %v9207_v34  ;;  %10995 = vst [vmem:[#allocation50_spill] sm:$0xff] %v9275_v14  ;;  %v2008_v32 = vmul.f32 0.007598758, %v9203_v17 }
 0x332   : > { %v2009_v16 = vmul.f32 0.007598758, %v9195_v20  ;;  %v2010_v53 = vmul.f32 0.007598758, %v9191_v50  ;;  %10997 = vst [vmem:[#allocation46_spill] sm:$0xff] %v9281_v0  ;;  %v10998_v18 = vld [vmem:[#allocation41_spill] sm:$0xff]  ;;  %v9293_v20 = vadd.f32 %v2000_v8, %v9041_v15  ;;  %v9309_v15 = vadd.f32 %v2004_v35, %v9055_v39 }
 0x333   : > { %v2011_v61 = vmul.f32 0.007598758, %v9177_v5  ;;  %v2012_v37 = vmul.f32 0.007598758, %v9173_v30  ;;  %v2013_v47 = vmul.f32 0.007598758, %v9169_v56  ;;  %v9287_v34 = vadd.f32 %v1999_v7, %v10998_v18 }
 0x334   : > { %v2014_v24 = vmul.f32 0.007598758, %v9149_v46  ;;  %v2015_v57 = vmul.f32 0.007598758, %v9165_v9  ;;  %v2016_v14 = vmul.f32 0.007598758, %v9141_v51  ;;  %v9299_v5 = vadd.f32 %v2001_v45, %v9046_v26 }
 0x335   : > { %10999 = vst [vmem:[#allocation31_spill] sm:$0xff] %v9287_v34  ;;  %11000 = vst [vmem:[#allocation29_spill] sm:$0xff] %v9293_v20  ;;  %v2017_v52 = vmul.f32 0.007598758, %v9137_v38  ;;  %v2018_v48 = vmul.f32 0.007598758, %v9161_v62  ;;  %v9303_v7 = vadd.f32 %v2002_v36, %v9049_v41  ;;  %v9306_v34 = vadd.f32 %v2003_v43, %v9052_v3 }
 0x336   : > { %v2019_v0 = vmul.f32 0.007598758, %v9157_v55  ;;  %v2020_v18 = vmul.f32 0.007598758, %v9153_v11  ;;  %v9312_v8 = vadd.f32 %v2005_v6, %v9058_v42  ;;  %v9315_v20 = vadd.f32 %v2006_v25, %v9061_v13  ;;  %v11007_v36 = vld [vmem:[#allocation40_spill] sm:$0xff]  ;;  %v11008_v35 = vld [vmem:[#allocation38_spill] sm:$0xff] }
 0x337   : > { %v9318_v26 = vadd.f32 %v2007_v2, %v9064_v19  ;;  %v9321_v45 = vadd.f32 %v2008_v32, %v9067_v31  ;;  %v9324_v41 = vadd.f32 %v2009_v16, %v9070_v12  ;;  %v9327_v3 = vadd.f32 %v2010_v53, %v9073_v44  ;;  %v11004_v53 = vld [vmem:[#allocation63_spill] sm:$0xff]  ;;  %v11009_v6 = vld [vmem:[#allocation45_spill] sm:$0xff]  ;;  %v11010_v25 = vld [vmem:[#allocation28_spill] sm:$0xff] }
 0x338   : > { %v9330_v39 = vadd.f32 %v2011_v61, %v9076_v23  ;;  %v9333_v42 = vadd.f32 %v2012_v37, %v9079_v27  ;;  %v9336_v13 = vadd.f32 %v2013_v47, %v9082_v54  ;;  %v9339_v19 = vadd.f32 %v2014_v24, %v9085_v21 }
 0x339   : > { %v9342_v31 = vadd.f32 %v2015_v57, %v9088_v22  ;;  %v9345_v12 = vadd.f32 %v2016_v14, %v9091_v63  ;;  %v9348_v44 = vadd.f32 %v2017_v52, %v9094_v28  ;;  %v9351_v23 = vadd.f32 %v2018_v48, %v9097_v1  ;;  %v11003_v1 = vld [vmem:[#allocation44_spill] sm:$0xff] }
 0x33a   : > { %v9354_v27 = vadd.f32 %v2019_v0, %v9100_v40  ;;  %v9357_v54 = vadd.f32 %v2020_v18, %v9103_v29  ;;  %v2046_v21 = vrot.slane %v9183_v4, 1  ;;  %v2047_v22 = vrot.slane %v9199_v33, 1  ;;  %v11005_v0 = vld [vmem:[#allocation43_spill] sm:$0xff]  ;;  %v11006_v29 = vld [vmem:[#allocation37_spill] sm:$0xff]  ;;  %v11011_v48 = vld [vmem:[#allocation56_spill] sm:$0xff] }
 0x33b   : > { %v2048_v47 = vrot.slane %v9240_v60, 1  ;;  %v2049_v63 = vrot.slane %v9253_v10, 1  ;;  %v2050_v28 = vrot.slane %v9249_v58, 1  ;;  %v2051_v43 = vrot.slane %v9245_v49, 1 }
 0x33c   : > { %11001 = vst [vmem:[#allocation60_spill] sm:$0xff] %v9354_v27  ;;  %11002 = vst [vmem:[#allocation58_spill] sm:$0xff] %v9357_v54  ;;  %v2052_v32 = vrot.slane %v11003_v1, 1  ;;  %v2053_v40 = vrot.slane %v11004_v53, 1  ;;  %v2054_v16 = vrot.slane %v11005_v0, 1  ;;  %v2055_v14 = vrot.slane %v11006_v29, 1 }
 0x33d   : > { %v2056_v4 = vrot.slane %v9219_v59, 1  ;;  %v2057_v33 = vrot.slane %v11007_v36, 1  ;;  %v2058_v60 = vrot.slane %v11008_v35, 1  ;;  %v2059_v10 = vrot.slane %v11009_v6, 1  ;;  %v11012_v53 = vld [vmem:[#allocation34_spill] sm:$0xff]  ;;  %v11013_v0 = vld [vmem:[#allocation53_spill] sm:$0xff] }
 0x33e   : > { %v2068_v58 = vrot.slane %v9165_v9, 1  ;;  %v2069_v49 = vrot.slane %v11010_v25, 1  ;;  %v2070_v2 = vrot.slane %v9141_v51, 1  ;;  %v2071_v61 = vrot.slane %v9137_v38, 1  ;;  %v11014_v29 = vld [vmem:[#allocation57_spill] sm:$0xff]  ;;  %v11018_v27 = vld [vmem:[#allocation50_spill] sm:$0xff] }
 0x33f   : > { %v2072_v37 = vrot.slane %v9161_v62, 1  ;;  %v10699_v24 = vrot.slane %v9157_v55, 1  ;;  %v2065_v59 = vrot.slane %v9173_v30, 1  ;;  %v2066_v57 = vrot.slane %v9169_v56, 1 }
 0x340   : > { %v2067_v52 = vrot.slane %v9149_v46, 1  ;;  %v2075_v18 = vrot.slane %v11011_v48, 1  ;;  %v2060_v9 = vrot.slane %v9203_v17, 1  ;;  %v2062_v1 = vrot.slane %v9191_v50, 1 }
 0x341   : > { %v2063_v51 = vrot.slane %v11012_v53, 1  ;;  %v2064_v38 = vrot.slane %v11013_v0, 1  ;;  %v2061_v62 = vrot.slane %v11014_v29, 1  ;;  %v10700_v36 = vrot.slane %v9153_v11, 1 }
 0x342   : > { %v2081_v30 = vsel %vm1085_vm2, %v2068_v58, %v2069_v49  ;;  %v2082_v46 = vsel %vm1085_vm2, %v2067_v52, %v2068_v58  ;;  %v9397_v56 = vsel %vm1085_vm2, %v2072_v37, %v10699_v24  ;;  %v9401_v50 = vsel %vm1085_vm2, %v2071_v61, %v2072_v37 }
 0x343   : > { %v9405_v17 = vsel %vm1085_vm2, %v2070_v2, %v2071_v61  ;;  %v2097_v6 = vsel %vm1085_vm2, %v2049_v63, %v2050_v28  ;;  %v9413_v58 = vsel %vm1085_vm2, %v10700_v36, %v2075_v18  ;;  %v2083_v25 = vsel %vm1085_vm2, %v2066_v57, %v2067_v52 }
 0x344   : > { %v2084_v49 = vsel %vm1085_vm2, %v2065_v59, %v2066_v57  ;;  %v2100_v37 = vsel %vm1085_vm2, %v2046_v21, %v2047_v22  ;;  %v2085_v2 = vsel %vm1085_vm2, %v2064_v38, %v2065_v59  ;;  %v2086_v61 = vsel %vm1085_vm2, %v2062_v1, %v2063_v51 }
 0x345   : > { %v2087_v48 = vsel %vm1085_vm2, %v2061_v62, %v2062_v1  ;;  %v2099_v18 = vsel %vm1085_vm2, %v2047_v22, %v2048_v47  ;;  %v2095_v52 = vsel %vm1085_vm2, %v2052_v32, %v2053_v40  ;;  %v2096_v57 = vsel %vm1085_vm2, %v2050_v28, %v2051_v43 }
 0x346   : > { %v2098_v21 = vsel %vm1085_vm2, %v2048_v47, %v2049_v63  ;;  %v2104_v53 = vmul.f32 0.0010283801, %v2097_v6  ;;  %v2092_v59 = vsel %vm1085_vm2, %v2055_v14, %v2056_v4  ;;  %v2093_v51 = vsel %vm1085_vm2, %v2054_v16, %v2055_v14 }
 0x347   : > { %v2094_v1 = vsel %vm1085_vm2, %v2053_v40, %v2054_v16  ;;  %v2101_v22 = vmul.f32 0.0010283801, %v2100_v37  ;;  %v2089_v32 = vsel %vm1085_vm2, %v2059_v10, %v2060_v9  ;;  %v2090_v28 = vsel %vm1085_vm2, %v2058_v60, %v2059_v10  ;;  %v11016_v16 = vld [vmem:[#allocation31_spill] sm:$0xff]  ;;  %v11017_v60 = vld [vmem:[#allocation52_spill] sm:$0xff] }
 0x348   : > { %v2091_v47 = vsel %vm1085_vm2, %v2056_v4, %v2057_v33  ;;  %v2102_v63 = vmul.f32 0.0010283801, %v2099_v18  ;;  %v2088_v43 = vsel %vm1085_vm2, %v2060_v9, %v2061_v62  ;;  %v2103_v0 = vmul.f32 0.0010283801, %v2098_v21  ;;  %v9458_v62 = vpop.f32.mrf.mxu0  ;;  %v11019_v21 = vld [vmem:[#allocation46_spill] sm:$0xff] }
 0x349   : > { %v2105_v38 = vmul.f32 0.0010283801, %v2096_v57  ;;  %v2106_v14 = vmul.f32 0.0010283801, %v2095_v52  ;;  %v2107_v29 = vmul.f32 0.0010283801, %v2094_v1  ;;  %v9450_v37 = vadd.f32 %v2104_v53, %v11016_v16 }
 0x34a   : > { %v2108_v6 = vmul.f32 0.0010283801, %v2093_v51  ;;  %v2109_v40 = vmul.f32 0.0010283801, %v2092_v59  ;;  %v2110_v24 = vmul.f32 0.0010283801, %v2091_v47  ;;  %v9453_v10 = vadd.f32 %v2101_v22, %v11017_v60 }
 0x34b   : > { %v2111_v36 = vmul.f32 0.0010283801, %v2090_v28  ;;  %v2112_v54 = vmul.f32 0.0010283801, %v2089_v32  ;;  %v2113_v4 = vmul.f32 0.0010283801, %v2088_v43  ;;  %v9456_v9 = vadd.f32 %v2102_v63, %v11018_v27 }
 0x34c   : > { %v2114_v33 = vmul.f32 0.0010283801, %v2087_v48  ;;  %v2115_v18 = vmul.f32 0.0010283801, %v2086_v61  ;;  %v2116_v52 = vmul.f32 0.0010283801, %v2085_v2  ;;  %v9461_v59 = vadd.f32 %v2103_v0, %v11019_v21  ;;  %v5959_v61 = vpop.f32.mrf.mxu0 }
 0x34d   : > { %v2117_v57 = vmul.f32 0.0010283801, %v2084_v49  ;;  %v9464_v53 = vadd.f32 %v2106_v14, %v9299_v5  ;;  %v2118_v51 = vmul.f32 0.0010283801, %v2083_v25  ;;  %v2119_v1 = vmul.f32 0.0010283801, %v2082_v46 }
 0x34e   : > { %v2120_v22 = vmul.f32 0.0010283801, %v2081_v30  ;;  %v11020_v32 = vld [vmem:[#allocation29_spill] sm:$0xff]  ;;  %v2132_v27 = vadd.f32 %v2107_v29, %v9303_v7  ;;  %v2133_v48 = vadd.f32 %v2108_v6, %v9306_v34  ;;  %v9472_v2 = vadd.f32 %v2109_v40, %v9309_v15  ;;  %v9481_v47 = vpop.f32.mrf.mxu0 }
 0x34f   : > { %v9467_v28 = vadd.f32 %v2105_v38, %v11020_v32  ;;  %v9475_v49 = vadd.f32 %v2110_v24, %v9312_v8  ;;  %v2136_v5 = vadd.f32 %v2111_v36, %v9315_v20  ;;  %v2137_v25 = vadd.f32 %v2112_v54, %v9318_v26 }
 0x350   : > { %v2138_v30 = vadd.f32 %v2113_v4, %v9321_v45  ;;  %v2139_v46 = vadd.f32 %v2114_v33, %v9324_v41  ;;  %v2141_v7 = vadd.f32 %v2116_v52, %v9330_v39  ;;  %v2142_v34 = vadd.f32 %v2117_v57, %v9333_v42  ;;  %v5962_v54 = vpop.f32.mrf.mxu0 }
 0x351   : > { %v2151_v15 = vmul.f32 %v9453_v10, %v9453_v10  ;;  %v2156_v8 = vmul.f32 %v9464_v53, %v9464_v53  ;;  %v2143_v20 = vadd.f32 %v2118_v51, %v9336_v13  ;;  %v2144_v26 = vadd.f32 %v2119_v1, %v9339_v19 }
 0x352   : > { %v2152_v45 = vmul.f32 %v9456_v9, %v9456_v9  ;;  %v2153_v41 = vmul.f32 %v9461_v59, %v9461_v59  ;;  %v2154_v39 = vmul.f32 %v9450_v37, %v9450_v37  ;;  %v2157_v42 = vmul.f32 %v2132_v27, %v2132_v27  ;;  %v9505_v0 = vpop.f32.mrf.mxu0 }
 0x353   : > { %v2158_v24 = vmul.f32 %v2133_v48, %v2133_v48  ;;  %v2159_v36 = vmul.f32 %v9472_v2, %v9472_v2  ;;  %v2140_v63 = vadd.f32 %v2115_v18, %v9327_v3  ;;  %v2145_v13 = vadd.f32 %v2120_v22, %v9342_v31 }
 0x354   : > { %v2155_v19 = vmul.f32 %v9467_v28, %v9467_v28  ;;  %v2160_v43 = vmul.f32 %v9475_v49, %v9475_v49  ;;  %v11021_v38 = vrot.slane %v9153_v11, 1  ;;  %v11022_v14 = vrot.slane %v9157_v55, 1  ;;  %v6010_v33 = vpop.f32.mrf.mxu0 }
 0x355   : > { %v2121_v6 = vmul.f32 0.0010283801, %v9405_v17  ;;  %v2181_v3 = vsub.f32 %v2136_v5, %v2151_v15  ;;  %v2186_v40 = vsub.f32 %v2141_v7, %v2156_v8  ;;  %v2122_v31 = vmul.f32 0.0010283801, %v9401_v50 }
 0x356   : > { %v2077_v29 = vsel %vm1085_vm2, %v11022_v14, %v11021_v38  ;;  %v2123_v16 = vmul.f32 0.0010283801, %v9397_v56  ;;  %v2182_v60 = vsub.f32 %v2137_v25, %v2152_v45  ;;  %v2183_v4 = vsub.f32 %v2138_v30, %v2153_v41  ;;  %v3493_v22 = vpop.f32.mrf.mxu0 }
 0x357   : > { %v2184_v18 = vsub.f32 %v2139_v46, %v2154_v39  ;;  %v2187_v52 = vsub.f32 %v2142_v34, %v2157_v42  ;;  %v2188_v57 = vsub.f32 %v2143_v20, %v2158_v24  ;;  %v2189_v11 = vsub.f32 %v2144_v26, %v2159_v36  ;;  %v11023_v46 = vld [vmem:[#allocation60_spill] sm:$0xff]  ;;  %v11024_v34 = vld [vmem:[#allocation58_spill] sm:$0xff] }
 0x358   : > { %v2124_v21 = vmul.f32 0.0010283801, %v2077_v29  ;;  %v2125_v55 = vmul.f32 0.0010283801, %v9413_v58  ;;  %v2185_v51 = vsub.f32 %v2140_v63, %v2155_v19  ;;  %v2190_v1 = vsub.f32 %v2145_v13, %v2160_v43  ;;  %v6013_v50 = vpop.f32.mrf.mxu0 }
 0x359   : > { %v2191_v17 = vadd.f32 %v2186_v40, %v2181_v3  ;;  %v2146_v32 = vadd.f32 %v2121_v6, %v9345_v12  ;;  %v2192_v61 = vadd.f32 %v2187_v52, %v2182_v60  ;;  %v2147_v56 = vadd.f32 %v2122_v31, %v9348_v44 }
 0x35a   : > { %v2148_v5 = vadd.f32 %v2123_v16, %v9351_v23  ;;  %v2193_v25 = vadd.f32 %v2188_v57, %v2183_v4  ;;  %v2194_v30 = vadd.f32 %v2189_v11, %v2184_v18  ;;  %v2149_v7 = vadd.f32 %v2124_v21, %v11023_v46  ;;  %v3498_v54 = vpop.f32.mrf.mxu0  ;;  %v6367_v16 = vld [vmem:[#allocation12 + $0x10] sm:$0xff]  ;;  %v6368_v57 = vld [vmem:[#allocation12 + $0x8] sm:$0xff] }
 0x35b   : > { %v9522_v20 = vadd.f32 %v2125_v55, %v11024_v34  ;;  %v2195_v58 = vadd.f32 %v2190_v1, %v2185_v51  ;;  %v2216_v26 = vadd.f32 %v2156_v8, %v2151_v15  ;;  %v2161_v63 = vmul.f32 %v9464_v53, %v9453_v10  ;;  %6017 = vmatprep.subr.mxu0 %v3498_v54 }
 0x35c   : > { %v2162_v12 = vmul.f32 %v2132_v27, %v9456_v9  ;;  %v2163_v13 = vmul.f32 %v2133_v48, %v9461_v59  ;;  %v2196_v44 = vadd.f32 58.5225, %v2191_v17  ;;  %v9528_v23 = vadd.f32 58.5225, %v2192_v61  ;;  %v6016_v6 = vpop.f32.mrf.mxu0  ;;  %6018 = vmatpush3.msra.mxu0 %v3498_v54  ;;  %v9534_v9 = vld [vmem:[#allocation13 + $0x8] sm:$0xff] }
 0x35d   : > { %v2217_v38 = vadd.f32 %v2157_v42, %v2152_v45  ;;  %v2218_v14 = vadd.f32 %v2158_v24, %v2153_v41  ;;  %v2219_v29 = vadd.f32 %v2159_v36, %v2154_v39  ;;  %v2164_v15 = vmul.f32 %v9472_v2, %v9450_v37  ;;  %6019 = vmatprep.subr.mxu0 %v3493_v22  ;;  %v6369_v17 = vld [vmem:[#allocation12] sm:$0xff] }
 0x35e   : > { %v2165_v8 = vmul.f32 %v9475_v49, %v9467_v28  ;;  %v2198_v10 = vadd.f32 58.5225, %v2193_v25  ;;  %v2199_v53 = vadd.f32 58.5225, %v2194_v30  ;;  %v2200_v59 = vadd.f32 58.5225, %v2195_v58  ;;  %6020 = vmatpush3.msra.mxu0 %v3493_v22 }
 0x35f   : > { %v2220_v27 = vadd.f32 %v2160_v43, %v2155_v19  ;;  %v2221_v48 = vadd.f32 6.5025, %v2216_v26  ;;  %v2222_v3 = vadd.f32 6.5025, %v2217_v38  ;;  %v2166_v45 = vsub.f32 %v2146_v32, %v2161_v63  ;;  %6021 = vmatprep.subr.mxu0 %v9505_v0 }
 0x360   : > { %v2167_v41 = vsub.f32 %v2147_v56, %v2162_v12  ;;  %v2223_v39 = vadd.f32 6.5025, %v2218_v14  ;;  %v2224_v42 = vadd.f32 6.5025, %v2219_v29  ;;  %v2168_v37 = vsub.f32 %v2148_v5, %v2163_v13  ;;  %6022 = vmatpush3.msra.mxu0 %v9505_v0 }
 0x361   : > { %v2225_v2 = vadd.f32 6.5025, %v2220_v27  ;;  %v2226_v24 = vmul.f32 %v2221_v48, %v2196_v44  ;;  %v2227_v28 = vmul.f32 %v2222_v3, %v9528_v23  ;;  %v2169_v49 = vsub.f32 %v2149_v7, %v2164_v15  ;;  %6024 = vmatmul.mubr.msk.f32.vlgmr.msra.gmra.mxu0 %vm2665_vm3, %v9534_v9  ;;  %v9562_v7 = vpop.f32.mrf.mxu1 }
 0x362   : > { %v2228_v36 = vmul.f32 %v2223_v39, %v2198_v10  ;;  %v2229_v40 = vmul.f32 %v2224_v42, %v2199_v53  ;;  %6321 = vrcp.f32 %v2196_v44  ;;  %v11025_v19 = vmov 0.0   ;;  %5967 = vmatmul.mubr.msk.f32.gmra.mxu1 %vm2665_vm3, %v9562_v7 }
 0x363   : > { %6026 = vmatprep.subr.mxu0 %v11025_v19  ;;  %v2170_v43 = vsub.f32 %v9522_v20, %v2165_v8  ;;  %v2230_v31 = vmul.f32 %v2225_v2, %v2200_v59  ;;  %6323 = vrcp.f32 %v2226_v24  ;;  %6032 = vmatprep.mubr.msk.f32.mxu0 %vm6734_vm1, %v11025_v19  ;;  %v2171_v60 = vmul.f32 2.0, %v2166_v45  ;;  %v5944_v54 = vpop.f32.mrf.mxu1 }
 0x364   : > { %6027 = vmatpush3.msra.mxu0 %v6367_v16  ;;  %6325 = vrcp.f32 %v2227_v28  ;;  %v2861_v0 = vrot.slane %v9458_v62, 1  ;;  %v2862_v4 = vrot.slane %v9481_v47, 1  ;;  %v2172_v33 = vmul.f32 2.0, %v2167_v41  ;;  %5969 = vmatprep.mubr.msk.f32.mxu1 %vm6734_vm1, %v11025_v19 }
 0x365   : > { %6028 = vmatprep.subr.mxu0 %v11025_v19  ;;  %v2173_v18 = vmul.f32 2.0, %v2168_v37  ;;  %v2201_v52 = vmul.f32 2.0, %v2161_v63  ;;  %6327 = vrcp.f32 %v2228_v36  ;;  %v2174_v11 = vmul.f32 2.0, %v2169_v49  ;;  %v11026_v37 = vld [vmem:[#allocation47_spill] sm:$0xff]  ;;  %v11027_v36 = vld [vmem:[#allocation32_spill] sm:$0xff] }
 0x366   : > { %6029 = vmatpush3.msra.mxu0 %v6368_v57  ;;  %v2202_v21 = vmul.f32 2.0, %v2162_v12  ;;  %6329 = vrcp.f32 %v2229_v40  ;;  %v9554_v55 = vsel %vm1085_vm2, %v2861_v0, %v2862_v4  ;;  %v2203_v51 = vmul.f32 2.0, %v2163_v13 }
 0x367   : > { %6030 = vmatprep.subr.mxu0 %v11025_v19  ;;  %6331 = vrcp.f32 %v2230_v31  ;;  %v2851_v1 = vmul.f32 0.0010283801, %v9458_v62  ;;  %v2891_v22 = vmul.f32 0.007598758, %v9554_v55  ;;  %v2175_v32 = vmul.f32 2.0, %v2170_v43 }
 0x368   : > { %6031 = vmatpush3.msra.mxu0 %v6369_v17  ;;  %v2176_v61 = vadd.f32 58.5225, %v2171_v60  ;;  %v2204_v50 = vmul.f32 2.0, %v2164_v15  ;;  %6333 = vrcp.f32 %v9528_v23  ;;  %v2205_v56 = vmul.f32 2.0, %v2165_v8  ;;  %v9572_v23 = vpop.f32.mrf.mxu1  ;;  %v11028_v17 = vld [vmem:[#allocation49_spill] sm:$0xff] }
 0x369   : > { %v2206_v5 = vadd.f32 6.5025, %v2201_v52  ;;  %6335 = vrcp.f32 %v2198_v10  ;;  %v9560_v25 = vadd.f32 %v2891_v22, %v2851_v1  ;;  %v2177_v30 = vadd.f32 58.5225, %v2172_v33  ;;  %6033 = vmatmul.mubr.msk.f32.vlgmr.msra.gmra.mxu0 %vm2665_vm3, %v9562_v7  ;;  %5970 = vmatmul.mubr.msk.f32.gmra.mxu1 %vm2665_vm3, %v9572_v23 }
 0x36a   : > { %v2207_v46 = vadd.f32 6.5025, %v2202_v21  ;;  %6337 = vrcp.f32 %v2199_v53  ;;  %v2178_v34 = vadd.f32 58.5225, %v2173_v18  ;;  %v2208_v20 = vadd.f32 6.5025, %v2203_v51  ;;  %6035 = vmatprep.mubr.msk.f32.mxu0 %vm6734_vm1, %v11025_v19  ;;  %v5947_v15 = vpop.f32.mrf.mxu1  ;;  %5972 = vmatprep.mubr.msk.f32.mxu1 %vm6734_vm1, %v11025_v19 }
 0x36b   : > { %6339 = vrcp.f32 %v2200_v59  ;;  %v2179_v58 = vadd.f32 58.5225, %v2174_v11  ;;  %v2209_v26 = vadd.f32 6.5025, %v2204_v50  ;;  %v2180_v63 = vadd.f32 58.5225, %v2175_v32 }
 0x36c   : > { %v2210_v12 = vadd.f32 6.5025, %v2205_v56  ;;  %v2211_v13 = vmul.f32 %v2206_v5, %v2176_v61  ;;  %v2212_v44 = vmul.f32 %v2207_v46, %v2177_v30  ;;  %v2213_v14 = vmul.f32 %v2208_v20, %v2178_v34  ;;  %v9582_v3 = vpop.f32.mrf.mxu1 }
 0x36d   : > { %6036 = vmatmul.mubr.msk.f32.gmra.mxu0 %vm2665_vm3, %v9572_v23  ;;  %v2214_v6 = vmul.f32 %v2209_v26, %v2179_v58  ;;  %5973 = vmatmul.mubr.msk.f32.gmra.mxu1 %vm2665_vm3, %v9582_v3  ;;  %v2656_v2 = vmul.f32 %v11026_v37, %v11026_v37  ;;  %v2657_v32 = vmul.f32 %v11028_v17, %v11028_v17 }
 0x36e   : > { %6038 = vmatprep.mubr.msk.f32.mxu0 %vm6734_vm1, %v11025_v19  ;;  %v2215_v10 = vmul.f32 %v2210_v12, %v2180_v63  ;;  %v5950_v49 = vpop.f32.mrf.mxu1  ;;  %5975 = vmatprep.mubr.msk.f32.mxu1 %vm6734_vm1, %v11025_v19 }
 0x36f   : > { %v6322_v38 = vpop.eup %6321 }
 0x370   : > { %v6324_v29 = vpop.eup %6323  ;;  %v2242_v48 = vmul.f32 %v6322_v38, %v2176_v61  ;;  %v9599_v57 = vpop.f32.mrf.mxu1  ;;  %v2911_v38 = vrot.slane %v9554_v55, 1 }
 0x371   : > { %v6326_v8 = vpop.eup %6325  ;;  %v2232_v53 = vmul.f32 %v6324_v29, %v2211_v13  ;;  %6039 = vmatmul.mubr.msk.f32.gmra.mxu0 %vm2665_vm3, %v9582_v3  ;;  %v2863_v1 = vrot.slane %v9599_v57, 1  ;;  %5976 = vmatmul.mubr.msk.f32.gmra.mxu1 %vm2665_vm3, %v2656_v2  ;;  %v2852_v13 = vmul.f32 0.0010283801, %v9481_v47  ;;  %v11029_v29 = vld [vmem:[#allocation51_spill] sm:$0xff] }
 0x372   : > { %v6328_v59 = vpop.eup %6327  ;;  %v2234_v27 = vmul.f32 %v6326_v8, %v2212_v44  ;;  %6047 = vmatprep.mubr.msk.f32.mxu0 %vm2665_vm3, %v11027_v36  ;;  %v2271_v52 = vsel %vm2251_vm4, %v2242_v48, 0.0  ;;  %v5965_v5 = vpop.f32.mrf.mxu1  ;;  %5978 = vmatprep.mubr.msk.f32.mxu1 %vm6734_vm1, %v11025_v19  ;;  %v2661_v48 = vmul.f32 %v9582_v3, %v9582_v3 }
 0x373   : > { %v6330_v45 = vpop.eup %6329  ;;  %v2236_v41 = vmul.f32 %v6328_v59, %v2213_v14  ;;  %v2252_v39 = vsel %vm2251_vm4, %v2232_v53, 0.0  ;;  %v2659_v53 = vmul.f32 %v9562_v7, %v9562_v7 }
 0x374   : > { %v6332_v42 = vpop.eup %6331  ;;  %v2238_v24 = vmul.f32 %v6330_v45, %v2214_v6  ;;  %v2253_v28 = vsel %vm2251_vm4, %v2234_v27, 0.0  ;;  %v2660_v27 = vmul.f32 %v9572_v23, %v9572_v23  ;;  %v2663_v45 = vmul.f32 %v9572_v23, %v11028_v17  ;;  %v9682_v23 = vld [vmem:[%s10589_s9] sm:$0xff] }
 0x375   : > { %v6334_v40 = vpop.eup %6333  ;;  %v2240_v43 = vmul.f32 %v6332_v42, %v2215_v10  ;;  %v2254_v31 = vadd.f32 %v2253_v28, %v2252_v39  ;;  %v2255_v16 = vsel %vm2251_vm4, %v2236_v41, 0.0  ;;  %5979 = vmatmul.mubr.msk.f32.gmra.mxu1 %vm2665_vm3, %v2657_v32  ;;  %v2664_v41 = vmul.f32 %v9582_v3, %v11029_v29 }
 0x376   : > { %v6336_v60 = vpop.eup %6335  ;;  %v2257_v33 = vsel %vm2251_vm4, %v2238_v24, 0.0  ;;  %v2244_v18 = vmul.f32 %v6334_v40, %v2177_v30  ;;  %5981 = vmatprep.mubr.msk.f32.mxu1 %vm6734_vm1, %v11025_v19 }
 0x377   : > { %v6338_v11 = vpop.eup %6337  ;;  %v2256_v21 = vadd.f32 %v2255_v16, %v2254_v31  ;;  %v2246_v51 = vmul.f32 %v6336_v60, %v2178_v34  ;;  %v2260_v61 = vsel %vm2259_vm5, %v2240_v43, 0.0 }
 0x378   : > { %v6340_v22 = vpop.eup %6339  ;;  %v2248_v50 = vmul.f32 %v6338_v11, %v2179_v58  ;;  %v2272_v56 = vsel %vm2251_vm4, %v2244_v18, 0.0  ;;  %v9617_v58 = vsel %vm1085_vm2, %v2862_v4, %v2863_v1  ;;  %v2658_v4 = vmul.f32 %v11029_v29, %v11029_v29 }
 0x379   : > { %v2258_v30 = vadd.f32 %v2257_v33, %v2256_v21  ;;  %v2250_v46 = vmul.f32 %v6340_v22, %v2180_v63  ;;  %v2273_v34 = vadd.f32 %v2272_v56, %v2271_v52  ;;  %v2274_v20 = vsel %vm2251_vm4, %v2246_v51, 0.0 }
 0x37a   : > { %v2276_v26 = vsel %vm2251_vm4, %v2248_v50, 0.0  ;;  %v2892_v44 = vmul.f32 0.007598758, %v9617_v58  ;;  %v2912_v14 = vrot.slane %v9617_v58, 1  ;;  %5982 = vmatmul.mubr.msk.f32.gmra.mxu1 %vm2665_vm3, %v2658_v4 }
 0x37b   : > { %v2261_v54 = vadd.f32 %v2260_v61, %v2258_v30  ;;  %v2275_v12 = vadd.f32 %v2274_v20, %v2273_v34  ;;  %v2278_v63 = vsel %vm2259_vm5, %v2250_v46, 0.0  ;;  %5984 = vmatprep.mubr.msk.f32.mxu1 %vm6734_vm1, %v11025_v19 }
 0x37c   : > { %v9629_v15 = vadd.f32 %v2892_v44, %v2852_v13  ;;  %v9637_v47 = vsel %vm1085_vm2, %v2911_v38, %v2912_v14 }
 0x37d   : > { %2262 = vadd.xlane.f32.xlu0 %v2261_v54  ;;  %v2277_v6 = vadd.f32 %v2276_v26, %v2275_v12  ;;  %v2941_v10 = vmul.f32 0.036000773, %v9637_v47  ;;  %v2961_v34 = vrot.slane %v9637_v47, 1 }
 0x37e   : > { %5985 = vmatmul.mubr.msk.f32.gmra.mxu1 %vm2665_vm3, %v2659_v53 }
 0x37f   : > { %v2279_v8 = vadd.f32 %v2278_v63, %v2277_v6  ;;  %v9646_v59 = vadd.f32 %v2941_v10, %v9560_v25  ;;  %5987 = vmatprep.mubr.msk.f32.mxu1 %vm6734_vm1, %v11025_v19  ;;  %v2662_v25 = vmul.f32 %v9562_v7, %v11026_v37  ;;  %v9677_v7 = vld [vmem:[%s10589_s9 + $0x8] sm:$0xf] }
 0x380   : > { %6069 = vmatprep.subr.msk.mxu1 %vm3780_vm6, %v9677_v7 }
 0x381   : > { %2280 = vadd.xlane.f32.xlu0 %v2279_v8  ;;  %6070 = vmatpush3.msk.msra.mxu1 %vm3780_vm6, %v9677_v7 }
 0x382   : > { %5988 = vmatmul.mubr.msk.f32.gmra.mxu1 %vm2665_vm3, %v2660_v27  ;;  %6071 = vmatprep.subr.mxu1 %v9682_v23  ;;  %v3739_v27 = vld [vmem:[#allocation15 + $0x8] sm:$0xf] }
 0x383   : > { %5990 = vmatprep.mubr.msk.f32.mxu1 %vm6734_vm1, %v11025_v19  ;;  %6072 = vmatpush3.msra.mxu1 %v9682_v23 }
 0x384   : > { %6076 = vmatprep.subr.mxu1 %v11025_v19 }
 0x386   : > { %5991 = vmatmul.mubr.msk.f32.gmra.mxu1 %vm2665_vm3, %v2661_v48 }
 0x387   : > { %5993 = vmatprep.mubr.msk.f32.mxu1 %vm6734_vm1, %v11025_v19 }
 0x38a   : > { %5994 = vmatmul.mubr.msk.f32.gmra.mxu1 %vm2665_vm3, %v2662_v25 }
 0x38b   : > { %5996 = vmatprep.mubr.msk.f32.mxu1 %vm6734_vm1, %v11025_v19 }
 0x38e   : > { %5997 = vmatmul.mubr.msk.f32.gmra.mxu1 %vm2665_vm3, %v2663_v45 }
 0x38f   : > { %5999 = vmatprep.mubr.msk.f32.mxu1 %vm6734_vm1, %v11025_v19 }
 0x392   : > { %6000 = vmatmul.mubr.msk.f32.gmra.mxu1 %vm2665_vm3, %v2664_v41 }
 0x406   : > { %v2263_v3 = vpop.xlane.xlu0 %2262 }
 0x407   : > { %v2264_v39 = vrot.slane %v2263_v3, 4 }
 0x409   : > { %v2265_v42 = vadd.f32 %v2264_v39, %v2263_v3 }
 0x40a   : > { %v2281_v37 = vpop.xlane.xlu0 %2280 }
 0x40b   : > { %v2266_v2 = vrot.slane %v2265_v42, 2  ;;  %v2282_v24 = vrot.slane %v2281_v37, 4 }
 0x40d   : > { %v2283_v28 = vadd.f32 %v2282_v24, %v2281_v37  ;;  %v2267_v49 = vadd.f32 %v2266_v2, %v2265_v42 }
 0x40f   : > { %v2284_v36 = vrot.slane %v2283_v28, 2  ;;  %v2268_v40 = vrot.slane %v2267_v49, 1 }
 0x411   : > { %v2269_v43 = vadd.f32 %v2268_v40, %v2267_v49  ;;  %v2285_v31 = vadd.f32 %v2284_v36, %v2283_v28 }
 0x413   : > { %6162 = vpush %v2269_v43  ;;  %v2286_v16 = vrot.slane %v2285_v31, 1 }
 0x415   : > { %v2287_v60 = vadd.f32 %v2286_v16, %v2285_v31 }
 0x417   : > { %6164 = vpush %v2287_v60 }
 0x421   : > { %v9691_v33 = vpop.f32.mrf.mxu0 }
 0x422   : > { %v2792_v52 = vpop.f32.mrf.mxu1 }
 0x423   : > { %v9693_v18 = vpop.f32.mrf.mxu0  ;;  %v2864_v21 = vrot.slane %v2792_v52, 1  ;;  %v2853_v54 = vmul.f32 0.0010283801, %v2792_v52 }
 0x424   : > { %6073 = vmatprep.mubr.msk.f32.mxu1 %vm3749_vm7, %v9693_v18  ;;  %v5968_v51 = vpop.f32.mrf.mxu1 }
 0x425   : > { %6074 = vmatmul.mubr.msk.f32.vlgmr.msra.gmra.mxu1 %vm3749_vm7, %v9691_v33  ;;  %v2887_v17 = vsel %vm1085_vm2, %v2863_v1, %v2864_v21 }
 0x426   : > { %6080 = vmatprep.mubr.msk.f32.mxu1 %vm6734_vm1, %v11025_v19  ;;  %v2913_v32 = vrot.slane %v2887_v17, 1 }
 0x428   : > { %v2938_v5 = vsel %vm1085_vm2, %v2912_v14, %v2913_v32 }
 0x429   : > { %v3649_v11 = vpop.f32.mrf.mxu0  ;;  %v2797_v61 = vpop.f32.mrf.mxu1  ;;  %v2942_v20 = vmul.f32 0.036000773, %v2938_v5  ;;  %v2962_v26 = vrot.slane %v2938_v5, 1 }
 0x42a   : > { %v2865_v56 = vrot.slane %v2797_v61, 1  ;;  %v2854_v25 = vmul.f32 0.0010283801, %v2797_v61 }
 0x42b   : > { %v6034_v22 = vpop.f32.mrf.mxu0  ;;  %v5971_v30 = vpop.f32.mrf.mxu1  ;;  %v2952_v63 = vadd.f32 %v2942_v20, %v9629_v15  ;;  %v9717_v58 = vsel %vm1085_vm2, %v2961_v34, %v2962_v26 }
 0x42c   : > { %v2886_v57 = vsel %vm1085_vm2, %v2864_v21, %v2865_v56  ;;  %v2991_v29 = vmul.f32 0.10936069, %v9717_v58  ;;  %v3011_v39 = vrot.slane %v9717_v58, 1 }
 0x42d   : > { %v3654_v50 = vpop.f32.mrf.mxu0  ;;  %v2893_v1 = vmul.f32 0.007598758, %v2886_v57  ;;  %v2914_v12 = vrot.slane %v2886_v57, 1  ;;  %v2802_v13 = vpop.f32.mrf.mxu1 }
 0x42e   : > { %v2866_v14 = vrot.slane %v2802_v13, 1  ;;  %v3001_v48 = vadd.f32 %v2991_v29, %v9646_v59  ;;  %v3738_v59 = vld [vmem:[#allocation15] sm:$0xff] }
 0x42f   : > { %v6037_v46 = vpop.f32.mrf.mxu0  ;;  %v2903_v4 = vadd.f32 %v2893_v1, %v2853_v54  ;;  %v2937_v6 = vsel %vm1085_vm2, %v2913_v32, %v2914_v12  ;;  %v5974_v8 = vpop.f32.mrf.mxu1 }
 0x430   : > { %v2963_v53 = vrot.slane %v2937_v6, 1  ;;  %v2885_v15 = vsel %vm1085_vm2, %v2865_v56, %v2866_v14 }
 0x431   : > { %v3659_v44 = vpop.f32.mrf.mxu0  ;;  %v2894_v45 = vmul.f32 0.007598758, %v2885_v15  ;;  %v2915_v41 = vrot.slane %v2885_v15, 1  ;;  %v2807_v3 = vpop.f32.mrf.mxu1 }
 0x432   : > { %6041 = vmatprep.subr.mxu0 %v3659_v44  ;;  %v2988_v42 = vsel %vm1085_vm2, %v2962_v26, %v2963_v53  ;;  %v2867_v37 = vrot.slane %v2807_v3, 1  ;;  %v2855_v20 = vmul.f32 0.0010283801, %v2807_v3 }
 0x433   : > { %v6040_v10 = vpop.f32.mrf.mxu0  ;;  %6042 = vmatpush3.msra.mxu0 %v3659_v44  ;;  %v2992_v2 = vmul.f32 0.10936069, %v2988_v42  ;;  %v3012_v24 = vrot.slane %v2988_v42, 1  ;;  %v2904_v28 = vadd.f32 %v2894_v45, %v2854_v25  ;;  %v2936_v49 = vsel %vm1085_vm2, %v2914_v12, %v2915_v41  ;;  %v5977_v36 = vpop.f32.mrf.mxu1 }
 0x434   : > { %6043 = vmatprep.subr.mxu0 %v3654_v50  ;;  %v2943_v40 = vmul.f32 0.036000773, %v2936_v49  ;;  %v2964_v43 = vrot.slane %v2936_v49, 1  ;;  %v2884_v31 = vsel %vm1085_vm2, %v2866_v14, %v2867_v37 }
 0x435   : > { %6044 = vmatpush3.msra.mxu0 %v3654_v50  ;;  %v3002_v16 = vadd.f32 %v2992_v2, %v2952_v63  ;;  %v9739_v60 = vsel %vm1085_vm2, %v3011_v39, %v3012_v24  ;;  %v2916_v52 = vrot.slane %v2884_v31, 1 }
 0x436   : > { %6045 = vmatprep.subr.mxu0 %v3649_v11  ;;  %v3041_v21 = vmul.f32 0.21300554, %v9739_v60  ;;  %v2953_v51 = vadd.f32 %v2943_v40, %v2903_v4  ;;  %v3061_v30 = vrot.slane %v9739_v60, 1 }
 0x437   : > { %6046 = vmatpush3.msra.mxu0 %v3649_v11  ;;  %v2812_v11 = vpop.f32.mrf.mxu1  ;;  %v2935_v17 = vsel %vm1085_vm2, %v2915_v41, %v2916_v52 }
 0x438   : > { %6048 = vmatmul.mubr.msk.f32.vlgmr.msra.gmra.mxu0 %vm2665_vm3, %v9534_v9  ;;  %6050 = vmatprep.subr.msk.mxu0 %vm3780_vm6, %v3739_v27  ;;  %v2987_v9 = vsel %vm1085_vm2, %v2963_v53, %v2964_v43  ;;  %v2868_v32 = vrot.slane %v2812_v11, 1  ;;  %v2944_v50 = vmul.f32 0.036000773, %v2935_v17  ;;  %v2965_v56 = vrot.slane %v2935_v17, 1 }
 0x439   : > { %6051 = vmatpush3.msk.msra.mxu0 %vm3780_vm6, %v3739_v27  ;;  %6054 = vmatprep.mubr.msk.f32.mxu0 %vm3749_vm7, %v9693_v18  ;;  %v3013_v22 = vrot.slane %v2987_v9, 1  ;;  %v5980_v61 = vpop.f32.mrf.mxu1  ;;  %v9751_v5 = vadd.f32 %v3041_v21, %v3001_v48  ;;  %v2856_v41 = vmul.f32 0.0010283801, %v2812_v11  ;;  %vm4778_vm3 = vcmask 18432  }
 0x43a   : > { %6052 = vmatprep.subr.mxu0 %v3738_v59  ;;  %v2883_v26 = vsel %vm1085_vm2, %v2867_v37, %v2868_v32  ;;  %v2954_v12 = vadd.f32 %v2944_v50, %v2904_v28  ;;  %v2986_v13 = vsel %vm1085_vm2, %v2964_v43, %v2965_v56 }
 0x43b   : > { %6053 = vmatpush3.msra.mxu0 %v3738_v59  ;;  %v3038_v46 = vsel %vm1085_vm2, %v3012_v24, %v3013_v22  ;;  %v2817_v57 = vpop.f32.mrf.mxu1  ;;  %v2993_v44 = vmul.f32 0.10936069, %v2986_v13  ;;  %v3014_v63 = vrot.slane %v2986_v13, 1  ;;  %v2895_v14 = vmul.f32 0.007598758, %v2883_v26 }
 0x43c   : > { %6055 = vmatmul.mubr.msk.f32.vlgmr.msra.gmra.mxu0 %vm3749_vm7, %v9691_v33  ;;  %6083 = vmatprep.subr.msk.mxu0 %vm3780_vm6, %v9677_v7  ;;  %v3042_v54 = vmul.f32 0.21300554, %v3038_v46  ;;  %v3062_v1 = vrot.slane %v3038_v46, 1  ;;  %v2917_v29 = vrot.slane %v2883_v26, 1  ;;  %v2869_v6 = vrot.slane %v2817_v57, 1 }
 0x43d   : > { %6084 = vmatpush3.msk.msra.mxu0 %vm3780_vm6, %v9677_v7  ;;  %v5983_v4 = vpop.f32.mrf.mxu1  ;;  %v3003_v10 = vadd.f32 %v2993_v44, %v2953_v51  ;;  %v3037_v53 = vsel %vm1085_vm2, %v3013_v22, %v3014_v63  ;;  %v2905_v15 = vadd.f32 %v2895_v14, %v2855_v20 }
 0x43e   : > { %6085 = vmatprep.subr.mxu0 %v9682_v23  ;;  %v9766_v8 = vadd.f32 %v3042_v54, %v3002_v16  ;;  %v9772_v7 = vsel %vm1085_vm2, %v3061_v30, %v3062_v1  ;;  %v2934_v27 = vsel %vm1085_vm2, %v2916_v52, %v2917_v29  ;;  %v3063_v48 = vrot.slane %v3037_v53, 1 }
 0x43f   : > { %6086 = vmatpush3.msra.mxu0 %v9682_v23  ;;  %v2822_v23 = vpop.f32.mrf.mxu1  ;;  %v2966_v25 = vrot.slane %v2934_v27, 1  ;;  %v2882_v45 = vsel %vm1085_vm2, %v2868_v32, %v2869_v6  ;;  %v9794_v50 = vmul.f32 0.26601171, %v9772_v7 }
 0x440   : > { %6097 = vmatprep.subr.mxu0 %v11025_v19  ;;  %v2896_v3 = vmul.f32 0.007598758, %v2882_v45  ;;  %v2918_v42 = vrot.slane %v2882_v45, 1  ;;  %v2870_v37 = vrot.slane %v2822_v23, 1  ;;  %v9785_v28 = vsel %vm1085_vm2, %v3062_v1, %v3063_v48 }
 0x441   : > { %v5986_v2 = vpop.f32.mrf.mxu1  ;;  %v2985_v24 = vsel %vm1085_vm2, %v2965_v56, %v2966_v25  ;;  %v2857_v51 = vmul.f32 0.0010283801, %v2822_v23  ;;  %v9801_v13 = vmul.f32 0.26601171, %v9785_v28  ;;  %v9890_v62 = vadd.f32 %v9794_v50, %v9751_v5 }
 0x442   : > { %v2994_v49 = vmul.f32 0.10936069, %v2985_v24  ;;  %v3015_v36 = vrot.slane %v2985_v24, 1  ;;  %v2906_v59 = vadd.f32 %v2896_v3, %v2856_v41  ;;  %v2933_v40 = vsel %vm1085_vm2, %v2917_v29, %v2918_v42 }
 0x443   : > { %v2827_v43 = vpop.f32.mrf.mxu1  ;;  %v2945_v31 = vmul.f32 0.036000773, %v2933_v40  ;;  %v2967_v16 = vrot.slane %v2933_v40, 1  ;;  %v2881_v52 = vsel %vm1085_vm2, %v2869_v6, %v2870_v37  ;;  %v9925_v47 = vadd.f32 %v9801_v13, %v9766_v8 }
 0x444   : > { %v3004_v11 = vadd.f32 %v2994_v49, %v2954_v12  ;;  %v3036_v21 = vsel %vm1085_vm2, %v3014_v63, %v3015_v36  ;;  %v2919_v9 = vrot.slane %v2881_v52, 1  ;;  %v2858_v20 = vmul.f32 0.0010283801, %v2827_v43  ;;  %s6163_s17 = spop %6162 }
 0x445   : > { %v5989_v22 = vpop.f32.mrf.mxu1  ;;  %v3043_v17 = vmul.f32 0.21300554, %v3036_v21  ;;  %v3064_v32 = vrot.slane %v3036_v21, 1  ;;  %v2955_v61 = vadd.f32 %v2945_v31, %v2905_v15  ;;  %v2984_v56 = vsel %vm1085_vm2, %v2966_v25, %v2967_v16 }
 0x446   : > { %v2932_v46 = vsel %vm1085_vm2, %v2918_v42, %v2919_v9  ;;  %v2871_v26 = vrot.slane %v2827_v43, 1  ;;  %v3016_v54 = vrot.slane %v2984_v56, 1 }
 0x447   : > { %v2832_v57 = vpop.f32.mrf.mxu1  ;;  %v2946_v1 = vmul.f32 0.036000773, %v2932_v46  ;;  %v2968_v12 = vrot.slane %v2932_v46, 1  ;;  %v9805_v29 = vadd.f32 %v3043_v17, %v3003_v10  ;;  %v9809_v4 = vsel %vm1085_vm2, %v3063_v48, %v3064_v32 }
 0x448   : > { %v2880_v44 = vsel %vm1085_vm2, %v2870_v37, %v2871_v26  ;;  %v2872_v63 = vrot.slane %v2832_v57, 1  ;;  %v3035_v6 = vsel %vm1085_vm2, %v3015_v36, %v3016_v54  ;;  %s6165_s7 = spop %6164 }
 0x449   : > { %v5992_v14 = vpop.f32.mrf.mxu1  ;;  %v2956_v53 = vadd.f32 %v2946_v1, %v2906_v59  ;;  %v2983_v15 = vsel %vm1085_vm2, %v2967_v16, %v2968_v12  ;;  %v2897_v27 = vmul.f32 0.007598758, %v2880_v44  ;;  %v3044_v23 = vmul.f32 0.21300554, %v3035_v6 }
 0x44a   : > { %v3065_v25 = vrot.slane %v3035_v6, 1  ;;  %v2995_v45 = vmul.f32 0.10936069, %v2983_v15  ;;  %v3017_v41 = vrot.slane %v2983_v15, 1  ;;  %v2920_v10 = vrot.slane %v2880_v44, 1 }
 0x44b   : > { %v2837_v3 = vpop.f32.mrf.mxu1  ;;  %v2907_v42 = vadd.f32 %v2897_v27, %v2857_v51  ;;  %v2879_v37 = vsel %vm1085_vm2, %v2871_v26, %v2872_v63  ;;  %v9824_v16 = vadd.f32 %v3044_v23, %v3004_v11 }
 0x44c   : > { %v2859_v48 = vmul.f32 0.0010283801, %v2837_v3  ;;  %v3005_v2 = vadd.f32 %v2995_v45, %v2955_v61  ;;  %v9819_v24 = vsel %vm1085_vm2, %v3016_v54, %v3017_v41  ;;  %v2898_v49 = vmul.f32 0.007598758, %v2879_v37 }
 0x44d   : > { %v2921_v36 = vrot.slane %v2879_v37, 1  ;;  %v5995_v59 = vpop.f32.mrf.mxu1  ;;  %v3066_v40 = vrot.slane %v9819_v24, 1  ;;  %v2931_v43 = vsel %vm1085_vm2, %v2919_v9, %v2920_v10  ;;  %v2873_v31 = vrot.slane %v2837_v3, 1 }
 0x44e   : > { %v2969_v52 = vrot.slane %v2931_v43, 1  ;;  %v2908_v21 = vadd.f32 %v2898_v49, %v2858_v20  ;;  %v9830_v17 = vsel %vm1085_vm2, %v3064_v32, %v3065_v25 }
 0x44f   : > { %v2930_v51 = vsel %vm1085_vm2, %v2920_v10, %v2921_v36  ;;  %v2842_v22 = vpop.f32.mrf.mxu1  ;;  %v2878_v46 = vsel %vm1085_vm2, %v2872_v63, %v2873_v31  ;;  %v9838_v54 = vsel %vm1085_vm2, %v3065_v25, %v3066_v40  ;;  %v9847_v27 = vmul.f32 0.26601171, %v9830_v17 }
 0x450   : > { %v2947_v61 = vmul.f32 0.036000773, %v2930_v51  ;;  %v2970_v56 = vrot.slane %v2930_v51, 1  ;;  %v2860_v26 = vmul.f32 0.0010283801, %v2842_v22  ;;  %v2982_v11 = vsel %vm1085_vm2, %v2968_v12, %v2969_v52 }
 0x451   : > { %v2922_v9 = vrot.slane %v2878_v46, 1  ;;  %v2874_v57 = vrot.slane %v2842_v22, 1  ;;  %v5998_v20 = vpop.f32.mrf.mxu1  ;;  %v2996_v1 = vmul.f32 0.10936069, %v2982_v11  ;;  %v3018_v44 = vrot.slane %v2982_v11, 1 }
 0x452   : > { %v2957_v32 = vadd.f32 %v2947_v61, %v2907_v42  ;;  %v2981_v14 = vsel %vm1085_vm2, %v2969_v52, %v2970_v56 }
 0x453   : > { %v3019_v6 = vrot.slane %v2981_v14, 1  ;;  %v2929_v63 = vsel %vm1085_vm2, %v2921_v36, %v2922_v9  ;;  %v2877_v12 = vsel %vm1085_vm2, %v2873_v31, %v2874_v57  ;;  %v2847_v15 = vpop.f32.mrf.mxu1  ;;  %v3006_v23 = vadd.f32 %v2996_v1, %v2956_v53 }
 0x454   : > { %v3033_v25 = vsel %vm1085_vm2, %v3017_v41, %v3018_v44  ;;  %v2948_v45 = vmul.f32 0.036000773, %v2929_v63  ;;  %v2971_v3 = vrot.slane %v2929_v63, 1  ;;  %v2899_v24 = vmul.f32 0.007598758, %v2877_v12 }
 0x455   : > { %v3045_v42 = vmul.f32 0.21300554, %v3033_v25  ;;  %v3067_v10 = vrot.slane %v3033_v25, 1  ;;  %v3032_v37 = vsel %vm1085_vm2, %v3018_v44, %v3019_v6  ;;  %v6001_v49 = vpop.f32.mrf.mxu1  ;;  %v2923_v46 = vrot.slane %v2877_v12, 1 }
 0x456   : > { %v3046_v36 = vmul.f32 0.21300554, %v3032_v37  ;;  %v3068_v59 = vrot.slane %v3032_v37, 1  ;;  %v2958_v43 = vadd.f32 %v2948_v45, %v2908_v21  ;;  %v2980_v31 = vsel %vm1085_vm2, %v2970_v56, %v2971_v3 }
 0x457   : > { %v9855_v52 = vadd.f32 %v3045_v42, %v3005_v2  ;;  %v2997_v53 = vmul.f32 0.10936069, %v2980_v31  ;;  %v3020_v51 = vrot.slane %v2980_v31, 1  ;;  %v2909_v41 = vadd.f32 %v2899_v24, %v2859_v48 }
 0x458   : > { %v9857_v22 = vadd.f32 %v3046_v36, %v3006_v23  ;;  %v9861_v61 = vsel %vm1085_vm2, %v3067_v10, %v3068_v59  ;;  %v2875_v11 = vrot.slane %v2847_v15, 1  ;;  %v2928_v48 = vsel %vm1085_vm2, %v2922_v9, %v2923_v46 }
 0x459   : > { %v9864_v20 = vmul.f32 0.26601171, %v9861_v61  ;;  %v3117_v21 = vrot.slane %v9861_v61, 1  ;;  %v3007_v1 = vadd.f32 %v2997_v53, %v2957_v32  ;;  %v3031_v2 = vsel %vm1085_vm2, %v3019_v6, %v3020_v51 }
 0x45a   : > { %v3069_v56 = vrot.slane %v3031_v2, 1  ;;  %v2876_v44 = vsel %vm1085_vm2, %v2874_v57, %v2875_v11  ;;  %v2890_v14 = vsel %vm1085_vm2, %v2875_v11, %v2861_v0  ;;  %v2972_v63 = vrot.slane %v2928_v48, 1 }
 0x45b   : > { %v2900_v12 = vmul.f32 0.007598758, %v2876_v44  ;;  %v2924_v15 = vrot.slane %v2876_v44, 1  ;;  %v2925_v23 = vrot.slane %v2890_v14, 1  ;;  %v9883_v6 = vsel %vm1085_vm2, %v3066_v40, %v3067_v10 }
 0x45c   : > { %v9879_v32 = vsel %vm1085_vm2, %v3068_v59, %v3069_v56  ;;  %v9886_v9 = vmul.f32 0.26601171, %v9838_v54  ;;  %v2979_v25 = vsel %vm1085_vm2, %v2971_v3, %v2972_v63 }
 0x45d   : > { %v9893_v0 = vmul.f32 0.26601171, %v9879_v32  ;;  %v3118_v57 = vrot.slane %v9879_v32, 1  ;;  %v2910_v45 = vadd.f32 %v2900_v12, %v2860_v26  ;;  %v2998_v42 = vmul.f32 0.10936069, %v2979_v25 }
 0x45e   : > { %v3021_v37 = vrot.slane %v2979_v25, 1  ;;  %v2926_v40 = vsel %vm1085_vm2, %v2924_v15, %v2925_v23  ;;  %v2927_v10 = vsel %vm1085_vm2, %v2923_v46, %v2924_v15  ;;  %v2940_v5 = vsel %vm1085_vm2, %v2925_v23, %v2911_v38 }
 0x45f   : > { %v2949_v50 = vmul.f32 0.036000773, %v2927_v10  ;;  %v2950_v24 = vmul.f32 0.036000773, %v2926_v40  ;;  %v2973_v49 = vrot.slane %v2927_v10, 1  ;;  %v3008_v36 = vadd.f32 %v2998_v42, %v2958_v43 }
 0x460   : > { %v3030_v26 = vsel %vm1085_vm2, %v3020_v51, %v3021_v37  ;;  %v2974_v3 = vrot.slane %v2926_v40, 1  ;;  %v2975_v59 = vrot.slane %v2940_v5, 1  ;;  %v9935_v42 = vadd.f32 %v9847_v27, %v9805_v29 }
 0x461   : > { %v3047_v31 = vmul.f32 0.21300554, %v3030_v26  ;;  %v3070_v53 = vrot.slane %v3030_v26, 1  ;;  %v2959_v11 = vadd.f32 %v2949_v50, %v2909_v41  ;;  %v2960_v2 = vadd.f32 %v2950_v24, %v2910_v45 }
 0x462   : > { %v2976_v46 = vsel %vm1085_vm2, %v2974_v3, %v2975_v59  ;;  %v2977_v55 = vsel %vm1085_vm2, %v2973_v49, %v2974_v3  ;;  %v2978_v38 = vsel %vm1085_vm2, %v2972_v63, %v2973_v49  ;;  %v2990_v43 = vsel %vm1085_vm2, %v2975_v59, %v2961_v34 }
 0x463   : > { %v3057_v51 = vadd.f32 %v3047_v31, %v3007_v1  ;;  %v9920_v48 = vsel %vm1085_vm2, %v3069_v56, %v3070_v53  ;;  %v2999_v41 = vmul.f32 0.10936069, %v2977_v55  ;;  %v3000_v44 = vmul.f32 0.10936069, %v2976_v46 }
 0x464   : > { %v3119_v14 = vrot.slane %v9920_v48, 1  ;;  %v3022_v12 = vrot.slane %v2978_v38, 1  ;;  %v3023_v15 = vrot.slane %v2977_v55, 1  ;;  %v3024_v23 = vrot.slane %v2976_v46, 1 }
 0x465   : > { %v3009_v25 = vadd.f32 %v2999_v41, %v2959_v11  ;;  %v3010_v45 = vadd.f32 %v3000_v44, %v2960_v2  ;;  %v3025_v63 = vrot.slane %v2990_v43, 1  ;;  %v3104_v43 = vadd.f32 %v9886_v9, %v9824_v16 }
 0x466   : > { %v3027_v34 = vsel %vm1085_vm2, %v3023_v15, %v3024_v23  ;;  %v3028_v1 = vsel %vm1085_vm2, %v3022_v12, %v3023_v15  ;;  %v3029_v56 = vsel %vm1085_vm2, %v3021_v37, %v3022_v12 }
 0x467   : > { %v3026_v40 = vsel %vm1085_vm2, %v3024_v23, %v3025_v63  ;;  %v3040_v8 = vsel %vm1085_vm2, %v3025_v63, %v3011_v39  ;;  %v3048_v13 = vmul.f32 0.21300554, %v3029_v56  ;;  %v3049_v10 = vmul.f32 0.21300554, %v3027_v34 }
 0x468   : > { %v3050_v5 = vmul.f32 0.21300554, %v3026_v40  ;;  %v3071_v50 = vrot.slane %v3029_v56, 1  ;;  %v3072_v24 = vrot.slane %v3028_v1, 1  ;;  %v3073_v49 = vrot.slane %v3027_v34, 1 }
 0x469   : > { %v3058_v26 = vadd.f32 %v3048_v13, %v3008_v36  ;;  %v3059_v37 = vadd.f32 %v3049_v10, %v3009_v25  ;;  %v3074_v3 = vrot.slane %v3026_v40, 1  ;;  %v3075_v59 = vrot.slane %v3040_v8, 1 }
 0x46a   : > { %v3060_v29 = vadd.f32 %v3050_v5, %v3010_v45  ;;  %v3078_v27 = vsel %vm1085_vm2, %v3072_v24, %v3073_v49  ;;  %v3079_v58 = vsel %vm1085_vm2, %v3071_v50, %v3072_v24  ;;  %v3080_v39 = vsel %vm1085_vm2, %v3070_v53, %v3071_v50 }
 0x46b   : > { %v3076_v31 = vsel %vm1085_vm2, %v3074_v3, %v3075_v59  ;;  %v3077_v11 = vsel %vm1085_vm2, %v3073_v49, %v3074_v3  ;;  %v3090_v36 = vsel %vm1085_vm2, %v3075_v59, %v3061_v30  ;;  %v3097_v2 = vmul.f32 0.26601171, %v3080_v39 }
 0x46c   : > { %v3098_v46 = vmul.f32 0.26601171, %v3079_v58  ;;  %v3099_v55 = vmul.f32 0.26601171, %v3077_v11  ;;  %v3100_v38 = vmul.f32 0.26601171, %v3076_v31  ;;  %v3105_v30 = vadd.f32 %v9864_v20, %v9855_v52 }
 0x46d   : > { %v3120_v48 = vrot.slane %v3080_v39, 1  ;;  %v3121_v53 = vrot.slane %v3079_v58, 1  ;;  %v3122_v41 = vrot.slane %v3078_v27, 1  ;;  %v3123_v44 = vrot.slane %v3077_v11, 1 }
 0x46e   : > { %v3108_v12 = vadd.f32 %v3098_v46, %v3058_v26  ;;  %v3109_v15 = vadd.f32 %v3099_v55, %v3059_v37  ;;  %v3110_v23 = vadd.f32 %v3100_v38, %v3060_v29  ;;  %v3124_v25 = vrot.slane %v3076_v31, 1 }
 0x46f   : > { %v3125_v45 = vrot.slane %v3090_v36, 1  ;;  %v9961_v60 = vsel %vm1085_vm2, %v3122_v41, %v3123_v44  ;;  %v3106_v63 = vadd.f32 %v9893_v0, %v9857_v22  ;;  %v3107_v9 = vadd.f32 %v3097_v2, %v3057_v51 }
 0x470   : > { %v3172_v16 = vrot.slane %v9961_v60, 1  ;;  %v3111_v34 = vrot.slane %v9772_v7, 1  ;;  %v3112_v1 = vrot.slane %v9785_v28, 1  ;;  %v3113_v56 = vrot.slane %v9809_v4, 1 }
 0x471   : > { %v3114_v40 = vrot.slane %v9830_v17, 1  ;;  %v3115_v8 = vrot.slane %v9838_v54, 1  ;;  %v3116_v13 = vrot.slane %v9883_v6, 1  ;;  %v3126_v52 = vsel %vm1085_vm2, %v3124_v25, %v3125_v45 }
 0x472   : > { %v3127_v22 = vsel %vm1085_vm2, %v3123_v44, %v3124_v25  ;;  %v3129_v20 = vsel %vm1085_vm2, %v3121_v53, %v3122_v41  ;;  %v3130_v7 = vsel %vm1085_vm2, %v3120_v48, %v3121_v53  ;;  %v3131_v28 = vsel %vm1085_vm2, %v3119_v14, %v3120_v48 }
 0x473   : > { %v3132_v4 = vsel %vm1085_vm2, %v3118_v57, %v3119_v14  ;;  %v3133_v17 = vsel %vm1085_vm2, %v3117_v21, %v3118_v57  ;;  %v3134_v54 = vsel %vm1085_vm2, %v3116_v13, %v3117_v21  ;;  %v3135_v6 = vsel %vm1085_vm2, %v3115_v8, %v3116_v13 }
 0x474   : > { %v3136_v0 = vsel %vm1085_vm2, %v3114_v40, %v3115_v8  ;;  %v3137_v51 = vsel %vm1085_vm2, %v3113_v56, %v3114_v40  ;;  %v3138_v32 = vsel %vm1085_vm2, %v3112_v1, %v3113_v56  ;;  %v3139_v57 = vsel %vm1085_vm2, %v3111_v34, %v3112_v1 }
 0x475   : > { %v3140_v61 = vsel %vm1085_vm2, %v3125_v45, %v3111_v34  ;;  %v3142_v14 = vmul.f32 0.21300554, %v3138_v32  ;;  %v3143_v21 = vmul.f32 0.21300554, %v3136_v0  ;;  %v3141_v10 = vmul.f32 0.21300554, %v3139_v57 }
 0x476   : > { %v3144_v5 = vmul.f32 0.21300554, %v3135_v6  ;;  %v3145_v50 = vmul.f32 0.21300554, %v3133_v17  ;;  %v3146_v24 = vmul.f32 0.21300554, %v3132_v4 }
 0x477   : > { %v3147_v49 = vmul.f32 0.21300554, %v3130_v7  ;;  %v3148_v26 = vmul.f32 0.21300554, %v3129_v20  ;;  %v3152_v37 = vadd.f32 %v3142_v14, %v9925_v47  ;;  %v3149_v3 = vmul.f32 0.21300554, %v3127_v22 }
 0x478   : > { %v3150_v59 = vmul.f32 0.21300554, %v3126_v52  ;;  %v3151_v29 = vadd.f32 %v3141_v10, %v9890_v62  ;;  %v3153_v27 = vadd.f32 %v3143_v21, %v9935_v42  ;;  %v3154_v58 = vadd.f32 %v3144_v5, %v3104_v43 }
 0x479   : > { %v3155_v39 = vadd.f32 %v3145_v50, %v3105_v30  ;;  %v3156_v31 = vadd.f32 %v3146_v24, %v3106_v63  ;;  %v3157_v11 = vadd.f32 %v3147_v49, %v3107_v9  ;;  %v3158_v36 = vadd.f32 %v3148_v26, %v3108_v12 }
 0x47a   : > { %v3159_v2 = vadd.f32 %v3149_v3, %v3109_v15  ;;  %v3160_v46 = vadd.f32 %v3150_v59, %v3110_v23  ;;  %v3161_v55 = vrot.slane %v3139_v57, 1  ;;  %v3162_v38 = vrot.slane %v3138_v32, 1 }
 0x47b   : > { %v3163_v48 = vrot.slane %v3137_v51, 1  ;;  %v3164_v53 = vrot.slane %v3136_v0, 1  ;;  %v3165_v41 = vrot.slane %v3135_v6, 1  ;;  %v3166_v44 = vrot.slane %v3134_v54, 1 }
 0x47c   : > { %v3167_v47 = vrot.slane %v3133_v17, 1  ;;  %v3168_v25 = vrot.slane %v3132_v4, 1  ;;  %v3169_v45 = vrot.slane %v3131_v28, 1  ;;  %v3170_v60 = vrot.slane %v3130_v7, 1 }
 0x47d   : > { %v3171_v62 = vrot.slane %v3129_v20, 1  ;;  %v3173_v34 = vrot.slane %v3127_v22, 1  ;;  %v3174_v42 = vrot.slane %v3126_v52, 1  ;;  %v3175_v43 = vrot.slane %v3140_v61, 1 }
 0x47e   : > { %v3182_v30 = vsel %vm1085_vm2, %v3168_v25, %v3169_v45  ;;  %v3183_v12 = vsel %vm1085_vm2, %v3167_v47, %v3168_v25  ;;  %v3184_v15 = vsel %vm1085_vm2, %v3166_v44, %v3167_v47  ;;  %v3181_v40 = vsel %vm1085_vm2, %v3169_v45, %v3170_v60 }
 0x47f   : > { %v3177_v23 = vsel %vm1085_vm2, %v3173_v34, %v3174_v42  ;;  %v3178_v63 = vsel %vm1085_vm2, %v3172_v16, %v3173_v34  ;;  %v3179_v9 = vsel %vm1085_vm2, %v3171_v62, %v3172_v16  ;;  %v3180_v1 = vsel %vm1085_vm2, %v3170_v60, %v3171_v62 }
 0x480   : > { %v3176_v56 = vsel %vm1085_vm2, %v3174_v42, %v3175_v43  ;;  %v3185_v8 = vsel %vm1085_vm2, %v3165_v41, %v3166_v44  ;;  %v3186_v13 = vsel %vm1085_vm2, %v3164_v53, %v3165_v41  ;;  %v3187_v52 = vsel %vm1085_vm2, %v3163_v48, %v3164_v53 }
 0x481   : > { %v3188_v16 = vsel %vm1085_vm2, %v3162_v38, %v3163_v48  ;;  %v3189_v22 = vsel %vm1085_vm2, %v3161_v55, %v3162_v38  ;;  %v3190_v20 = vsel %vm1085_vm2, %v3175_v43, %v3161_v55  ;;  %v3193_v4 = vmul.f32 0.10936069, %v3186_v13 }
 0x482   : > { %v3191_v7 = vmul.f32 0.10936069, %v3189_v22  ;;  %v3192_v28 = vmul.f32 0.10936069, %v3188_v16  ;;  %v3194_v17 = vmul.f32 0.10936069, %v3185_v8 }
 0x483   : > { %v3195_v54 = vmul.f32 0.10936069, %v3183_v12  ;;  %v3196_v6 = vmul.f32 0.10936069, %v3182_v30  ;;  %v3197_v0 = vmul.f32 0.10936069, %v3180_v1  ;;  %v3203_v21 = vadd.f32 %v3193_v4, %v3153_v27 }
 0x484   : > { %v3198_v51 = vmul.f32 0.10936069, %v3179_v9  ;;  %v3199_v32 = vmul.f32 0.10936069, %v3177_v23  ;;  %v3201_v57 = vadd.f32 %v3191_v7, %v3151_v29  ;;  %v3200_v61 = vmul.f32 0.10936069, %v3176_v56 }
 0x485   : > { %v3202_v14 = vadd.f32 %v3192_v28, %v3152_v37  ;;  %v3204_v10 = vadd.f32 %v3194_v17, %v3154_v58  ;;  %v3205_v5 = vadd.f32 %v3195_v54, %v3155_v39  ;;  %v3206_v50 = vadd.f32 %v3196_v6, %v3156_v31 }
 0x486   : > { %v3207_v24 = vadd.f32 %v3197_v0, %v3157_v11  ;;  %v3208_v49 = vadd.f32 %v3198_v51, %v3158_v36  ;;  %v3209_v26 = vadd.f32 %v3199_v32, %v3159_v2  ;;  %v3210_v3 = vadd.f32 %v3200_v61, %v3160_v46 }
 0x487   : > { %v3211_v59 = vrot.slane %v3189_v22, 1  ;;  %v3212_v55 = vrot.slane %v3188_v16, 1  ;;  %v3213_v38 = vrot.slane %v3187_v52, 1  ;;  %v3214_v48 = vrot.slane %v3186_v13, 1 }
 0x488   : > { %v3215_v53 = vrot.slane %v3185_v8, 1  ;;  %v3216_v41 = vrot.slane %v3184_v15, 1  ;;  %v3217_v44 = vrot.slane %v3183_v12, 1  ;;  %v3218_v47 = vrot.slane %v3182_v30, 1 }
 0x489   : > { %v3219_v25 = vrot.slane %v3181_v40, 1  ;;  %v3220_v29 = vrot.slane %v3180_v1, 1  ;;  %v3221_v45 = vrot.slane %v3179_v9, 1  ;;  %v3222_v37 = vrot.slane %v3178_v63, 1 }
 0x48a   : > { %v3223_v27 = vrot.slane %v3177_v23, 1  ;;  %v3224_v58 = vrot.slane %v3176_v56, 1  ;;  %v3225_v39 = vrot.slane %v3190_v20, 1  ;;  %v3233_v36 = vsel %vm1085_vm2, %v3217_v44, %v3218_v47 }
 0x48b   : > { %v3231_v31 = vsel %vm1085_vm2, %v3219_v25, %v3220_v29  ;;  %v3232_v11 = vsel %vm1085_vm2, %v3218_v47, %v3219_v25  ;;  %v3229_v60 = vsel %vm1085_vm2, %v3221_v45, %v3222_v37  ;;  %v3230_v62 = vsel %vm1085_vm2, %v3220_v29, %v3221_v45 }
 0x48c   : > { %v3227_v2 = vsel %vm1085_vm2, %v3223_v27, %v3224_v58  ;;  %v3228_v46 = vsel %vm1085_vm2, %v3222_v37, %v3223_v27  ;;  %v3226_v34 = vsel %vm1085_vm2, %v3224_v58, %v3225_v39  ;;  %v3234_v42 = vsel %vm1085_vm2, %v3216_v41, %v3217_v44 }
 0x48d   : > { %v3235_v43 = vsel %vm1085_vm2, %v3215_v53, %v3216_v41  ;;  %v3236_v30 = vsel %vm1085_vm2, %v3214_v48, %v3215_v53  ;;  %v3237_v12 = vsel %vm1085_vm2, %v3213_v38, %v3214_v48  ;;  %v3238_v15 = vsel %vm1085_vm2, %v3212_v55, %v3213_v38 }
 0x48e   : > { %v3239_v23 = vsel %vm1085_vm2, %v3211_v59, %v3212_v55  ;;  %v3240_v63 = vsel %vm1085_vm2, %v3225_v39, %v3211_v59  ;;  %v3242_v1 = vmul.f32 0.036000773, %v3238_v15  ;;  %v3243_v56 = vmul.f32 0.036000773, %v3236_v30 }
 0x48f   : > { %v3241_v9 = vmul.f32 0.036000773, %v3239_v23  ;;  %v3244_v40 = vmul.f32 0.036000773, %v3235_v43  ;;  %v3245_v8 = vmul.f32 0.036000773, %v3233_v36 }
 0x490   : > { %v3246_v13 = vmul.f32 0.036000773, %v3232_v11  ;;  %v3247_v52 = vmul.f32 0.036000773, %v3230_v62  ;;  %v3248_v16 = vmul.f32 0.036000773, %v3229_v60  ;;  %v3252_v28 = vadd.f32 %v3242_v1, %v3202_v14 }
 0x491   : > { %v3249_v22 = vmul.f32 0.036000773, %v3227_v2  ;;  %v3251_v20 = vadd.f32 %v3241_v9, %v3201_v57  ;;  %v3250_v7 = vmul.f32 0.036000773, %v3226_v34  ;;  %v3253_v4 = vadd.f32 %v3243_v56, %v3203_v21 }
 0x492   : > { %v3254_v17 = vadd.f32 %v3244_v40, %v3204_v10  ;;  %v3255_v54 = vadd.f32 %v3245_v8, %v3205_v5  ;;  %v3256_v6 = vadd.f32 %v3246_v13, %v3206_v50  ;;  %v3257_v0 = vadd.f32 %v3247_v52, %v3207_v24 }
 0x493   : > { %v3258_v51 = vadd.f32 %v3248_v16, %v3208_v49  ;;  %v3259_v32 = vadd.f32 %v3249_v22, %v3209_v26  ;;  %v3260_v61 = vadd.f32 %v3250_v7, %v3210_v3  ;;  %v3261_v59 = vrot.slane %v3239_v23, 1 }
 0x494   : > { %v3262_v55 = vrot.slane %v3238_v15, 1  ;;  %v3263_v38 = vrot.slane %v3237_v12, 1  ;;  %v3264_v48 = vrot.slane %v3236_v30, 1  ;;  %v3265_v53 = vrot.slane %v3235_v43, 1 }
 0x495   : > { %v3266_v41 = vrot.slane %v3234_v42, 1  ;;  %v3267_v44 = vrot.slane %v3233_v36, 1  ;;  %v3268_v47 = vrot.slane %v3232_v11, 1  ;;  %v3269_v25 = vrot.slane %v3231_v31, 1 }
 0x496   : > { %v3270_v57 = vrot.slane %v3230_v62, 1  ;;  %v3271_v29 = vrot.slane %v3229_v60, 1  ;;  %v3272_v14 = vrot.slane %v3228_v46, 1  ;;  %v3273_v21 = vrot.slane %v3227_v2, 1 }
 0x497   : > { %v3274_v10 = vrot.slane %v3226_v34, 1  ;;  %v3275_v5 = vrot.slane %v3240_v63, 1  ;;  %v3282_v24 = vsel %vm1085_vm2, %v3268_v47, %v3269_v25  ;;  %v3283_v49 = vsel %vm1085_vm2, %v3267_v44, %v3268_v47 }
 0x498   : > { %v3281_v50 = vsel %vm1085_vm2, %v3269_v25, %v3270_v57  ;;  %v3278_v3 = vsel %vm1085_vm2, %v3272_v14, %v3273_v21  ;;  %v3279_v45 = vsel %vm1085_vm2, %v3271_v29, %v3272_v14  ;;  %v3280_v37 = vsel %vm1085_vm2, %v3270_v57, %v3271_v29 }
 0x499   : > { %v3277_v26 = vsel %vm1085_vm2, %v3273_v21, %v3274_v10  ;;  %v3276_v27 = vsel %vm1085_vm2, %v3274_v10, %v3275_v5  ;;  %v3284_v58 = vsel %vm1085_vm2, %v3266_v41, %v3267_v44  ;;  %v3285_v39 = vsel %vm1085_vm2, %v3265_v53, %v3266_v41 }
 0x49a   : > { %v3286_v31 = vsel %vm1085_vm2, %v3264_v48, %v3265_v53  ;;  %v3287_v11 = vsel %vm1085_vm2, %v3263_v38, %v3264_v48  ;;  %v3288_v36 = vsel %vm1085_vm2, %v3262_v55, %v3263_v38  ;;  %v3289_v2 = vsel %vm1085_vm2, %v3261_v59, %v3262_v55 }
 0x49b   : > { %v3290_v46 = vsel %vm1085_vm2, %v3275_v5, %v3261_v59  ;;  %v3291_v60 = vmul.f32 0.007598758, %v3289_v2  ;;  %v3292_v62 = vmul.f32 0.007598758, %v3288_v36  ;;  %v3293_v34 = vmul.f32 0.007598758, %v3286_v31 }
 0x49c   : > { %v3294_v42 = vmul.f32 0.007598758, %v3285_v39  ;;  %v3295_v43 = vmul.f32 0.007598758, %v3283_v49  ;;  %v3296_v30 = vmul.f32 0.007598758, %v3282_v24 }
 0x49d   : > { %v3297_v12 = vmul.f32 0.007598758, %v3280_v37  ;;  %v3298_v15 = vmul.f32 0.007598758, %v3279_v45  ;;  %v3299_v23 = vmul.f32 0.007598758, %v3277_v26  ;;  %v3301_v63 = vadd.f32 %v3291_v60, %v3251_v20 }
 0x49e   : > { %v3300_v9 = vmul.f32 0.007598758, %v3276_v27  ;;  %v3302_v1 = vadd.f32 %v3292_v62, %v3252_v28  ;;  %v3303_v56 = vadd.f32 %v3293_v34, %v3253_v4  ;;  %v3304_v40 = vadd.f32 %v3294_v42, %v3254_v17 }
 0x49f   : > { %v3305_v8 = vadd.f32 %v3295_v43, %v3255_v54  ;;  %v3306_v13 = vadd.f32 %v3296_v30, %v3256_v6  ;;  %v3307_v52 = vadd.f32 %v3297_v12, %v3257_v0  ;;  %v3308_v16 = vadd.f32 %v3298_v15, %v3258_v51 }
 0x4a0   : > { %v3309_v22 = vadd.f32 %v3299_v23, %v3259_v32  ;;  %v3310_v7 = vadd.f32 %v3300_v9, %v3260_v61  ;;  %v3311_v59 = vrot.slane %v3289_v2, 1  ;;  %v3312_v55 = vrot.slane %v3288_v36, 1 }
 0x4a1   : > { %v3313_v38 = vrot.slane %v3287_v11, 1  ;;  %v3314_v48 = vrot.slane %v3286_v31, 1  ;;  %v3315_v53 = vrot.slane %v3285_v39, 1  ;;  %v3316_v41 = vrot.slane %v3284_v58, 1 }
 0x4a2   : > { %v3317_v44 = vrot.slane %v3283_v49, 1  ;;  %v3318_v47 = vrot.slane %v3282_v24, 1  ;;  %v3319_v25 = vrot.slane %v3281_v50, 1  ;;  %v3320_v20 = vrot.slane %v3280_v37, 1 }
 0x4a3   : > { %v3321_v57 = vrot.slane %v3279_v45, 1  ;;  %v3322_v28 = vrot.slane %v3278_v3, 1  ;;  %v3323_v4 = vrot.slane %v3277_v26, 1  ;;  %v3324_v17 = vrot.slane %v3276_v27, 1 }
 0x4a4   : > { %v3325_v54 = vrot.slane %v3290_v46, 1  ;;  %v3330_v6 = vsel %vm1085_vm2, %v3318_v47, %v3319_v25  ;;  %v3331_v0 = vsel %vm1085_vm2, %v3317_v44, %v3318_v47  ;;  %v3332_v51 = vsel %vm1085_vm2, %v3315_v53, %v3316_v41 }
 0x4a5   : > { %v3327_v32 = vsel %vm1085_vm2, %v3323_v4, %v3324_v17  ;;  %v3328_v61 = vsel %vm1085_vm2, %v3321_v57, %v3322_v28  ;;  %v3329_v29 = vsel %vm1085_vm2, %v3320_v20, %v3321_v57  ;;  %v3333_v14 = vsel %vm1085_vm2, %v3314_v48, %v3315_v53 }
 0x4a6   : > { %v3326_v21 = vsel %vm1085_vm2, %v3324_v17, %v3325_v54  ;;  %v3334_v10 = vsel %vm1085_vm2, %v3312_v55, %v3313_v38  ;;  %v3335_v5 = vsel %vm1085_vm2, %v3311_v59, %v3312_v55  ;;  %v3338_v50 = vmul.f32 0.0010283801, %v3333_v14 }
 0x4a7   : > { %v3336_v24 = vmul.f32 0.0010283801, %v3335_v5  ;;  %v3337_v49 = vmul.f32 0.0010283801, %v3334_v10  ;;  %v3339_v26 = vmul.f32 0.0010283801, %v3332_v51 }
 0x4a8   : > { %v3340_v3 = vmul.f32 0.0010283801, %v3331_v0  ;;  %v3341_v45 = vmul.f32 0.0010283801, %v3330_v6  ;;  %v3342_v37 = vmul.f32 0.0010283801, %v3329_v29  ;;  %v3348_v27 = vadd.f32 %v3338_v50, %v3303_v56 }
 0x4a9   : > { %v3343_v58 = vmul.f32 0.0010283801, %v3328_v61  ;;  %v3344_v39 = vmul.f32 0.0010283801, %v3327_v32  ;;  %v3345_v31 = vmul.f32 0.0010283801, %v3326_v21  ;;  %v3346_v11 = vadd.f32 %v3336_v24, %v3301_v63 }
 0x4aa   : > { %v3347_v36 = vadd.f32 %v3337_v49, %v3302_v1  ;;  %v3349_v2 = vadd.f32 %v3339_v26, %v3304_v40  ;;  %v3350_v46 = vadd.f32 %v3340_v3, %v3305_v8  ;;  %v3351_v60 = vadd.f32 %v3341_v45, %v3306_v13 }
 0x4ab   : > { %v3352_v62 = vadd.f32 %v3342_v37, %v3307_v52  ;;  %v3353_v34 = vadd.f32 %v3343_v58, %v3308_v16  ;;  %v3354_v42 = vadd.f32 %v3344_v39, %v3309_v22  ;;  %v3355_v43 = vadd.f32 %v3345_v31, %v3310_v7 }
 0x4ac   : > { %v3356_v30 = vmul.f32 %v3346_v11, %v3346_v11  ;;  %v3357_v12 = vmul.f32 %v3347_v36, %v3347_v36  ;;  %v3358_v15 = vmul.f32 %v3348_v27, %v3348_v27  ;;  %v3359_v23 = vmul.f32 %v3349_v2, %v3349_v2 }
 0x4ad   : > { %v3360_v9 = vmul.f32 %v3348_v27, %v3346_v11  ;;  %v3361_v59 = vmul.f32 %v3349_v2, %v3347_v36  ;;  %v10123_v27 = vld [vmem:[#allocation16] sm:$0xff]  ;;  %v3743_v11 = vmul.f32 %v9693_v18, %v9693_v18  ;;  %v3744_v36 = vmul.f32 %v9691_v33, %v9691_v33 }
 0x4ae   : > { %v3368_v55 = vsub.f32 %v3350_v46, %v3356_v30  ;;  %v3369_v56 = vsub.f32 %v3351_v60, %v3357_v12  ;;  %v3370_v38 = vsub.f32 %v3352_v62, %v3358_v15  ;;  %v3371_v48 = vsub.f32 %v3353_v34, %v3359_v23 }
 0x4af   : > { %v3362_v53 = vsub.f32 %v3354_v42, %v3360_v9  ;;  %v3363_v63 = vsub.f32 %v3355_v43, %v3361_v59  ;;  %v3376_v1 = vmul.f32 2.0, %v3360_v9  ;;  %v3377_v40 = vmul.f32 2.0, %v3361_v59 }
 0x4b0   : > { %v3372_v8 = vadd.f32 %v3370_v38, %v3368_v55  ;;  %v3373_v13 = vadd.f32 %v3371_v48, %v3369_v56  ;;  %v3382_v52 = vadd.f32 %v3358_v15, %v3356_v30  ;;  %v3383_v16 = vadd.f32 %v3359_v23, %v3357_v12  ;;  %v4537_v48 = vld [vmem:[#allocation18] sm:$0x3f] }
 0x4b1   : > { %v3364_v22 = vmul.f32 2.0, %v3362_v53  ;;  %v3365_v7 = vmul.f32 2.0, %v3363_v63  ;;  %v3378_v41 = vadd.f32 6.5025, %v3376_v1  ;;  %v3379_v44 = vadd.f32 6.5025, %v3377_v40 }
 0x4b2   : > { %v3374_v47 = vadd.f32 58.5225, %v3372_v8  ;;  %v3375_v25 = vadd.f32 58.5225, %v3373_v13  ;;  %v3384_v20 = vadd.f32 6.5025, %v3382_v52 }
 0x4b3   : > { %v3366_v57 = vadd.f32 58.5225, %v3364_v22  ;;  %v3367_v28 = vadd.f32 58.5225, %v3365_v7  ;;  %v3385_v4 = vadd.f32 6.5025, %v3383_v16 }
 0x4b4   : > { %v3386_v17 = vmul.f32 %v3384_v20, %v3374_v47  ;;  %6341 = vrcp.f32 %v3374_v47 }
 0x4b5   : > { %v3380_v54 = vmul.f32 %v3378_v41, %v3366_v57  ;;  %v3381_v6 = vmul.f32 %v3379_v44, %v3367_v28  ;;  %v3387_v0 = vmul.f32 %v3385_v4, %v3375_v25  ;;  %6343 = vrcp.f32 %v3375_v25 }
 0x4b6   : > { %6345 = vrcp.f32 %v3386_v17 }
 0x4b7   : > { %6347 = vrcp.f32 %v3387_v0 }
 0x4c1   : > { %v6342_v51 = vpop.eup %6341 }
 0x4c2   : > { %v6344_v32 = vpop.eup %6343  ;;  %v3393_v61 = vmul.f32 %v6342_v51, %v3366_v57 }
 0x4c3   : > { %v6346_v29 = vpop.eup %6345  ;;  %v3395_v14 = vmul.f32 %v6344_v32, %v3367_v28 }
 0x4c4   : > { %v6348_v21 = vpop.eup %6347  ;;  %v3389_v10 = vmul.f32 %v6346_v29, %v3380_v54  ;;  %v3410_v50 = vsel %vm3396_vm8, %v3393_v61, 0.0 }
 0x4c5   : > { %v3391_v5 = vmul.f32 %v6348_v21, %v3381_v6  ;;  %v3411_v24 = vsel %vm3398_vm9, %v3395_v14, 0.0 }
 0x4c6   : > { %v3412_v49 = vadd.f32 %v3411_v24, %v3410_v50  ;;  %v3397_v26 = vsel %vm3396_vm8, %v3389_v10, 0.0 }
 0x4c7   : > { %v3399_v3 = vsel %vm3398_vm9, %v3391_v5, 0.0 }
 0x4c8   : > { %v3400_v45 = vadd.f32 %v3399_v3, %v3397_v26 }
 0x4ca   : > { %3401 = vadd.xlane.f32.xlu1 %v3400_v45 }
 0x4ce   : > { %3413 = vadd.xlane.f32.xlu1 %v3412_v49 }
 0x4e5   : > { %v6075_v37 = vpop.f32.mrf.mxu1 }
 0x4e6   : > { %6077 = vmatpush3.msra.mxu1 %v6075_v37 }
 0x4e7   : > { %v4309_v58 = vpop.f32.mrf.mxu1  ;;  %6078 = vmatprep.subr.mxu1 %v11025_v19 }
 0x4e8   : > { %6079 = vmatpush3.msra.mxu1 %v4309_v58 }
 0x4e9   : > { %6081 = vmatmul.mubr.msk.f32.vlgmr.msra.gmra.mxu1 %vm4318_vm10, %v10123_v27  ;;  %6090 = vmatprep.subr.mxu1 %v11025_v19 }
 0x4ea   : > { %6094 = vmatprep.mubr.msk.f32.mxu1 %vm6734_vm1, %v11025_v19 }
 0x4f8   : > { %v6049_v39 = vpop.f32.mrf.mxu0 }
 0x4f9   : > { %v3746_v46 = vmul.f32 %v6049_v39, %v6049_v39  ;;  %v3748_v62 = vmul.f32 %v6049_v39, %v9691_v33 }
 0x4fa   : > { %v3729_v31 = vpop.f32.mrf.mxu0 }
 0x4fb   : > { %6057 = vmatprep.mubr.msk.f32.mxu0 %vm3749_vm7, %v3729_v31  ;;  %v3745_v2 = vmul.f32 %v3729_v31, %v3729_v31  ;;  %v3747_v60 = vmul.f32 %v3729_v31, %v9693_v18 }
 0x4fc   : > { %6058 = vmatmul.mubr.msk.f32.gmra.mxu0 %vm3749_vm7, %v6049_v39  ;;  %v6056_v1 = vpop.f32.mrf.mxu0 }
 0x4fd   : > { %6060 = vmatprep.mubr.msk.f32.mxu0 %vm3749_vm7, %v3743_v11  ;;  %v3905_v52 = vrot.slane %v6056_v1, 1 }
 0x4fe   : > { %v3850_v40 = vpop.f32.mrf.mxu0 }
 0x4ff   : > { %v3904_v8 = vrot.slane %v3850_v40, 1  ;;  %v3899_v21 = vmul.f32 0.0010283801, %v3850_v40 }
 0x500   : > { %6061 = vmatmul.mubr.msk.f32.gmra.mxu0 %vm3749_vm7, %v3744_v36 }
 0x501   : > { %6063 = vmatprep.mubr.msk.f32.mxu0 %vm3749_vm7, %v3745_v2  ;;  %v10158_v22 = vsel %vm1085_vm2, %v3904_v8, %v3905_v52 }
 0x502   : > { %v3934_v20 = vrot.slane %v10158_v22, 1  ;;  %v3924_v6 = vmul.f32 0.007598758, %v10158_v22 }
 0x504   : > { %6064 = vmatmul.mubr.msk.f32.gmra.mxu0 %vm3749_vm7, %v3746_v46  ;;  %v3929_v26 = vadd.f32 %v3924_v6, %v3899_v21 }
 0x505   : > { %6066 = vmatprep.mubr.msk.f32.mxu0 %vm3749_vm7, %v3747_v60 }
 0x508   : > { %6067 = vmatmul.mubr.msk.f32.gmra.mxu0 %vm3749_vm7, %v3748_v62 }
 0x509   : > { %6087 = vmatprep.mubr.msk.f32.mxu0 %vm3749_vm7, %v3729_v31 }
 0x50c   : > { %6088 = vmatmul.mubr.msk.f32.vlgmr.msra.gmra.mxu0 %vm3749_vm7, %v6049_v39 }
 0x50d   : > { %6099 = vmatprep.mubr.msk.f32.mxu0 %vm6734_vm1, %v11025_v19  ;;  %6098 = vmatpush3.msk.msra.mxu0 %vm4559_vm11, %v4537_v48 }
 0x553   : > { %v3402_v34 = vpop.xlane.xlu1 %3401 }
 0x554   : > { %v3403_v42 = vrot.slane %v3402_v34, 4 }
 0x556   : > { %v3404_v43 = vadd.f32 %v3403_v42, %v3402_v34 }
 0x557   : > { %v3414_v30 = vpop.xlane.xlu1 %3413 }
 0x558   : > { %v3405_v18 = vrot.slane %v3404_v43, 2  ;;  %v3415_v12 = vrot.slane %v3414_v30, 4 }
 0x55a   : > { %v3416_v15 = vadd.f32 %v3415_v12, %v3414_v30  ;;  %v3406_v23 = vadd.f32 %v3405_v18, %v3404_v43 }
 0x55c   : > { %v3417_v9 = vrot.slane %v3416_v15, 2  ;;  %v3407_v59 = vrot.slane %v3406_v23, 1 }
 0x55e   : > { %v3408_v33 = vadd.f32 %v3407_v59, %v3406_v23  ;;  %v3418_v55 = vadd.f32 %v3417_v9, %v3416_v15 }
 0x560   : > { %6166 = vpush %v3408_v33  ;;  %v3419_v56 = vrot.slane %v3418_v55, 1 }
 0x562   : > { %v3420_v38 = vadd.f32 %v3419_v56, %v3418_v55 }
 0x564   : > { %6168 = vpush %v3420_v38 }
 0x591   : > { %s6167_s23 = spop %6166 }
 0x595   : > { %s6169_s4 = spop %6168 }
 0x5a9   : > { %v10150_v53 = vpop.f32.mrf.mxu1 }
 0x5aa   : > { %6100 = vmatmul.mubr.msk.f32.vlgmr.msra.gmra.mxu0 %vm4543_vm12, %v10150_v53 }
 0x5ab   : > { %v6082_v63 = vpop.f32.mrf.mxu1  ;;  %6102 = vmatprep.mubr.msk.f32.mxu0 %vm6734_vm1, %v11025_v19 }
 0x5bc   : > { %v6059_v13 = vpop.f32.mrf.mxu0 }
 0x5bd   : > { %v3907_v7 = vrot.slane %v6059_v13, 1  ;;  %v10217_v13 = vld [vmem:[%s10592_s12] sm:$0x3f] }
 0x5be   : > { %v3860_v16 = vpop.f32.mrf.mxu0 }
 0x5bf   : > { %v3906_v41 = vrot.slane %v3860_v16, 1  ;;  %v3900_v2 = vmul.f32 0.0010283801, %v3860_v16 }
 0x5c0   : > { %v6062_v44 = vpop.f32.mrf.mxu0 }
 0x5c1   : > { %v3920_v47 = vsel %vm1085_vm2, %v3906_v41, %v3907_v7  ;;  %v3921_v25 = vsel %vm1085_vm2, %v3905_v52, %v3906_v41  ;;  %v3909_v17 = vrot.slane %v6062_v44, 1 }
 0x5c2   : > { %v3935_v57 = vrot.slane %v3921_v25, 1  ;;  %v3936_v28 = vrot.slane %v3920_v47, 1  ;;  %v3870_v4 = vpop.f32.mrf.mxu0  ;;  %v3925_v3 = vmul.f32 0.007598758, %v3920_v47 }
 0x5c3   : > { %v3908_v54 = vrot.slane %v3870_v4, 1  ;;  %v3901_v55 = vmul.f32 0.0010283801, %v3870_v4 }
 0x5c4   : > { %v3951_v0 = vsel %vm1085_vm2, %v3935_v57, %v3936_v28  ;;  %v10172_v51 = vsel %vm1085_vm2, %v3934_v20, %v3935_v57  ;;  %v10174_v32 = vpop.f32.mrf.mxu0  ;;  %v3930_v33 = vadd.f32 %v3925_v3, %v3900_v2 }
 0x5c5   : > { %v3964_v61 = vrot.slane %v10172_v51, 1  ;;  %v3965_v29 = vrot.slane %v3951_v0, 1  ;;  %v3918_v14 = vsel %vm1085_vm2, %v3908_v54, %v3909_v17  ;;  %v3919_v10 = vsel %vm1085_vm2, %v3907_v7, %v3908_v54 }
 0x5c6   : > { %v3938_v5 = vrot.slane %v3918_v14, 1  ;;  %v3880_v50 = vpop.f32.mrf.mxu0  ;;  %v3954_v24 = vmul.f32 0.036000773, %v10172_v51  ;;  %v3937_v49 = vrot.slane %v3919_v10, 1  ;;  %v3911_v45 = vrot.slane %v10174_v32, 1 }
 0x5c7   : > { %v3910_v37 = vrot.slane %v3880_v50, 1  ;;  %v10187_v39 = vsel %vm1085_vm2, %v3964_v61, %v3965_v29  ;;  %v3926_v46 = vmul.f32 0.007598758, %v3918_v14  ;;  %v3902_v56 = vmul.f32 0.0010283801, %v3880_v50 }
 0x5c8   : > { %v6068_v58 = vpop.f32.mrf.mxu0  ;;  %v3949_v31 = vsel %vm1085_vm2, %v3937_v49, %v3938_v5  ;;  %v3950_v11 = vsel %vm1085_vm2, %v3936_v28, %v3937_v49  ;;  %v3959_v42 = vadd.f32 %v3954_v24, %v3929_v26  ;;  %v3984_v12 = vmul.f32 0.10936069, %v10187_v39 }
 0x5c9   : > { %v3913_v36 = vrot.slane %v6068_v58, 1  ;;  %v3966_v60 = vrot.slane %v3950_v11, 1  ;;  %v3967_v62 = vrot.slane %v3949_v31, 1  ;;  %v10195_v43 = vsel %vm1085_vm2, %v3910_v37, %v3911_v45 }
 0x5ca   : > { %v3890_v34 = vpop.f32.mrf.mxu0  ;;  %v3917_v30 = vsel %vm1085_vm2, %v3909_v17, %v3910_v37  ;;  %v3955_v15 = vmul.f32 0.036000773, %v3950_v11  ;;  %v3994_v48 = vrot.slane %v10187_v39, 1  ;;  %v3940_v63 = vrot.slane %v10195_v43, 1 }
 0x5cb   : > { %v10201_v18 = vsel %vm1085_vm2, %v3913_v36, %v3904_v8  ;;  %v10206_v23 = vsel %vm1085_vm2, %v3966_v60, %v3967_v62  ;;  %v3981_v9 = vsel %vm1085_vm2, %v3965_v29, %v3966_v60  ;;  %v3939_v38 = vrot.slane %v3917_v30, 1 }
 0x5cc   : > { %v6089_v59 = vpop.f32.mrf.mxu0  ;;  %v3943_v1 = vrot.slane %v10201_v18, 1  ;;  %v3912_v40 = vrot.slane %v3890_v34, 1  ;;  %v3931_v52 = vadd.f32 %v3926_v46, %v3901_v55  ;;  %v3995_v16 = vrot.slane %v3981_v9, 1 }
 0x5cd   : > { %6091 = vmatpush3.msra.mxu1 %v6089_v59  ;;  %v3996_v7 = vrot.slane %v10206_v23, 1  ;;  %v3948_v41 = vsel %vm1085_vm2, %v3938_v5, %v3939_v38  ;;  %v10222_v44 = vadd.f32 %v3984_v12, %v3959_v42  ;;  %v3960_v47 = vadd.f32 %v3955_v15, %v3930_v33 }
 0x5ce   : > { %v4458_v8 = vpop.f32.mrf.mxu0  ;;  %6092 = vmatprep.subr.mxu1 %v11025_v19  ;;  %v3927_v25 = vmul.f32 0.007598758, %v10195_v43  ;;  %v3947_v57 = vsel %vm1085_vm2, %v3939_v38, %v3940_v63  ;;  %v3956_v28 = vmul.f32 0.036000773, %v3948_v41  ;;  %v3968_v4 = vrot.slane %v3948_v41, 1 }
 0x5cf   : > { %6093 = vmatpush3.msra.mxu1 %v4458_v8  ;;  %v3969_v17 = vrot.slane %v3947_v57, 1  ;;  %v3953_v54 = vsel %vm1085_vm2, %v3943_v1, %v3934_v20  ;;  %v3985_v6 = vmul.f32 0.10936069, %v10206_v23  ;;  %v3915_v32 = vsel %vm1085_vm2, %v3911_v45, %v3912_v40 }
 0x5d0   : > { %6095 = vmatmul.mubr.msk.f32.vlgmr.msra.gmra.mxu1 %vm4318_vm10, %v10123_v27  ;;  %6114 = vmatprep.subr.mxu1 %v11025_v19  ;;  %v3973_v0 = vrot.slane %v3953_v54, 1  ;;  %v3914_v27 = vsel %vm1085_vm2, %v3912_v40, %v3913_v36  ;;  %v10246_v22 = vsel %vm1085_vm2, %v3995_v16, %v3996_v7  ;;  %v3979_v29 = vsel %vm1085_vm2, %v3967_v62, %v3968_v4 }
 0x5d1   : > { %6115 = vmatpush3.msk.msra.mxu1 %vm4559_vm11, %v10217_v13  ;;  %6116 = vmatprep.mubr.msk.f32.mxu1 %vm6734_vm1, %v11025_v19  ;;  %v3978_v20 = vsel %vm1085_vm2, %v3968_v4, %v3969_v17  ;;  %v3928_v14 = vmul.f32 0.007598758, %v3914_v27  ;;  %v10254_v21 = vsel %vm1085_vm2, %v3994_v48, %v3995_v16  ;;  %v3961_v10 = vadd.f32 %v3956_v28, %v3931_v52 }
 0x5d2   : > { %6119 = vmatprep.subr.mxu1 %v11025_v19  ;;  %v3986_v5 = vmul.f32 0.10936069, %v3978_v20  ;;  %v3983_v50 = vsel %vm1085_vm2, %v3973_v0, %v3964_v61  ;;  %v3932_v24 = vadd.f32 %v3927_v25, %v3902_v56  ;;  %v3903_v49 = vmul.f32 0.0010283801, %v3890_v34 }
 0x5d3   : > { %v3941_v26 = vrot.slane %v3915_v32, 1  ;;  %v3942_v3 = vrot.slane %v3914_v27, 1  ;;  %v10264_v45 = vadd.f32 %v3985_v6, %v3960_v47  ;;  %v3997_v37 = vrot.slane %v3979_v29, 1 }
 0x5d4   : > { %6117 = vmatmul.mubr.msk.f32.vlgmr.msra.gmra.mxu1 %vm4543_vm12, %v10150_v53  ;;  %v3998_v58 = vrot.slane %v3978_v20, 1  ;;  %v4003_v39 = vrot.slane %v3983_v50, 1  ;;  %v10267_v51 = vmul.f32 0.21300554, %v10254_v21  ;;  %v4024_v61 = vrot.slane %v10254_v21, 1 }
 0x5d5   : > { %6121 = vmatprep.mubr.msk.f32.mxu1 %vm6734_vm1, %v11025_v19  ;;  %v4025_v31 = vrot.slane %v10246_v22, 1  ;;  %v3933_v11 = vadd.f32 %v3928_v14, %v3903_v49  ;;  %v3991_v36 = vadd.f32 %v3986_v5, %v3961_v10  ;;  %v3944_v2 = vsel %vm1085_vm2, %v3942_v3, %v3943_v1 }
 0x5d6   : > { %v3945_v46 = vsel %vm1085_vm2, %v3941_v26, %v3942_v3  ;;  %v3946_v60 = vsel %vm1085_vm2, %v3940_v63, %v3941_v26  ;;  %v3958_v34 = vmul.f32 0.036000773, %v3944_v2  ;;  %v4009_v30 = vsel %vm1085_vm2, %v3997_v37, %v3998_v58 }
 0x5d7   : > { %v3957_v62 = vmul.f32 0.036000773, %v3946_v60  ;;  %v3970_v42 = vrot.slane %v3946_v60, 1  ;;  %v3971_v43 = vrot.slane %v3945_v46, 1  ;;  %v4010_v18 = vsel %vm1085_vm2, %v3996_v7, %v3997_v37 }
 0x5d8   : > { %v4013_v12 = vsel %vm1085_vm2, %v4003_v39, %v3994_v48  ;;  %v3972_v15 = vrot.slane %v3944_v2, 1  ;;  %v3963_v9 = vadd.f32 %v3958_v34, %v3933_v11  ;;  %v10297_v41 = vsel %vm1085_vm2, %v4024_v61, %v4025_v31 }
 0x5d9   : > { %v3962_v23 = vadd.f32 %v3957_v62, %v3932_v24  ;;  %v3976_v59 = vsel %vm1085_vm2, %v3970_v42, %v3971_v43  ;;  %v3977_v33 = vsel %vm1085_vm2, %v3969_v17, %v3970_v42  ;;  %v4033_v7 = vrot.slane %v4013_v12, 1 }
 0x5da   : > { %v3974_v55 = vsel %vm1085_vm2, %v3972_v15, %v3973_v0  ;;  %v3975_v56 = vsel %vm1085_vm2, %v3971_v43, %v3972_v15  ;;  %v3987_v38 = vmul.f32 0.10936069, %v3976_v59  ;;  %v3999_v63 = vrot.slane %v3977_v33, 1 }
 0x5db   : > { %v3988_v1 = vmul.f32 0.10936069, %v3974_v55  ;;  %v4000_v40 = vrot.slane %v3976_v59, 1  ;;  %v4001_v48 = vrot.slane %v3975_v56, 1  ;;  %v4002_v8 = vrot.slane %v3974_v55, 1 }
 0x5dc   : > { %v3992_v52 = vadd.f32 %v3987_v38, %v3962_v23  ;;  %v4008_v16 = vsel %vm1085_vm2, %v3998_v58, %v3999_v63  ;;  %v4015_v29 = vmul.f32 0.21300554, %v4010_v18  ;;  %v4026_v14 = vrot.slane %v4010_v18, 1 }
 0x5dd   : > { %v3993_v47 = vadd.f32 %v3988_v1, %v3963_v9  ;;  %v4004_v25 = vsel %vm1085_vm2, %v4002_v8, %v4003_v39  ;;  %v4005_v57 = vsel %vm1085_vm2, %v4001_v48, %v4002_v8  ;;  %v4006_v28 = vsel %vm1085_vm2, %v4000_v40, %v4001_v48 }
 0x5de   : > { %v4007_v4 = vsel %vm1085_vm2, %v3999_v63, %v4000_v40  ;;  %v4016_v17 = vmul.f32 0.21300554, %v4008_v16  ;;  %v4017_v54 = vmul.f32 0.21300554, %v4006_v28  ;;  %v4018_v6 = vmul.f32 0.21300554, %v4004_v25 }
 0x5df   : > { %v4028_v0 = vrot.slane %v4008_v16, 1  ;;  %v4029_v27 = vrot.slane %v4007_v4, 1  ;;  %v4030_v32 = vrot.slane %v4006_v28, 1  ;;  %v4031_v20 = vrot.slane %v4005_v57, 1 }
 0x5e0   : > { %v4027_v21 = vrot.slane %v4009_v30, 1  ;;  %v4032_v10 = vrot.slane %v4004_v25, 1  ;;  %v4043_v49 = vsel %vm1085_vm2, %v4033_v7, %v4024_v61  ;;  %v4021_v26 = vadd.f32 %v4016_v17, %v3991_v36 }
 0x5e1   : > { %v4036_v5 = vsel %vm1085_vm2, %v4030_v32, %v4031_v20  ;;  %v4037_v50 = vsel %vm1085_vm2, %v4029_v27, %v4030_v32  ;;  %v4038_v24 = vsel %vm1085_vm2, %v4028_v0, %v4029_v27  ;;  %v4022_v3 = vadd.f32 %v4017_v54, %v3992_v52 }
 0x5e2   : > { %v4034_v37 = vsel %vm1085_vm2, %v4032_v10, %v4033_v7  ;;  %v4035_v58 = vsel %vm1085_vm2, %v4031_v20, %v4032_v10  ;;  %v4023_v39 = vadd.f32 %v4018_v6, %v3993_v47  ;;  %v4047_v11 = vmul.f32 0.26601171, %v4036_v5 }
 0x5e3   : > { %v4059_v2 = vrot.slane %v4037_v50, 1  ;;  %v4060_v46 = vrot.slane %v4036_v5, 1  ;;  %v4046_v60 = vmul.f32 0.26601171, %v4038_v24  ;;  %v4048_v62 = vmul.f32 0.26601171, %v4034_v37 }
 0x5e4   : > { %v4061_v34 = vrot.slane %v4035_v58, 1  ;;  %v4062_v42 = vrot.slane %v4034_v37, 1  ;;  %v4063_v43 = vrot.slane %v4043_v49, 1  ;;  %v4019_v61 = vadd.f32 %v10267_v51, %v10222_v44 }
 0x5e5   : > { %v4020_v36 = vadd.f32 %v4015_v29, %v10264_v45  ;;  %v4040_v30 = vsel %vm1085_vm2, %v4026_v14, %v4027_v21  ;;  %v4058_v18 = vrot.slane %v4038_v24, 1  ;;  %v4067_v12 = vsel %vm1085_vm2, %v4059_v2, %v4060_v46 }
 0x5e6   : > { %v4039_v15 = vsel %vm1085_vm2, %v4027_v21, %v4028_v0  ;;  %v4041_v23 = vsel %vm1085_vm2, %v4025_v31, %v4026_v14  ;;  %v4052_v9 = vadd.f32 %v4047_v11, %v4022_v3  ;;  %v4064_v44 = vsel %vm1085_vm2, %v4062_v42, %v4063_v43 }
 0x5e7   : > { %v4066_v45 = vsel %vm1085_vm2, %v4060_v46, %v4061_v34  ;;  %v4044_v51 = vmul.f32 0.26601171, %v10297_v41  ;;  %v4053_v59 = vadd.f32 %v4048_v62, %v4023_v39  ;;  %v4065_v33 = vsel %vm1085_vm2, %v4061_v34, %v4062_v42 }
 0x5e8   : > { %v4045_v55 = vmul.f32 0.26601171, %v4040_v30  ;;  %v4051_v56 = vadd.f32 %v4046_v60, %v4021_v26  ;;  %v4089_v38 = vrot.slane %v4067_v12, 1  ;;  %v4054_v22 = vrot.slane %v10297_v41, 1 }
 0x5e9   : > { %v4055_v63 = vrot.slane %v4041_v23, 1  ;;  %v4056_v31 = vrot.slane %v4040_v30, 1  ;;  %v4077_v1 = vmul.f32 0.21300554, %v4066_v45  ;;  %v4078_v40 = vmul.f32 0.21300554, %v4064_v44 }
 0x5ea   : > { %v4057_v48 = vrot.slane %v4039_v15, 1  ;;  %v4068_v8 = vsel %vm1085_vm2, %v4058_v18, %v4059_v2  ;;  %v4090_v52 = vrot.slane %v4066_v45, 1  ;;  %v4091_v16 = vrot.slane %v4065_v33, 1 }
 0x5eb   : > { %v4071_v7 = vsel %vm1085_vm2, %v4055_v63, %v4056_v31  ;;  %v4072_v47 = vsel %vm1085_vm2, %v4054_v22, %v4055_v63  ;;  %v4092_v25 = vrot.slane %v4064_v44, 1  ;;  %v4073_v28 = vsel %vm1085_vm2, %v4063_v43, %v4054_v22 }
 0x5ec   : > { %v4069_v41 = vsel %vm1085_vm2, %v4057_v48, %v4058_v18  ;;  %v4070_v57 = vsel %vm1085_vm2, %v4056_v31, %v4057_v48  ;;  %v4076_v4 = vmul.f32 0.21300554, %v4068_v8  ;;  %v4084_v17 = vrot.slane %v4072_v47, 1 }
 0x5ed   : > { %v4085_v54 = vrot.slane %v4071_v7, 1  ;;  %v4086_v6 = vrot.slane %v4070_v57, 1  ;;  %v4049_v0 = vadd.f32 %v4044_v51, %v4019_v61  ;;  %v4074_v27 = vmul.f32 0.21300554, %v4072_v47 }
 0x5ee   : > { %v4087_v32 = vrot.slane %v4069_v41, 1  ;;  %v4088_v20 = vrot.slane %v4068_v8, 1  ;;  %v4082_v29 = vadd.f32 %v4077_v1, %v4052_v9  ;;  %v4083_v14 = vadd.f32 %v4078_v40, %v4053_v59 }
 0x5ef   : > { %v4050_v21 = vadd.f32 %v4045_v55, %v4020_v36  ;;  %v4075_v10 = vmul.f32 0.21300554, %v4070_v57  ;;  %v4095_v5 = vsel %vm1085_vm2, %v4091_v16, %v4092_v25  ;;  %v4093_v50 = vrot.slane %v4073_v28, 1 }
 0x5f0   : > { %v4098_v24 = vsel %vm1085_vm2, %v4088_v20, %v4089_v38  ;;  %v4100_v49 = vsel %vm1085_vm2, %v4086_v6, %v4087_v32  ;;  %v4081_v26 = vadd.f32 %v4076_v4, %v4051_v56  ;;  %v4096_v3 = vsel %vm1085_vm2, %v4090_v52, %v4091_v16 }
 0x5f1   : > { %v4101_v37 = vsel %vm1085_vm2, %v4085_v54, %v4086_v6  ;;  %v4102_v58 = vsel %vm1085_vm2, %v4084_v17, %v4085_v54  ;;  %v4079_v39 = vadd.f32 %v4074_v27, %v4049_v0  ;;  %v4094_v11 = vsel %vm1085_vm2, %v4092_v25, %v4093_v50 }
 0x5f2   : > { %v4097_v2 = vsel %vm1085_vm2, %v4089_v38, %v4090_v52  ;;  %v4099_v46 = vsel %vm1085_vm2, %v4087_v32, %v4088_v20  ;;  %v4080_v60 = vadd.f32 %v4075_v10, %v4050_v21  ;;  %v4104_v62 = vmul.f32 0.10936069, %v4102_v58 }
 0x5f3   : > { %v4105_v34 = vmul.f32 0.10936069, %v4100_v49  ;;  %v4106_v42 = vmul.f32 0.10936069, %v4098_v24  ;;  %v4103_v43 = vsel %vm1085_vm2, %v4093_v50, %v4084_v17  ;;  %v4107_v61 = vmul.f32 0.10936069, %v4096_v3 }
 0x5f4   : > { %v4115_v36 = vrot.slane %v4101_v37, 1  ;;  %v4116_v30 = vrot.slane %v4100_v49, 1  ;;  %v4108_v18 = vmul.f32 0.10936069, %v4094_v11  ;;  %v4117_v12 = vrot.slane %v4099_v46, 1 }
 0x5f5   : > { %v4118_v15 = vrot.slane %v4098_v24, 1  ;;  %v4119_v23 = vrot.slane %v4097_v2, 1  ;;  %v4121_v9 = vrot.slane %v4095_v5, 1  ;;  %v4114_v44 = vrot.slane %v4102_v58, 1 }
 0x5f6   : > { %v4120_v45 = vrot.slane %v4096_v3, 1  ;;  %v4122_v51 = vrot.slane %v4094_v11, 1  ;;  %v4109_v59 = vadd.f32 %v4104_v62, %v4079_v39  ;;  %v4110_v33 = vadd.f32 %v4105_v34, %v4080_v60 }
 0x5f7   : > { %v4111_v55 = vadd.f32 %v4106_v42, %v4081_v26  ;;  %v4123_v56 = vrot.slane %v4103_v43, 1  ;;  %v4130_v38 = vsel %vm1085_vm2, %v4116_v30, %v4117_v12  ;;  %v4131_v22 = vsel %vm1085_vm2, %v4115_v36, %v4116_v30 }
 0x5f8   : > { %v4132_v63 = vsel %vm1085_vm2, %v4114_v44, %v4115_v36  ;;  %v4112_v31 = vadd.f32 %v4107_v61, %v4082_v29  ;;  %v10378_v1 = vadd.f32 %v4108_v18, %v4083_v14  ;;  %v4128_v40 = vsel %vm1085_vm2, %v4118_v15, %v4119_v23 }
 0x5f9   : > { %v4129_v48 = vsel %vm1085_vm2, %v4117_v12, %v4118_v15  ;;  %v4124_v8 = vsel %vm1085_vm2, %v4122_v51, %v4123_v56  ;;  %v4125_v52 = vsel %vm1085_vm2, %v4121_v9, %v4122_v51  ;;  %v4126_v16 = vsel %vm1085_vm2, %v4120_v45, %v4121_v9 }
 0x5fa   : > { %v4127_v7 = vsel %vm1085_vm2, %v4119_v23, %v4120_v45  ;;  %v4134_v47 = vmul.f32 0.036000773, %v4132_v63  ;;  %v4135_v25 = vmul.f32 0.036000773, %v4130_v38  ;;  %v4145_v41 = vrot.slane %v4131_v22, 1 }
 0x5fb   : > { %v4146_v57 = vrot.slane %v4130_v38, 1  ;;  %v4136_v28 = vmul.f32 0.036000773, %v4128_v40  ;;  %v4144_v4 = vrot.slane %v4132_v63, 1  ;;  %v4147_v17 = vrot.slane %v4129_v48, 1 }
 0x5fc   : > { %v4148_v54 = vrot.slane %v4128_v40, 1  ;;  %v4133_v6 = vsel %vm1085_vm2, %v4123_v56, %v4114_v44  ;;  %v4149_v0 = vrot.slane %v4127_v7, 1  ;;  %v4150_v27 = vrot.slane %v4126_v16, 1 }
 0x5fd   : > { %v4151_v32 = vrot.slane %v4125_v52, 1  ;;  %v4137_v20 = vmul.f32 0.036000773, %v4126_v16  ;;  %v4138_v29 = vmul.f32 0.036000773, %v4124_v8  ;;  %v4152_v14 = vrot.slane %v4124_v8, 1 }
 0x5fe   : > { %v4160_v21 = vsel %vm1085_vm2, %v4146_v57, %v4147_v17  ;;  %v4139_v10 = vadd.f32 %v4134_v47, %v4109_v59  ;;  %v4140_v5 = vadd.f32 %v4135_v25, %v4110_v33  ;;  %v4158_v50 = vsel %vm1085_vm2, %v4148_v54, %v4149_v0 }
 0x5ff   : > { %v4161_v24 = vsel %vm1085_vm2, %v4145_v41, %v4146_v57  ;;  %v4141_v49 = vadd.f32 %v4136_v28, %v4111_v55  ;;  %v4153_v26 = vrot.slane %v4133_v6, 1  ;;  %v4156_v3 = vsel %vm1085_vm2, %v4150_v27, %v4151_v32 }
 0x600   : > { %v4162_v37 = vsel %vm1085_vm2, %v4144_v4, %v4145_v41  ;;  %v4157_v58 = vsel %vm1085_vm2, %v4149_v0, %v4150_v27  ;;  %v4159_v39 = vsel %vm1085_vm2, %v4147_v17, %v4148_v54  ;;  %v4165_v2 = vmul.f32 0.007598758, %v4160_v21 }
 0x601   : > { %v4164_v11 = vmul.f32 0.007598758, %v4162_v37  ;;  %v4155_v46 = vsel %vm1085_vm2, %v4151_v32, %v4152_v14  ;;  %v4166_v60 = vmul.f32 0.007598758, %v4158_v50  ;;  %v4174_v62 = vrot.slane %v4162_v37, 1 }
 0x602   : > { %v4175_v34 = vrot.slane %v4161_v24, 1  ;;  %v4142_v42 = vadd.f32 %v4137_v20, %v4112_v31  ;;  %v4154_v43 = vsel %vm1085_vm2, %v4152_v14, %v4153_v26  ;;  %v4167_v61 = vmul.f32 0.007598758, %v4156_v3 }
 0x603   : > { %v4176_v36 = vrot.slane %v4160_v21, 1  ;;  %v4163_v30 = vsel %vm1085_vm2, %v4153_v26, %v4144_v4  ;;  %v4177_v18 = vrot.slane %v4159_v39, 1  ;;  %v4178_v12 = vrot.slane %v4158_v50, 1 }
 0x604   : > { %v4179_v15 = vrot.slane %v4157_v58, 1  ;;  %v4169_v23 = vadd.f32 %v4164_v11, %v4139_v10  ;;  %v4170_v9 = vadd.f32 %v4165_v2, %v4140_v5  ;;  %v4180_v44 = vrot.slane %v4156_v3, 1 }
 0x605   : > { %v4181_v45 = vrot.slane %v4155_v46, 1  ;;  %v4171_v51 = vadd.f32 %v4166_v60, %v4141_v49  ;;  %v4187_v33 = vsel %vm1085_vm2, %v4176_v36, %v4177_v18  ;;  %v4188_v55 = vsel %vm1085_vm2, %v4174_v62, %v4175_v34 }
 0x606   : > { %v4186_v59 = vsel %vm1085_vm2, %v4178_v12, %v4179_v15  ;;  %v4172_v56 = vadd.f32 %v4167_v61, %v4142_v42  ;;  %v4189_v22 = vmul.f32 0.0010283801, %v4188_v55  ;;  %v4190_v63 = vmul.f32 0.0010283801, %v4187_v33 }
 0x607   : > { %v4185_v38 = vsel %vm1085_vm2, %v4180_v44, %v4181_v45  ;;  %v4182_v31 = vrot.slane %v4154_v43, 1  ;;  %v4183_v40 = vrot.slane %v4163_v30, 1  ;;  %v4191_v48 = vmul.f32 0.0010283801, %v4186_v59 }
 0x608   : > { %v4192_v8 = vmul.f32 0.0010283801, %v4185_v38  ;;  %v4194_v52 = vadd.f32 %v4189_v22, %v4169_v23  ;;  %v4195_v16 = vadd.f32 %v4190_v63, %v4170_v9  ;;  %v4143_v7 = vadd.f32 %v4138_v29, %v10378_v1 }
 0x609   : > { %v4168_v47 = vmul.f32 0.007598758, %v4154_v43  ;;  %v4196_v25 = vadd.f32 %v4191_v48, %v4171_v51  ;;  %v4184_v4 = vsel %vm1085_vm2, %v4182_v31, %v4183_v40  ;;  %v4540_v42 = vmul.f32 %v10150_v53, %v10150_v53  ;;  %v4539_v43 = vld [vmem:[%s10593_s13] sm:$0xff] }
 0x60a   : > { %v4197_v41 = vadd.f32 %v4192_v8, %v4172_v56  ;;  %v4199_v57 = vmul.f32 %v4194_v52, %v4194_v52  ;;  %v4200_v28 = vmul.f32 %v4195_v16, %v4195_v16  ;;  %v4193_v27 = vmul.f32 0.0010283801, %v4184_v4 }
 0x60b   : > { %v4173_v0 = vadd.f32 %v4168_v47, %v4143_v7  ;;  %v4201_v20 = vmul.f32 %v4195_v16, %v4194_v52 }
 0x60c   : > { %v4205_v17 = vsub.f32 %v4196_v25, %v4199_v57  ;;  %v4206_v54 = vsub.f32 %v4197_v41, %v4200_v28  ;;  %v4212_v6 = vadd.f32 %v4200_v28, %v4199_v57 }
 0x60d   : > { %v4198_v10 = vadd.f32 %v4193_v27, %v4173_v0  ;;  %v4209_v50 = vmul.f32 2.0, %v4201_v20 }
 0x60e   : > { %v4207_v32 = vadd.f32 %v4206_v54, %v4205_v17  ;;  %v4213_v21 = vadd.f32 6.5025, %v4212_v6  ;;  %v5086_v54 = vld [vmem:[%s11030_s18] sm:$0x7] }
 0x60f   : > { %v4202_v1 = vsub.f32 %v4198_v10, %v4201_v20  ;;  %v4210_v49 = vadd.f32 6.5025, %v4209_v50 }
 0x610   : > { %v4208_v14 = vadd.f32 58.5225, %v4207_v32 }
 0x611   : > { %v4203_v29 = vmul.f32 2.0, %v4202_v1 }
 0x612   : > { %v4214_v5 = vmul.f32 %v4213_v21, %v4208_v14  ;;  %6349 = vrcp.f32 %v4208_v14 }
 0x613   : > { %v4204_v24 = vadd.f32 58.5225, %v4203_v29 }
 0x614   : > { %6351 = vrcp.f32 %v4214_v5 }
 0x615   : > { %v4211_v37 = vmul.f32 %v4210_v49, %v4204_v24 }
 0x61f   : > { %v6350_v26 = vpop.eup %6349 }
 0x620   : > { %v4218_v3 = vmul.f32 %v6350_v26, %v4204_v24 }
 0x621   : > { %v6352_v58 = vpop.eup %6351 }
 0x622   : > { %v4230_v39 = vsel %vm4219_vm13, %v4218_v3, 0.0  ;;  %v4216_v11 = vmul.f32 %v6352_v58, %v4211_v37 }
 0x623   : > { %4231 = vadd.xlane.f32.xlu1 %v4230_v39 }
 0x624   : > { %v4220_v2 = vsel %vm4219_vm13, %v4216_v11, 0.0 }
 0x625   : > { %4221 = vadd.xlane.f32.xlu0 %v4220_v2 }
 0x66a   : > { %v10425_v46 = vpop.f32.mrf.mxu0 }
 0x66b   : > { %v4658_v40 = vrot.slane %v10425_v46, 1  ;;  %v4653_v14 = vmul.f32 0.00058734376, %v10425_v46 }
 0x66c   : > { %v6101_v60 = vpop.f32.mrf.mxu0 }
 0x690   : > { %v4533_v62 = vpop.f32.mrf.mxu1 }
 0x691   : > { %6103 = vmatmul.mubr.msk.f32.gmra.mxu0 %vm4543_vm12, %v4533_v62  ;;  %v4541_v30 = vmul.f32 %v4533_v62, %v4533_v62  ;;  %v4542_v18 = vmul.f32 %v4533_v62, %v10150_v53 }
 0x692   : > { %v6096_v34 = vpop.f32.mrf.mxu1  ;;  %6105 = vmatprep.mubr.msk.f32.mxu0 %vm6734_vm1, %v11025_v19 }
 0x694   : > { %v4868_v61 = vpop.f32.mrf.mxu1 }
 0x695   : > { %6106 = vmatmul.mubr.msk.f32.gmra.mxu0 %vm4543_vm12, %v4540_v42  ;;  %6120 = vmatpush3.msra.mxu1 %v4868_v61 }
 0x696   : > { %6122 = vmatmul.mubr.msk.f32.vlgmr.msra.gmra.mxu1 %vm4872_vm14, %v4539_v43  ;;  %6108 = vmatprep.mubr.msk.f32.mxu0 %vm6734_vm1, %v11025_v19  ;;  %v6118_v36 = vpop.f32.mrf.mxu1 }
 0x697   : > { %6124 = vmatprep.subr.mxu1 %v11025_v19  ;;  %6126 = vmatprep.mubr.msk.f32.mxu1 %vm6734_vm1, %v11025_v19 }
 0x698   : > { %6125 = vmatpush3.msk.msra.mxu1 %vm4559_vm11, %v10217_v13 }
 0x699   : > { %6109 = vmatmul.mubr.msk.f32.gmra.mxu0 %vm4543_vm12, %v4541_v30  ;;  %6129 = vmatprep.subr.mxu1 %v11025_v19 }
 0x69a   : > { %6127 = vmatmul.mubr.msk.f32.vlgmr.msra.gmra.mxu1 %vm4543_vm12, %v4533_v62  ;;  %6111 = vmatprep.mubr.msk.f32.mxu0 %vm6734_vm1, %v11025_v19 }
 0x69b   : > { %6131 = vmatprep.mubr.msk.f32.mxu1 %vm6734_vm1, %v11025_v19 }
 0x69d   : > { %6112 = vmatmul.mubr.msk.f32.gmra.mxu0 %vm4543_vm12, %v4542_v18  ;;  %vm5331_vm12 = vcmask 73728  }
 0x6ac   : > { %v4232_v12 = vpop.xlane.xlu1 %4231 }
 0x6ad   : > { %v4233_v15 = vrot.slane %v4232_v12, 4 }
 0x6ae   : > { %v4222_v23 = vpop.xlane.xlu0 %4221 }
 0x6af   : > { %v4234_v13 = vadd.f32 %v4233_v15, %v4232_v12  ;;  %v4223_v9 = vrot.slane %v4222_v23, 4 }
 0x6b1   : > { %v4235_v44 = vrot.slane %v4234_v13, 2  ;;  %v4224_v45 = vadd.f32 %v4223_v9, %v4222_v23 }
 0x6b3   : > { %v4225_v51 = vrot.slane %v4224_v45, 2  ;;  %v4236_v59 = vadd.f32 %v4235_v44, %v4234_v13 }
 0x6b5   : > { %v4226_v33 = vadd.f32 %v4225_v51, %v4224_v45  ;;  %v4237_v55 = vrot.slane %v4236_v59, 1 }
 0x6b7   : > { %v4227_v56 = vrot.slane %v4226_v33, 1  ;;  %v4238_v22 = vadd.f32 %v4237_v55, %v4236_v59 }
 0x6b9   : > { %v4228_v38 = vadd.f32 %v4227_v56, %v4226_v33 }
 0x6bb   : > { %6170 = vpush %v4228_v38 }
 0x6bc   : > { %6172 = vpush %v4238_v22 }
 0x6ec   : > { %s6171_s26 = spop %6170 }
 0x6ed   : > { %s6173_s22 = spop %6172 }
 0x751   : > { %v4634_v53 = vpop.f32.mrf.mxu0 }
 0x752   : > { %v4659_v63 = vrot.slane %v4634_v53, 1  ;;  %v4654_v50 = vmul.f32 0.00058734376, %v4634_v53 }
 0x753   : > { %v6104_v31 = vpop.f32.mrf.mxu0 }
 0x754   : > { %v4666_v8 = vsel %vm1085_vm2, %v4658_v40, %v4659_v63 }
 0x755   : > { %v4639_v48 = vpop.f32.mrf.mxu0  ;;  %v4678_v41 = vrot.slane %v4666_v8, 1  ;;  %v4668_v27 = vmul.f32 0.024592044, %v4666_v8 }
 0x756   : > { %v4660_v52 = vrot.slane %v4639_v48, 1  ;;  %v10456_v16 = vpop.f32.mrf.mxu1  ;;  %v4655_v24 = vmul.f32 0.00058734376, %v4639_v48 }
 0x757   : > { %v6107_v7 = vpop.f32.mrf.mxu0  ;;  %v4673_v3 = vadd.f32 %v4668_v27, %v4653_v14 }
 0x758   : > { %v4665_v47 = vsel %vm1085_vm2, %v4659_v63, %v4660_v52  ;;  %v6123_v25 = vpop.f32.mrf.mxu1 }
 0x759   : > { %v4679_v57 = vrot.slane %v4665_v47, 1  ;;  %v4644_v28 = vpop.f32.mrf.mxu0  ;;  %v4669_v5 = vmul.f32 0.024592044, %v4665_v47 }
 0x75a   : > { %v4661_v4 = vrot.slane %v4644_v28, 1  ;;  %v5012_v17 = vpop.f32.mrf.mxu1  ;;  %v4656_v42 = vmul.f32 0.00058734376, %v4644_v28 }
 0x75b   : > { %v4686_v6 = vsel %vm1085_vm2, %v4678_v41, %v4679_v57  ;;  %v6110_v0 = vpop.f32.mrf.mxu0  ;;  %6130 = vmatpush3.msra.mxu1 %v5012_v17  ;;  %v4674_v62 = vadd.f32 %v4669_v5, %v4654_v50 }
 0x75c   : > { %v4664_v32 = vsel %vm1085_vm2, %v4660_v52, %v4661_v4  ;;  %v6128_v20 = vpop.f32.mrf.mxu1  ;;  %6132 = vmatmul.mubr.msk.f32.vlgmr.msra.gmra.mxu1 %vm4872_vm14, %v4539_v43  ;;  %6134 = vmatprep.subr.mxu1 %v11025_v19  ;;  %v4688_v1 = vmul.f32 0.23117238, %v4686_v6  ;;  %v4698_v11 = vrot.slane %v4686_v6, 1 }
 0x75d   : > { %v4680_v21 = vrot.slane %v4664_v32, 1  ;;  %v4649_v10 = vpop.f32.mrf.mxu0  ;;  %6135 = vmatpush3.msk.msra.mxu1 %vm5106_vm15, %v5086_v54  ;;  %6136 = vmatprep.mubr.msk.f32.mxu1 %vm6734_vm1, %v11025_v19  ;;  %v4670_v2 = vmul.f32 0.024592044, %v4664_v32 }
 0x75e   : > { %v4662_v29 = vrot.slane %v4649_v10, 1  ;;  %v4693_v34 = vadd.f32 %v4688_v1, %v4673_v3  ;;  %v4657_v44 = vmul.f32 0.00058734376, %v4649_v10 }
 0x75f   : > { %v4685_v49 = vsel %vm1085_vm2, %v4679_v57, %v4680_v21  ;;  %v6113_v26 = vpop.f32.mrf.mxu0  ;;  %v4675_v9 = vadd.f32 %v4670_v2, %v4655_v24 }
 0x760   : > { %v4699_v37 = vrot.slane %v4685_v49, 1  ;;  %v4663_v58 = vsel %vm1085_vm2, %v4661_v4, %v4662_v29  ;;  %v4667_v39 = vsel %vm1085_vm2, %v4662_v29, %v4658_v40  ;;  %6137 = vmatmul.mubr.msk.f32.vlgmr.msra.gmra.mxu1 %vm5090_vm0, %v10456_v16  ;;  %v4689_v61 = vmul.f32 0.23117238, %v4685_v49 }
 0x761   : > { %v4681_v46 = vrot.slane %v4663_v58, 1  ;;  %v4682_v60 = vrot.slane %v4667_v39, 1  ;;  %6139 = vmatprep.mubr.msk.f32.mxu1 %vm6734_vm1, %v11025_v19  ;;  %v4671_v43 = vmul.f32 0.024592044, %v4663_v58  ;;  %v4672_v12 = vmul.f32 0.024592044, %v4667_v39 }
 0x762   : > { %v4706_v18 = vsel %vm1085_vm2, %v4698_v11, %v4699_v37  ;;  %v4694_v31 = vadd.f32 %v4689_v61, %v4674_v62 }
 0x763   : > { %v4683_v36 = vsel %vm1085_vm2, %v4681_v46, %v4682_v60  ;;  %v4684_v30 = vsel %vm1085_vm2, %v4680_v21, %v4681_v46  ;;  %v4687_v15 = vsel %vm1085_vm2, %v4682_v60, %v4678_v41  ;;  %v4676_v59 = vadd.f32 %v4671_v43, %v4656_v42 }
 0x764   : > { %v4690_v23 = vmul.f32 0.23117238, %v4684_v30  ;;  %v4700_v13 = vrot.slane %v4684_v30, 1  ;;  %v4701_v45 = vrot.slane %v4683_v36, 1  ;;  %v4702_v51 = vrot.slane %v4687_v15, 1 }
 0x765   : > { %v4691_v33 = vmul.f32 0.23117238, %v4683_v36  ;;  %v4708_v56 = vmul.f32 0.4878838, %v4706_v18  ;;  %v4677_v40 = vadd.f32 %v4672_v12, %v4657_v44  ;;  %v4692_v48 = vmul.f32 0.23117238, %v4687_v15 }
 0x766   : > { %v4705_v55 = vsel %vm1085_vm2, %v4699_v37, %v4700_v13  ;;  %v4695_v38 = vadd.f32 %v4690_v23, %v4675_v9  ;;  %v4703_v22 = vsel %vm1085_vm2, %v4701_v45, %v4702_v51  ;;  %v4704_v53 = vsel %vm1085_vm2, %v4700_v13, %v4701_v45 }
 0x767   : > { %v4707_v63 = vsel %vm1085_vm2, %v4702_v51, %v4698_v11  ;;  %v4710_v8 = vmul.f32 0.4878838, %v4704_v53  ;;  %v4720_v52 = vrot.slane %v4704_v53, 1  ;;  %v4721_v7 = vrot.slane %v4703_v22, 1 }
 0x768   : > { %v4722_v47 = vrot.slane %v4707_v63, 1  ;;  %v4709_v25 = vmul.f32 0.4878838, %v4705_v55  ;;  %v4696_v41 = vadd.f32 %v4691_v33, %v4676_v59  ;;  %v4711_v57 = vmul.f32 0.4878838, %v4703_v22 }
 0x769   : > { %v4718_v28 = vrot.slane %v4706_v18, 1  ;;  %v4719_v4 = vrot.slane %v4705_v55, 1  ;;  %v4715_v17 = vadd.f32 %v4710_v8, %v4695_v38  ;;  %v4713_v6 = vadd.f32 %v4708_v56, %v4693_v34 }
 0x76a   : > { %v4723_v54 = vsel %vm1085_vm2, %v4721_v7, %v4722_v47  ;;  %v4724_v0 = vsel %vm1085_vm2, %v4720_v52, %v4721_v7  ;;  %v4714_v32 = vadd.f32 %v4709_v25, %v4694_v31  ;;  %v4716_v29 = vadd.f32 %v4711_v57, %v4696_v41 }
 0x76b   : > { %v4741_v27 = vrot.slane %v4723_v54, 1  ;;  %v4725_v20 = vsel %vm1085_vm2, %v4719_v4, %v4720_v52  ;;  %v4726_v14 = vsel %vm1085_vm2, %v4718_v28, %v4719_v4  ;;  %v4727_v21 = vsel %vm1085_vm2, %v4722_v47, %v4718_v28 }
 0x76c   : > { %v4728_v10 = vmul.f32 0.23117238, %v4726_v14  ;;  %v4729_v5 = vmul.f32 0.23117238, %v4725_v20  ;;  %v4730_v1 = vmul.f32 0.23117238, %v4724_v0  ;;  %v4697_v26 = vadd.f32 %v4692_v48, %v4677_v40 }
 0x76d   : > { %v4731_v50 = vmul.f32 0.23117238, %v4723_v54  ;;  %v4738_v24 = vrot.slane %v4726_v14, 1  ;;  %v4739_v49 = vrot.slane %v4725_v20, 1  ;;  %v4740_v37 = vrot.slane %v4724_v0, 1 }
 0x76e   : > { %v4733_v3 = vadd.f32 %v4728_v10, %v4713_v6  ;;  %v4712_v58 = vmul.f32 0.4878838, %v4707_v63  ;;  %v4734_v39 = vadd.f32 %v4729_v5, %v4714_v32  ;;  %v4742_v11 = vrot.slane %v4727_v21, 1 }
 0x76f   : > { %v4746_v2 = vsel %vm1085_vm2, %v4738_v24, %v4739_v49  ;;  %v4735_v46 = vadd.f32 %v4730_v1, %v4715_v17  ;;  %v4744_v60 = vsel %vm1085_vm2, %v4740_v37, %v4741_v27  ;;  %v4745_v62 = vsel %vm1085_vm2, %v4739_v49, %v4740_v37 }
 0x770   : > { %v4748_v34 = vmul.f32 0.024592044, %v4746_v2  ;;  %v4736_v42 = vadd.f32 %v4731_v50, %v4716_v29  ;;  %v4743_v43 = vsel %vm1085_vm2, %v4741_v27, %v4742_v11  ;;  %v4749_v61 = vmul.f32 0.024592044, %v4745_v62 }
 0x771   : > { %v4750_v36 = vmul.f32 0.024592044, %v4744_v60  ;;  %v4751_v30 = vmul.f32 0.024592044, %v4743_v43  ;;  %v4717_v13 = vadd.f32 %v4712_v58, %v4697_v26  ;;  %v4732_v9 = vmul.f32 0.23117238, %v4727_v21 }
 0x772   : > { %v4753_v18 = vadd.f32 %v4748_v34, %v4733_v3  ;;  %v4754_v12 = vadd.f32 %v4749_v61, %v4734_v39  ;;  %v4747_v51 = vsel %vm1085_vm2, %v4742_v11, %v4738_v24  ;;  %v5087_v29 = vmul.f32 %v10456_v16, %v10456_v16 }
 0x773   : > { %v4755_v15 = vadd.f32 %v4750_v36, %v4735_v46  ;;  %v4756_v44 = vadd.f32 %v4751_v30, %v4736_v42  ;;  %v4737_v56 = vadd.f32 %v4732_v9, %v4717_v13  ;;  %v4752_v38 = vmul.f32 0.024592044, %v4747_v51 }
 0x774   : > { %v4758_v23 = vmul.f32 %v4753_v18, %v4753_v18  ;;  %v4759_v45 = vmul.f32 %v4754_v12, %v4754_v12  ;;  %v4760_v53 = vmul.f32 %v4754_v12, %v4753_v18 }
 0x775   : > { %v4757_v40 = vadd.f32 %v4752_v38, %v4737_v56 }
 0x776   : > { %v4764_v59 = vsub.f32 %v4755_v15, %v4758_v23  ;;  %v4765_v33 = vsub.f32 %v4756_v44, %v4759_v45  ;;  %v4771_v55 = vadd.f32 %v4759_v45, %v4758_v23  ;;  %v4768_v7 = vmul.f32 2.0, %v4760_v53 }
 0x777   : > { %v4761_v8 = vsub.f32 %v4757_v40, %v4760_v53 }
 0x778   : > { %v4766_v22 = vadd.f32 %v4765_v33, %v4764_v59  ;;  %v4772_v31 = vadd.f32 6.5025, %v4771_v55  ;;  %v4769_v25 = vadd.f32 6.5025, %v4768_v7 }
 0x779   : > { %v4762_v52 = vmul.f32 2.0, %v4761_v8 }
 0x77a   : > { %v4767_v63 = vadd.f32 58.5225, %v4766_v22 }
 0x77b   : > { %v4763_v47 = vadd.f32 58.5225, %v4762_v52 }
 0x77c   : > { %v4773_v48 = vmul.f32 %v4772_v31, %v4767_v63  ;;  %6353 = vrcp.f32 %v4767_v63 }
 0x77d   : > { %v4770_v28 = vmul.f32 %v4769_v25, %v4763_v47 }
 0x77e   : > { %6355 = vrcp.f32 %v4773_v48 }
 0x789   : > { %v6354_v41 = vpop.eup %6353 }
 0x78a   : > { %v4777_v57 = vmul.f32 %v6354_v41, %v4763_v47 }
 0x78b   : > { %v6356_v4 = vpop.eup %6355 }
 0x78c   : > { %v4789_v17 = vsel %vm4778_vm3, %v4777_v57, 0.0  ;;  %v4775_v54 = vmul.f32 %v6356_v4, %v4770_v28 }
 0x78d   : > { %4790 = vadd.xlane.f32.xlu1 %v4789_v17 }
 0x78e   : > { %v4779_v6 = vsel %vm4778_vm3, %v4775_v54, 0.0 }
 0x78f   : > { %4780 = vadd.xlane.f32.xlu0 %v4779_v6 }
 0x816   : > { %v4791_v0 = vpop.xlane.xlu1 %4790 }
 0x817   : > { %v4792_v27 = vrot.slane %v4791_v0, 4 }
 0x818   : > { %v4781_v32 = vpop.xlane.xlu0 %4780 }
 0x819   : > { %v4793_v20 = vadd.f32 %v4792_v27, %v4791_v0  ;;  %v4782_v14 = vrot.slane %v4781_v32, 4 }
 0x81b   : > { %v4794_v10 = vrot.slane %v4793_v20, 2  ;;  %v4783_v5 = vadd.f32 %v4782_v14, %v4781_v32 }
 0x81c   : > { %v5082_v21 = vpop.f32.mrf.mxu1 }
 0x81d   : > { %6140 = vmatmul.mubr.msk.f32.gmra.mxu1 %vm5090_vm0, %v5082_v21  ;;  %v4795_v50 = vadd.f32 %v4794_v10, %v4793_v20  ;;  %v4784_v24 = vrot.slane %v4783_v5, 2  ;;  %v5088_v58 = vmul.f32 %v5082_v21, %v5082_v21  ;;  %v5089_v46 = vmul.f32 %v5082_v21, %v10456_v16 }
 0x81e   : > { %v6133_v1 = vpop.f32.mrf.mxu1  ;;  %6142 = vmatprep.mubr.msk.f32.mxu1 %vm6734_vm1, %v11025_v19 }
 0x81f   : > { %v4785_v26 = vadd.f32 %v4784_v24, %v4783_v5  ;;  %v4796_v3 = vrot.slane %v4795_v50, 1 }
 0x820   : > { %v5176_v49 = vpop.f32.mrf.mxu1 }
 0x821   : > { %6143 = vmatmul.mubr.msk.f32.gmra.mxu1 %vm5090_vm0, %v5087_v29  ;;  %v4786_v39 = vrot.slane %v4785_v26, 1  ;;  %v4797_v2 = vadd.f32 %v4796_v3, %v4795_v50  ;;  %v5205_v42 = vrot.slane %v5176_v49, 1  ;;  %v5200_v59 = vmul.f32 0.04578945, %v5176_v49 }
 0x822   : > { %v6138_v37 = vpop.f32.mrf.mxu1  ;;  %6145 = vmatprep.mubr.msk.f32.mxu1 %vm6734_vm1, %v11025_v19 }
 0x823   : > { %v4787_v11 = vadd.f32 %v4786_v39, %v4785_v26 }
 0x825   : > { %6146 = vmatmul.mubr.msk.f32.gmra.mxu1 %vm5090_vm0, %v5088_v58  ;;  %6174 = vpush %v4787_v11 }
 0x826   : > { %6148 = vmatprep.mubr.msk.f32.mxu1 %vm6734_vm1, %v11025_v19  ;;  %6176 = vpush %v4797_v2 }
 0x829   : > { %6149 = vmatmul.mubr.msk.f32.gmra.mxu1 %vm5090_vm0, %v5089_v46 }
 0x856   : > { %s6175_s28 = spop %6174 }
 0x857   : > { %s6177_s0 = spop %6176 }
 0x8dd   : > { %v5181_v60 = vpop.f32.mrf.mxu1 }
 0x8de   : > { %v5206_v62 = vrot.slane %v5181_v60, 1  ;;  %v5201_v33 = vmul.f32 0.04578945, %v5181_v60 }
 0x8df   : > { %v6141_v34 = vpop.f32.mrf.mxu1 }
 0x8e0   : > { %v5213_v61 = vsel %vm1085_vm2, %v5205_v42, %v5206_v62 }
 0x8e1   : > { %v5186_v43 = vpop.f32.mrf.mxu1  ;;  %v5225_v12 = vrot.slane %v5213_v61, 1  ;;  %v5215_v13 = vmul.f32 0.9084211, %v5213_v61 }
 0x8e2   : > { %v5207_v36 = vrot.slane %v5186_v43, 1  ;;  %v5202_v28 = vmul.f32 0.04578945, %v5186_v43 }
 0x8e3   : > { %v6144_v30 = vpop.f32.mrf.mxu1  ;;  %v5220_v53 = vadd.f32 %v5215_v13, %v5200_v59  ;;  %v5274_v13 = vstv %s6163_s17 }
 0x8e4   : > { %v5212_v18 = vsel %vm1085_vm2, %v5206_v62, %v5207_v36 }
 0x8e5   : > { %v5226_v15 = vrot.slane %v5212_v18, 1  ;;  %v5191_v16 = vpop.f32.mrf.mxu1  ;;  %v5216_v9 = vmul.f32 0.9084211, %v5212_v18 }
 0x8e6   : > { %v5208_v23 = vrot.slane %v5191_v16, 1  ;;  %v5203_v47 = vmul.f32 0.04578945, %v5191_v16 }
 0x8e7   : > { %v5233_v44 = vsel %vm1085_vm2, %v5225_v12, %v5226_v15  ;;  %v6147_v45 = vpop.f32.mrf.mxu1  ;;  %v5221_v63 = vadd.f32 %v5216_v9, %v5201_v33 }
 0x8e8   : > { %v5211_v51 = vsel %vm1085_vm2, %v5207_v36, %v5208_v23  ;;  %v5235_v22 = vmul.f32 0.04578945, %v5233_v44  ;;  %v5280_v44 = vstv %s6165_s7 }
 0x8e9   : > { %v5227_v55 = vrot.slane %v5211_v51, 1  ;;  %v5196_v56 = vpop.f32.mrf.mxu1  ;;  %v5217_v48 = vmul.f32 0.9084211, %v5211_v51  ;;  %v5286_v51 = vstv %s6167_s23 }
 0x8ea   : > { %v5209_v38 = vrot.slane %v5196_v56, 1  ;;  %v5240_v4 = vadd.f32 %v5235_v22, %v5220_v53  ;;  %v5204_v10 = vmul.f32 0.04578945, %v5196_v56  ;;  %v5292_v56 = vstv %s6169_s4 }
 0x8eb   : > { %v5232_v31 = vsel %vm1085_vm2, %v5226_v15, %v5227_v55  ;;  %v6150_v40 = vpop.f32.mrf.mxu1  ;;  %v5222_v32 = vadd.f32 %v5217_v48, %v5202_v28  ;;  %v11031_v15 = vlaneseq  ;;  %v5298_v53 = vstv %s6171_s26 }
 0x8ec   : > { %v5210_v8 = vsel %vm1085_vm2, %v5208_v23, %v5209_v38  ;;  %v5214_v52 = vsel %vm1085_vm2, %v5209_v38, %v5205_v42  ;;  %v5236_v7 = vmul.f32 0.04578945, %v5232_v31  ;;  %v5245_v50 = vmul.f32 %v5240_v4, %v5240_v4 }
 0x8ed   : > { %v5218_v25 = vmul.f32 0.9084211, %v5210_v8  ;;  %v5228_v41 = vrot.slane %v5210_v8, 1  ;;  %v5229_v57 = vrot.slane %v5214_v52, 1  ;;  %v5219_v54 = vmul.f32 0.9084211, %v5214_v52 }
 0x8ee   : > { %v5241_v17 = vadd.f32 %v5236_v7, %v5221_v63  ;;  %v5270_v16 = vand.u32 127, %v11031_v15  ;;  %v5304_v7 = vstv %s6173_s22 }
 0x8ef   : > { %v5223_v6 = vadd.f32 %v5218_v25, %v5203_v47  ;;  %v5230_v0 = vsel %vm1085_vm2, %v5228_v41, %v5229_v57  ;;  %v5231_v27 = vsel %vm1085_vm2, %v5227_v55, %v5228_v41  ;;  %v5234_v5 = vsel %vm1085_vm2, %v5229_v57, %v5225_v12 }
 0x8f0   : > { %v5237_v20 = vmul.f32 0.04578945, %v5231_v27  ;;  %v5238_v14 = vmul.f32 0.04578945, %v5230_v0  ;;  %v5246_v21 = vmul.f32 %v5241_v17, %v5241_v17  ;;  %v5224_v24 = vadd.f32 %v5219_v54, %v5204_v10 }
 0x8f1   : > { %v5239_v49 = vmul.f32 0.04578945, %v5234_v5  ;;  %v5247_v46 = vmul.f32 %v5241_v17, %v5240_v4  ;;  %vm5271_vm1 = vcmp.eq.s32.totalorder %v5270_v16, 0  ;;  %vm5277_vm2 = vcmp.eq.s32.totalorder %v5270_v16, 1 }
 0x8f2   : > { %v5242_v1 = vadd.f32 %v5237_v20, %v5222_v32  ;;  %v5243_v29 = vadd.f32 %v5238_v14, %v5223_v6  ;;  %v5258_v37 = vadd.f32 %v5246_v21, %v5245_v50  ;;  %vm5283_vm4 = vcmp.eq.s32.totalorder %v5270_v16, 2 }
 0x8f3   : > { %v5244_v39 = vadd.f32 %v5239_v49, %v5224_v24  ;;  %v5255_v35 = vmul.f32 2.0, %v5247_v46  ;;  %v5634_v23 = vsel %vm5271_vm1, 1.0, %v11025_v19  ;;  %v5635_v9 = vsel %vm5277_vm2, 1.0, %v11025_v19 }
 0x8f4   : > { %v5251_v26 = vsub.f32 %v5242_v1, %v5245_v50  ;;  %v5252_v3 = vsub.f32 %v5243_v29, %v5246_v21  ;;  %v5259_v2 = vadd.f32 6.5025, %v5258_v37  ;;  %vm5289_vm5 = vcmp.eq.s32.totalorder %v5270_v16, 3 }
 0x8f5   : > { %v5248_v62 = vsub.f32 %v5244_v39, %v5247_v46  ;;  %v5256_v43 = vadd.f32 6.5025, %v5255_v35  ;;  %v5636_v45 = vsel %vm5283_vm4, 1.0, %v11025_v19  ;;  %v5275_v59 = vmul.f32 %v5634_v23, %v5274_v13 }
 0x8f6   : > { %v5253_v58 = vadd.f32 %v5252_v3, %v5251_v26  ;;  %v5281_v33 = vmul.f32 %v5635_v9, %v5280_v44  ;;  %vm5295_vm6 = vcmp.eq.s32.totalorder %v5270_v16, 4  ;;  %v5637_v55 = vsel %vm5289_vm5, 1.0, %v11025_v19 }
 0x8f7   : > { %v5249_v34 = vmul.f32 2.0, %v5248_v62  ;;  %v5287_v38 = vmul.f32 %v5636_v45, %v5286_v51  ;;  %v5638_v22 = vsel %vm5295_vm6, 1.0, %v11025_v19  ;;  %v5293_v31 = vmul.f32 %v5637_v55, %v5292_v56 }
 0x8f8   : > { %v5254_v11 = vadd.f32 58.5225, %v5253_v58  ;;  %v5282_v63 = vadd.f32 %v5281_v33, %v5275_v59  ;;  %v5299_v48 = vmul.f32 %v5638_v22, %v5298_v53  ;;  %vm5301_vm7 = vcmp.eq.s32.totalorder %v5270_v16, 5 }
 0x8f9   : > { %v5250_v42 = vadd.f32 58.5225, %v5249_v34  ;;  %vm5307_vm8 = vcmp.eq.s32.totalorder %v5270_v16, 6  ;;  %v5639_v52 = vsel %vm5301_vm7, 1.0, %v11025_v19  ;;  %v5310_v25 = vstv %s6175_s28 }
 0x8fa   : > { %v5260_v60 = vmul.f32 %v5259_v2, %v5254_v11  ;;  %6357 = vrcp.f32 %v5254_v11  ;;  %v5288_v40 = vadd.f32 %v5287_v38, %v5282_v63  ;;  %v5640_v47 = vsel %vm5307_vm8, 1.0, %v11025_v19 }
 0x8fb   : > { %v5257_v36 = vmul.f32 %v5256_v43, %v5250_v42  ;;  %v5305_v57 = vmul.f32 %v5639_v52, %v5304_v7  ;;  %v5311_v28 = vmul.f32 %v5640_v47, %v5310_v25  ;;  %vm5313_vm9 = vcmp.eq.s32.totalorder %v5270_v16, 7 }
 0x8fc   : > { %6359 = vrcp.f32 %v5260_v60  ;;  %v5294_v8 = vadd.f32 %v5293_v31, %v5288_v40  ;;  %vm5319_vm10 = vcmp.eq.s32.totalorder %v5270_v16, 8  ;;  %v5641_v17 = vsel %vm5313_vm9, 1.0, %v11025_v19 }
 0x8fd   : > { %v5316_v54 = vstv %s6177_s0  ;;  %vm5325_vm11 = vcmp.eq.s32.totalorder %v5270_v16, 9  ;;  %v5642_v0 = vsel %vm5319_vm10, 1.0, %v11025_v19 }
 0x8fe   : > { %v5300_v41 = vadd.f32 %v5299_v48, %v5294_v8  ;;  %v5317_v27 = vmul.f32 %v5641_v17, %v5316_v54  ;;  %v5643_v20 = vsel %vm5325_vm11, 1.0, %v11025_v19 }
 0x900   : > { %v5306_v4 = vadd.f32 %v5305_v57, %v5300_v41 }
 0x902   : > { %v5312_v6 = vadd.f32 %v5311_v28, %v5306_v4 }
 0x904   : > { %v5318_v14 = vadd.f32 %v5317_v27, %v5312_v6 }
 0x907   : > { %v6358_v61 = vpop.eup %6357 }
 0x908   : > { %v5264_v12 = vmul.f32 %v6358_v61, %v5250_v42 }
 0x909   : > { %v6360_v30 = vpop.eup %6359 }
 0x90a   : > { %v5262_v18 = vmul.f32 %v6360_v30, %v5257_v36 }
 0x90c   : > { %6178 = vpush %v5262_v18 }
 0x90d   : > { %6180 = vpush %v5264_v12 }
 0x93d   : > { %s6179_s25 = spop %6178 }
 0x93e   : > { %v5322_v32 = vstv %s6179_s25  ;;  %s6181_s29 = spop %6180 }
 0x93f   : > { %v5323_v21 = vmul.f32 %v5642_v0, %v5322_v32  ;;  %v5328_v10 = vstv %s6181_s29 }
 0x940   : > { %v5329_v1 = vmul.f32 %v5643_v20, %v5328_v10 }
 0x941   : > { %v5324_v5 = vadd.f32 %v5323_v21, %v5318_v14 }
 0x943   : > { %v5330_v29 = vadd.f32 %v5329_v1, %v5324_v5 }
 0x945   : > { %5332 = vst.msk [vmem:[%s676_s3] sm:$0x1] %vm5331_vm12, %v5330_v29 }
 0x946 PF: > { %p32_p0 = scmp.ge.s32.totalorder %s6958_s16, 8   ;;  %s11033_s18 = smov %s6710_s19 }
 0x947   : > { %s11034_s19 = smov %s6714_s20  ;;  %s11035_s20 = smov %s6969_s30 }
 0x948   : > { %s11036_s21 = smov %s6958_s16  ;;  %34 = sbr.rel (!%p32_p0) target bundleno = 19 (0x13), region = 169 }
 0x94d   :  { %5350 = vsyncpa [#allocation3], 1 }
 0x94e   :  { %5352 = vsyncpa [#allocation3 + $0x1], 1 }
 0x94f   :  { %5353 = vsyncpa [#allocation5], 1 }
 0x950   :  { %5355 = vsyncpa [#allocation5 + $0x1], 1 }
 0x951   :  { %5356 = vsyncpa [#allocation8], 1 }
 0x952   :  { %5357 = vsyncpa [#allocation11], 1 }
 0x953   :  { %5358 = vsyncpa [#allocation14], 1 }
 0x954   :  { %5359 = vsyncpa [#allocation17], 1 }

</bundles_post_ra>
